<compile_context>
chip_gen: v7x
topology: tpu7x:2x2x1
jax: 0.10.0
libtpu: 0.0.40
codegen_flags: <defaults>
</compile_context>

<pallas_src>
import functools
import math

import jax
import jax.numpy as jnp
import numpy as np
from jax import lax
from jax.experimental import pallas as pl
from jax.experimental.pallas import tpu as pltpu


_CHUNK = 512               # lanes per in-kernel sub-chunk (one row of the layout)
_ROWS_PER_STEP_MIN = 8     # sublane tile -> min tile_b = 8 * 512 = 4096 lanes
_TILE_B_BASE = _ROWS_PER_STEP_MIN * _CHUNK      # 4096
_TILE_B_MAX = 32768        # 128 KiB/tile, ~0.5 MiB in flight with double buffering
_MAX_GRID_STEPS_TARGET = 8


# ---------------------------------------------------------------------------
# Parameter initialization (mirrors the torch init scheme of BinaryLogisticNN)
# ---------------------------------------------------------------------------
def xavier_uniform(key, fan_in, fan_out):
    a = math.sqrt(6.0 / (fan_in + fan_out))
    return jax.random.uniform(key, (fan_in, fan_out), jnp.float32, -a, a)


def kaiming_uniform(key, fan_in, fan_out, negative_slope=0.01):
    gain = math.sqrt(2.0 / (1.0 + negative_slope ** 2))
    bound = gain * math.sqrt(3.0 / fan_in)
    return jax.random.uniform(key, (fan_in, fan_out), jnp.float32, -bound, bound)


def init_params(key, shape, relu_activation=False):
    """Returns list of (W (fan_in, fan_out), b (fan_out,)) for every Linear."""
    dims = [1] + list(shape) + [1]
    params = []
    for li in range(len(dims) - 1):
        key, kw, kb = jax.random.split(key, 3)
        fan_in, fan_out = dims[li], dims[li + 1]
        if li == 0 and relu_activation:
            w = kaiming_uniform(kw, fan_in, fan_out)
        else:
            w = xavier_uniform(kw, fan_in, fan_out)
        b = jax.random.normal(kb, (fan_out,), jnp.float32)  # N(0, 1) bias (per spec)
        params.append((w, b))
    return params


# ---------------------------------------------------------------------------
# Tiling choice: big N-adaptive tile, >= 2 and even grid steps (v7x megacore)
# ---------------------------------------------------------------------------
def _choose_tiling(N, tile_b=None):
    if tile_b is None:
        tile_b = _TILE_B_BASE
        # Grow the tile for large batches so per-step overhead stays amortized;
        # cap keeps in-flight VMEM well under 1 MiB (fine even on v7x).
        while pl.cdiv(N, tile_b) > _MAX_GRID_STEPS_TARGET and tile_b < _TILE_B_MAX:
            tile_b *= 2
    if tile_b % _TILE_B_BASE != 0:
        raise ValueError(
            f"tile_b must be a multiple of {_TILE_B_BASE} "
            f"(= {_ROWS_PER_STEP_MIN} sublanes x {_CHUNK} lanes); got {tile_b}")
    steps = max(pl.cdiv(N, tile_b), 2)      # >= 2 steps so both v7x TCs get work
    if steps % 2:
        steps += 1                          # even split across v7x's 2 TensorCores
    return tile_b, steps


# ---------------------------------------------------------------------------
# Pallas kernel: transposed MLP, batch on lanes, 512-lane sub-chunks
# ---------------------------------------------------------------------------
def _mlp_kernel(x_ref, *refs, num_layers, relu_first):
    """x_ref / o_ref: (rows_per_step, 512) lane-dense batch tile (one batch
    element per lane, 512 elements per row).
    refs = [w0_col (H0,1), b0_col (H0,1),
            W1^T (H1,H0), b1_col (H1,1), ...,
            w_last_col (Hl,1), b_last (1,1),
            o_ref]"""
    o_ref = refs[-1]
    wb = refs[:-1]

    # Hoist all (tiny) parameter loads once per grid step.
    w0 = wb[0][...]                                   # (H0, 1)
    b0 = wb[1][...]                                   # (H0, 1)
    hidden = [(wb[2 * li][...], wb[2 * li + 1][...])  # (H_out, H_in), (H_out, 1)
              for li in range(1, num_layers - 1)]
    w_last = wb[2 * (num_layers - 1)][...]            # (H_last, 1)
    b_last = wb[2 * (num_layers - 1) + 1][...]        # (1, 1)

    num_chunks = x_ref.shape[0]                       # static: rows per grid step

    def sigmoid(v):
        # 0.5*(tanh(v/2)+1): 1 EUP op + 2 VALU ops, vs exp + exact f32 divide.
        return 0.5 * (jnp.tanh(0.5 * v) + 1.0)

    def body(c, carry):
        # Dynamic index on the SUBLANE axis; lane axis stays a dense 512.
        x = x_ref[pl.ds(c, 1), :]                     # (1, CHUNK)

        # Layer 0 (K=1): VPU broadcast multiply-add, normalization pre-folded.
        h = w0 * x + b0                               # (H0, CHUNK)
        if relu_first:
            h = jnp.maximum(h, 0.01 * h)              # LeakyReLU(0.01): mul + max
        else:
            h = sigmoid(h)

        # Hidden layers: square matmuls on the MXU, N dimension = batch lanes.
        for w_t, b in hidden:
            h = jnp.dot(w_t, h, preferred_element_type=jnp.float32) + b
            h = sigmoid(h)

        # Last layer (out dim 1): sublane reduce on the XLU, not an N=1 matmul.
        out = jnp.sum(h * w_last, axis=0, keepdims=True) + b_last   # (1, CHUNK)
        o_ref[pl.ds(c, 1), :] = out.astype(o_ref.dtype)
        return carry

    # fori_loop (not a Python for) bounds the live range of each chunk's
    # activations; unroll keeps the LLO scheduler's window reasonable.
    lax.fori_loop(0, num_chunks, body, 0, unroll=min(num_chunks, 8))


# ---------------------------------------------------------------------------
# Wrapper
# ---------------------------------------------------------------------------
def binary_logistic_nn_forward(x, params, mean, std, relu_activation=False,
                               tile_b=None):
    """x: (N, 1) or (N,) float32 keys -> logits (N, 1) float32."""
    x = jnp.asarray(x, jnp.float32).reshape(-1)
    N = x.shape[0]
    num_layers = len(params)
    assert num_layers >= 2

    # Fold (x - mean) / std into layer 0:  w0' = w0 / std, b0' = b0 - mean * w0'.
    inv_std = 1.0 / float(std)
    w0, b0 = params[0]                                             # (1, H0), (H0,)
    w0_col = jnp.asarray(w0, jnp.float32).reshape(-1, 1) * inv_std  # (H0, 1)
    b0_col = jnp.asarray(b0, jnp.float32).reshape(-1, 1) - float(mean) * w0_col

    flat_params = [w0_col, b0_col]
    for li in range(1, num_layers - 1):
        w, b = params[li]
        flat_params += [jnp.asarray(w, jnp.float32).T,              # (H_out, H_in)
                        jnp.asarray(b, jnp.float32).reshape(-1, 1)]  # (H_out, 1)
    w_l, b_l = params[num_layers - 1]
    flat_params += [jnp.asarray(w_l, jnp.float32).reshape(-1, 1),   # (H_last, 1)
                    jnp.asarray(b_l, jnp.float32).reshape(1, 1)]    # (1, 1)

    tile_b, steps = _choose_tiling(N, tile_b)
    tile_rows = tile_b // _CHUNK
    n_pad = steps * tile_b
    rows_total = n_pad // _CHUNK

    # Single pad pass + free reshape to the (rows, 512) lane-dense layout.
    x_grid = jnp.pad(x, (0, n_pad - N)).reshape(rows_total, _CHUNK)

    # Full-array param blocks with constant index_map: DMA'd once, reused.
    param_specs = [pl.BlockSpec(p.shape, lambda i: (0, 0)) for p in flat_params]

    kernel = functools.partial(_mlp_kernel, num_layers=num_layers,
                               relu_first=relu_activation)

    out = pl.pallas_call(
        kernel,
        out_shape=jax.ShapeDtypeStruct((rows_total, _CHUNK), jnp.float32),
        grid_spec=pltpu.PrefetchScalarGridSpec(
            num_scalar_prefetch=0,
            grid=(steps,),
            in_specs=[pl.BlockSpec((tile_rows, _CHUNK), lambda i: (i, 0)),  # x tile
                      *param_specs],
            out_specs=pl.BlockSpec((tile_rows, _CHUNK), lambda i: (i, 0)),
        ),
        compiler_params=pltpu.CompilerParams(
            dimension_semantics=("parallel",)),     # sharded across v7x's 2 TCs
    )(x_grid, *flat_params)

    # TODO(synk): the ragged tail could be masked in-kernel (scalar-prefetch N)
    # to avoid this O(N) slice pass; kept wrapper-side for simplicity.
    return out.reshape(-1)[:N].reshape(N, 1)


# ---------------------------------------------------------------------------
# Pure-JAX reference (standard orientation, exact sigmoid, for correctness)
# ---------------------------------------------------------------------------
def reference_forward(x, params, mean, std, relu_activation=False):
    h = (jnp.asarray(x, jnp.float32).reshape(-1, 1) - mean) / std
    n = len(params)
    for li, (w, b) in enumerate(params):
        h = h @ w + b.reshape(1, -1)
        if li < n - 1:
            if li == 0 and relu_activation:
                h = jnp.where(h > 0, h, 0.01 * h)
            else:
                h = jax.nn.sigmoid(h)
    return h


# ---------------------------------------------------------------------------
if __name__ == "__main__":
    key = jax.random.PRNGKey(0)
    k_params, k_params_relu, k_x = jax.random.split(key, 3)

    shape = (32, 32)          # BinaryLogisticNN(shape=(32, 32), mean, std)
    mean, std = 0.5, 0.25

    N = 2000                  # ragged batch of scalar keys (exercises padding)
    x = jax.random.uniform(k_x, (N, 1), jnp.float32)

    # Sigmoid-first path (default)
    params = init_params(k_params, shape, relu_activation=False)
    logits = binary_logistic_nn_forward(x, params, mean, std,
                                        relu_activation=False)
    logits = jax.block_until_ready(logits)
    ref = reference_forward(x, params, mean, std, relu_activation=False)
    np.testing.assert_allclose(np.asarray(logits), np.asarray(ref),
                               rtol=2e-5, atol=2e-5)

    # LeakyReLU-first path
    params_r = init_params(k_params_relu, shape, relu_activation=True)
    logits_r = binary_logistic_nn_forward(x, params_r, mean, std,
                                          relu_activation=True)
    logits_r = jax.block_until_ready(logits_r)
    ref_r = reference_forward(x, params_r, mean, std, relu_activation=True)
    np.testing.assert_allclose(np.asarray(logits_r), np.asarray(ref_r),
                               rtol=2e-5, atol=2e-5)

    print("KERNEL_OK")
</pallas_src>

<mosaic_0001>
module attributes {stable_mosaic.version = 11 : i64} {
  func.func @_mlp_kernel(%arg0: i32, %arg1: memref<8x512xf32, #tpu.memory_space<vmem>>, %arg2: memref<32x1xf32, #tpu.memory_space<vmem>>, %arg3: memref<32x1xf32, #tpu.memory_space<vmem>>, %arg4: memref<32x32xf32, #tpu.memory_space<vmem>>, %arg5: memref<32x1xf32, #tpu.memory_space<vmem>>, %arg6: memref<32x1xf32, #tpu.memory_space<vmem>>, %arg7: memref<1x1xf32, #tpu.memory_space<vmem>>, %arg8: memref<8x512xf32, #tpu.memory_space<vmem>>) attributes {dimension_semantics = [#tpu.dimension_semantics<parallel>], iteration_bounds = array<i64: 2>, scalar_prefetch = 0 : i64, scratch_operands = 0 : i64, tpu.core_type = #tpu.core_type<tc>, window_params = [{transform_indices = @transform_0, window_bounds = array<i64: 8, 512>}, {pipeline_mode = #tpu.pipeline_mode<synchronous>, transform_indices = @transform_1, window_bounds = array<i64: 32, 1>}, {pipeline_mode = #tpu.pipeline_mode<synchronous>, transform_indices = @transform_2, window_bounds = array<i64: 32, 1>}, {pipeline_mode = #tpu.pipeline_mode<synchronous>, transform_indices = @transform_3, window_bounds = array<i64: 32, 32>}, {pipeline_mode = #tpu.pipeline_mode<synchronous>, transform_indices = @transform_4, window_bounds = array<i64: 32, 1>}, {pipeline_mode = #tpu.pipeline_mode<synchronous>, transform_indices = @transform_5, window_bounds = array<i64: 32, 1>}, {pipeline_mode = #tpu.pipeline_mode<synchronous>, transform_indices = @transform_6, window_bounds = array<i64: 1, 1>}, {transform_indices = @transform_7, window_bounds = array<i64: 8, 512>}]} {
    %c0 = arith.constant 0 : index
    %c0_0 = arith.constant 0 : index
    %0 = vector.load %arg2[%c0, %c0_0] : memref<32x1xf32, #tpu.memory_space<vmem>>, vector<32x1xf32>
    %c0_1 = arith.constant 0 : index
    %c0_2 = arith.constant 0 : index
    %1 = vector.load %arg3[%c0_1, %c0_2] : memref<32x1xf32, #tpu.memory_space<vmem>>, vector<32x1xf32>
    %c0_3 = arith.constant 0 : index
    %c0_4 = arith.constant 0 : index
    %2 = vector.load %arg4[%c0_3, %c0_4] : memref<32x32xf32, #tpu.memory_space<vmem>>, vector<32x32xf32>
    %c0_5 = arith.constant 0 : index
    %c0_6 = arith.constant 0 : index
    %3 = vector.load %arg5[%c0_5, %c0_6] : memref<32x1xf32, #tpu.memory_space<vmem>>, vector<32x1xf32>
    %c0_7 = arith.constant 0 : index
    %c0_8 = arith.constant 0 : index
    %4 = vector.load %arg6[%c0_7, %c0_8] : memref<32x1xf32, #tpu.memory_space<vmem>>, vector<32x1xf32>
    %c0_9 = arith.constant 0 : index
    %c0_10 = arith.constant 0 : index
    %5 = vector.load %arg7[%c0_9, %c0_10] : memref<1x1xf32, #tpu.memory_space<vmem>>, vector<1x1xf32>
    %c0_i32 = arith.constant 0 : i32
    %6 = arith.index_cast %c0_i32 : i32 to index
    %c0_11 = arith.constant 0 : index
    %7 = vector.load %arg1[%6, %c0_11] : memref<8x512xf32, #tpu.memory_space<vmem>>, vector<1x512xf32>
    %8 = vector.broadcast %0 : vector<32x1xf32> to vector<32x512xf32>
    %9 = vector.broadcast %7 : vector<1x512xf32> to vector<32x512xf32>
    %10 = arith.mulf %8, %9 : vector<32x512xf32>
    %11 = vector.broadcast %1 : vector<32x1xf32> to vector<32x512xf32>
    %12 = arith.addf %10, %11 : vector<32x512xf32>
    %cst = arith.constant 5.000000e-01 : f32
    %13 = vector.broadcast %cst : f32 to vector<32x512xf32>
    %14 = arith.mulf %13, %12 : vector<32x512xf32>
    %15 = math.tanh %14 : vector<32x512xf32>
    %cst_12 = arith.constant 1.000000e+00 : f32
    %16 = vector.broadcast %cst_12 : f32 to vector<32x512xf32>
    %17 = arith.addf %15, %16 : vector<32x512xf32>
    %cst_13 = arith.constant 5.000000e-01 : f32
    %18 = vector.broadcast %cst_13 : f32 to vector<32x512xf32>
    %19 = arith.mulf %18, %17 : vector<32x512xf32>
    %cst_14 = arith.constant dense<0.000000e+00> : vector<32x512xf32>
    %20 = tpu.matmul %2, %19, %cst_14 {dimension_numbers = #tpu.dot_dimension_numbers<[1], [0], [0], [1], [0, 0, 1, 1], [], []>} : vector<32x32xf32>, vector<32x512xf32>, vector<32x512xf32> -> vector<32x512xf32>
    %21 = vector.broadcast %3 : vector<32x1xf32> to vector<32x512xf32>
    %22 = arith.addf %20, %21 : vector<32x512xf32>
    %cst_15 = arith.constant 5.000000e-01 : f32
    %23 = vector.broadcast %cst_15 : f32 to vector<32x512xf32>
    %24 = arith.mulf %23, %22 : vector<32x512xf32>
    %25 = math.tanh %24 : vector<32x512xf32>
    %cst_16 = arith.constant 1.000000e+00 : f32
    %26 = vector.broadcast %cst_16 : f32 to vector<32x512xf32>
    %27 = arith.addf %25, %26 : vector<32x512xf32>
    %cst_17 = arith.constant 5.000000e-01 : f32
    %28 = vector.broadcast %cst_17 : f32 to vector<32x512xf32>
    %29 = arith.mulf %28, %27 : vector<32x512xf32>
    %30 = vector.broadcast %4 : vector<32x1xf32> to vector<32x512xf32>
    %31 = arith.mulf %29, %30 : vector<32x512xf32>
    %cst_18 = arith.constant dense<0.000000e+00> : vector<512xf32>
    %32 = vector.multi_reduction <add>, %31, %cst_18 [0] : vector<32x512xf32> to vector<512xf32>
    %33 = vector.shape_cast %32 : vector<512xf32> to vector<1x512xf32>
    %34 = vector.broadcast %5 : vector<1x1xf32> to vector<1x512xf32>
    %35 = arith.addf %33, %34 : vector<1x512xf32>
    %36 = arith.index_cast %c0_i32 : i32 to index
    %c0_19 = arith.constant 0 : index
    %37 = vector.load %arg8[%36, %c0_19] : memref<8x512xf32, #tpu.memory_space<vmem>>, vector<1x512xf32>
    tpu.vector_store %arg8[%36, %c0_19], %35 {strides = array<i32>} : memref<8x512xf32, #tpu.memory_space<vmem>>, vector<1x512xf32>,
    %c1_i32 = arith.constant 1 : i32
    %38 = arith.index_cast %c1_i32 : i32 to index
    %c0_20 = arith.constant 0 : index
    %39 = vector.load %arg1[%38, %c0_20] : memref<8x512xf32, #tpu.memory_space<vmem>>, vector<1x512xf32>
    %40 = vector.broadcast %0 : vector<32x1xf32> to vector<32x512xf32>
    %41 = vector.broadcast %39 : vector<1x512xf32> to vector<32x512xf32>
    %42 = arith.mulf %40, %41 : vector<32x512xf32>
    %43 = vector.broadcast %1 : vector<32x1xf32> to vector<32x512xf32>
    %44 = arith.addf %42, %43 : vector<32x512xf32>
    %cst_21 = arith.constant 5.000000e-01 : f32
    %45 = vector.broadcast %cst_21 : f32 to vector<32x512xf32>
    %46 = arith.mulf %45, %44 : vector<32x512xf32>
    %47 = math.tanh %46 : vector<32x512xf32>
    %cst_22 = arith.constant 1.000000e+00 : f32
    %48 = vector.broadcast %cst_22 : f32 to vector<32x512xf32>
    %49 = arith.addf %47, %48 : vector<32x512xf32>
    %cst_23 = arith.constant 5.000000e-01 : f32
    %50 = vector.broadcast %cst_23 : f32 to vector<32x512xf32>
    %51 = arith.mulf %50, %49 : vector<32x512xf32>
    %cst_24 = arith.constant dense<0.000000e+00> : vector<32x512xf32>
    %52 = tpu.matmul %2, %51, %cst_24 {dimension_numbers = #tpu.dot_dimension_numbers<[1], [0], [0], [1], [0, 0, 1, 1], [], []>} : vector<32x32xf32>, vector<32x512xf32>, vector<32x512xf32> -> vector<32x512xf32>
    %53 = vector.broadcast %3 : vector<32x1xf32> to vector<32x512xf32>
    %54 = arith.addf %52, %53 : vector<32x512xf32>
    %cst_25 = arith.constant 5.000000e-01 : f32
    %55 = vector.broadcast %cst_25 : f32 to vector<32x512xf32>
    %56 = arith.mulf %55, %54 : vector<32x512xf32>
    %57 = math.tanh %56 : vector<32x512xf32>
    %cst_26 = arith.constant 1.000000e+00 : f32
    %58 = vector.broadcast %cst_26 : f32 to vector<32x512xf32>
    %59 = arith.addf %57, %58 : vector<32x512xf32>
    %cst_27 = arith.constant 5.000000e-01 : f32
    %60 = vector.broadcast %cst_27 : f32 to vector<32x512xf32>
    %61 = arith.mulf %60, %59 : vector<32x512xf32>
    %62 = vector.broadcast %4 : vector<32x1xf32> to vector<32x512xf32>
    %63 = arith.mulf %61, %62 : vector<32x512xf32>
    %cst_28 = arith.constant dense<0.000000e+00> : vector<512xf32>
    %64 = vector.multi_reduction <add>, %63, %cst_28 [0] : vector<32x512xf32> to vector<512xf32>
    %65 = vector.shape_cast %64 : vector<512xf32> to vector<1x512xf32>
    %66 = vector.broadcast %5 : vector<1x1xf32> to vector<1x512xf32>
    %67 = arith.addf %65, %66 : vector<1x512xf32>
    %68 = arith.index_cast %c1_i32 : i32 to index
    %c0_29 = arith.constant 0 : index
    %69 = vector.load %arg8[%68, %c0_29] : memref<8x512xf32, #tpu.memory_space<vmem>>, vector<1x512xf32>
    tpu.vector_store %arg8[%68, %c0_29], %67 {strides = array<i32>} : memref<8x512xf32, #tpu.memory_space<vmem>>, vector<1x512xf32>,
    %c2_i32 = arith.constant 2 : i32
    %70 = arith.index_cast %c2_i32 : i32 to index
    %c0_30 = arith.constant 0 : index
    %71 = vector.load %arg1[%70, %c0_30] : memref<8x512xf32, #tpu.memory_space<vmem>>, vector<1x512xf32>
    %72 = vector.broadcast %0 : vector<32x1xf32> to vector<32x512xf32>
    %73 = vector.broadcast %71 : vector<1x512xf32> to vector<32x512xf32>
    %74 = arith.mulf %72, %73 : vector<32x512xf32>
    %75 = vector.broadcast %1 : vector<32x1xf32> to vector<32x512xf32>
    %76 = arith.addf %74, %75 : vector<32x512xf32>
    %cst_31 = arith.constant 5.000000e-01 : f32
    %77 = vector.broadcast %cst_31 : f32 to vector<32x512xf32>
    %78 = arith.mulf %77, %76 : vector<32x512xf32>
    %79 = math.tanh %78 : vector<32x512xf32>
    %cst_32 = arith.constant 1.000000e+00 : f32
    %80 = vector.broadcast %cst_32 : f32 to vector<32x512xf32>
    %81 = arith.addf %79, %80 : vector<32x512xf32>
    %cst_33 = arith.constant 5.000000e-01 : f32
    %82 = vector.broadcast %cst_33 : f32 to vector<32x512xf32>
    %83 = arith.mulf %82, %81 : vector<32x512xf32>
    %cst_34 = arith.constant dense<0.000000e+00> : vector<32x512xf32>
    %84 = tpu.matmul %2, %83, %cst_34 {dimension_numbers = #tpu.dot_dimension_numbers<[1], [0], [0], [1], [0, 0, 1, 1], [], []>} : vector<32x32xf32>, vector<32x512xf32>, vector<32x512xf32> -> vector<32x512xf32>
    %85 = vector.broadcast %3 : vector<32x1xf32> to vector<32x512xf32>
    %86 = arith.addf %84, %85 : vector<32x512xf32>
    %cst_35 = arith.constant 5.000000e-01 : f32
    %87 = vector.broadcast %cst_35 : f32 to vector<32x512xf32>
    %88 = arith.mulf %87, %86 : vector<32x512xf32>
    %89 = math.tanh %88 : vector<32x512xf32>
    %cst_36 = arith.constant 1.000000e+00 : f32
    %90 = vector.broadcast %cst_36 : f32 to vector<32x512xf32>
    %91 = arith.addf %89, %90 : vector<32x512xf32>
    %cst_37 = arith.constant 5.000000e-01 : f32
    %92 = vector.broadcast %cst_37 : f32 to vector<32x512xf32>
    %93 = arith.mulf %92, %91 : vector<32x512xf32>
    %94 = vector.broadcast %4 : vector<32x1xf32> to vector<32x512xf32>
    %95 = arith.mulf %93, %94 : vector<32x512xf32>
    %cst_38 = arith.constant dense<0.000000e+00> : vector<512xf32>
    %96 = vector.multi_reduction <add>, %95, %cst_38 [0] : vector<32x512xf32> to vector<512xf32>
    %97 = vector.shape_cast %96 : vector<512xf32> to vector<1x512xf32>
    %98 = vector.broadcast %5 : vector<1x1xf32> to vector<1x512xf32>
    %99 = arith.addf %97, %98 : vector<1x512xf32>
    %100 = arith.index_cast %c2_i32 : i32 to index
    %c0_39 = arith.constant 0 : index
    %101 = vector.load %arg8[%100, %c0_39] : memref<8x512xf32, #tpu.memory_space<vmem>>, vector<1x512xf32>
    tpu.vector_store %arg8[%100, %c0_39], %99 {strides = array<i32>} : memref<8x512xf32, #tpu.memory_space<vmem>>, vector<1x512xf32>,
    %c3_i32 = arith.constant 3 : i32
    %102 = arith.index_cast %c3_i32 : i32 to index
    %c0_40 = arith.constant 0 : index
    %103 = vector.load %arg1[%102, %c0_40] : memref<8x512xf32, #tpu.memory_space<vmem>>, vector<1x512xf32>
    %104 = vector.broadcast %0 : vector<32x1xf32> to vector<32x512xf32>
    %105 = vector.broadcast %103 : vector<1x512xf32> to vector<32x512xf32>
    %106 = arith.mulf %104, %105 : vector<32x512xf32>
    %107 = vector.broadcast %1 : vector<32x1xf32> to vector<32x512xf32>
    %108 = arith.addf %106, %107 : vector<32x512xf32>
    %cst_41 = arith.constant 5.000000e-01 : f32
    %109 = vector.broadcast %cst_41 : f32 to vector<32x512xf32>
    %110 = arith.mulf %109, %108 : vector<32x512xf32>
    %111 = math.tanh %110 : vector<32x512xf32>
    %cst_42 = arith.constant 1.000000e+00 : f32
    %112 = vector.broadcast %cst_42 : f32 to vector<32x512xf32>
    %113 = arith.addf %111, %112 : vector<32x512xf32>
    %cst_43 = arith.constant 5.000000e-01 : f32
    %114 = vector.broadcast %cst_43 : f32 to vector<32x512xf32>
    %115 = arith.mulf %114, %113 : vector<32x512xf32>
    %cst_44 = arith.constant dense<0.000000e+00> : vector<32x512xf32>
    %116 = tpu.matmul %2, %115, %cst_44 {dimension_numbers = #tpu.dot_dimension_numbers<[1], [0], [0], [1], [0, 0, 1, 1], [], []>} : vector<32x32xf32>, vector<32x512xf32>, vector<32x512xf32> -> vector<32x512xf32>
    %117 = vector.broadcast %3 : vector<32x1xf32> to vector<32x512xf32>
    %118 = arith.addf %116, %117 : vector<32x512xf32>
    %cst_45 = arith.constant 5.000000e-01 : f32
    %119 = vector.broadcast %cst_45 : f32 to vector<32x512xf32>
    %120 = arith.mulf %119, %118 : vector<32x512xf32>
    %121 = math.tanh %120 : vector<32x512xf32>
    %cst_46 = arith.constant 1.000000e+00 : f32
    %122 = vector.broadcast %cst_46 : f32 to vector<32x512xf32>
    %123 = arith.addf %121, %122 : vector<32x512xf32>
    %cst_47 = arith.constant 5.000000e-01 : f32
    %124 = vector.broadcast %cst_47 : f32 to vector<32x512xf32>
    %125 = arith.mulf %124, %123 : vector<32x512xf32>
    %126 = vector.broadcast %4 : vector<32x1xf32> to vector<32x512xf32>
    %127 = arith.mulf %125, %126 : vector<32x512xf32>
    %cst_48 = arith.constant dense<0.000000e+00> : vector<512xf32>
    %128 = vector.multi_reduction <add>, %127, %cst_48 [0] : vector<32x512xf32> to vector<512xf32>
    %129 = vector.shape_cast %128 : vector<512xf32> to vector<1x512xf32>
    %130 = vector.broadcast %5 : vector<1x1xf32> to vector<1x512xf32>
    %131 = arith.addf %129, %130 : vector<1x512xf32>
    %132 = arith.index_cast %c3_i32 : i32 to index
    %c0_49 = arith.constant 0 : index
    %133 = vector.load %arg8[%132, %c0_49] : memref<8x512xf32, #tpu.memory_space<vmem>>, vector<1x512xf32>
    tpu.vector_store %arg8[%132, %c0_49], %131 {strides = array<i32>} : memref<8x512xf32, #tpu.memory_space<vmem>>, vector<1x512xf32>,
    %c4_i32 = arith.constant 4 : i32
    %134 = arith.index_cast %c4_i32 : i32 to index
    %c0_50 = arith.constant 0 : index
    %135 = vector.load %arg1[%134, %c0_50] : memref<8x512xf32, #tpu.memory_space<vmem>>, vector<1x512xf32>
    %136 = vector.broadcast %0 : vector<32x1xf32> to vector<32x512xf32>
    %137 = vector.broadcast %135 : vector<1x512xf32> to vector<32x512xf32>
    %138 = arith.mulf %136, %137 : vector<32x512xf32>
    %139 = vector.broadcast %1 : vector<32x1xf32> to vector<32x512xf32>
    %140 = arith.addf %138, %139 : vector<32x512xf32>
    %cst_51 = arith.constant 5.000000e-01 : f32
    %141 = vector.broadcast %cst_51 : f32 to vector<32x512xf32>
    %142 = arith.mulf %141, %140 : vector<32x512xf32>
    %143 = math.tanh %142 : vector<32x512xf32>
    %cst_52 = arith.constant 1.000000e+00 : f32
    %144 = vector.broadcast %cst_52 : f32 to vector<32x512xf32>
    %145 = arith.addf %143, %144 : vector<32x512xf32>
    %cst_53 = arith.constant 5.000000e-01 : f32
    %146 = vector.broadcast %cst_53 : f32 to vector<32x512xf32>
    %147 = arith.mulf %146, %145 : vector<32x512xf32>
    %cst_54 = arith.constant dense<0.000000e+00> : vector<32x512xf32>
    %148 = tpu.matmul %2, %147, %cst_54 {dimension_numbers = #tpu.dot_dimension_numbers<[1], [0], [0], [1], [0, 0, 1, 1], [], []>} : vector<32x32xf32>, vector<32x512xf32>, vector<32x512xf32> -> vector<32x512xf32>
    %149 = vector.broadcast %3 : vector<32x1xf32> to vector<32x512xf32>
    %150 = arith.addf %148, %149 : vector<32x512xf32>
    %cst_55 = arith.constant 5.000000e-01 : f32
    %151 = vector.broadcast %cst_55 : f32 to vector<32x512xf32>
    %152 = arith.mulf %151, %150 : vector<32x512xf32>
    %153 = math.tanh %152 : vector<32x512xf32>
    %cst_56 = arith.constant 1.000000e+00 : f32
    %154 = vector.broadcast %cst_56 : f32 to vector<32x512xf32>
    %155 = arith.addf %153, %154 : vector<32x512xf32>
    %cst_57 = arith.constant 5.000000e-01 : f32
    %156 = vector.broadcast %cst_57 : f32 to vector<32x512xf32>
    %157 = arith.mulf %156, %155 : vector<32x512xf32>
    %158 = vector.broadcast %4 : vector<32x1xf32> to vector<32x512xf32>
    %159 = arith.mulf %157, %158 : vector<32x512xf32>
    %cst_58 = arith.constant dense<0.000000e+00> : vector<512xf32>
    %160 = vector.multi_reduction <add>, %159, %cst_58 [0] : vector<32x512xf32> to vector<512xf32>
    %161 = vector.shape_cast %160 : vector<512xf32> to vector<1x512xf32>
    %162 = vector.broadcast %5 : vector<1x1xf32> to vector<1x512xf32>
    %163 = arith.addf %161, %162 : vector<1x512xf32>
    %164 = arith.index_cast %c4_i32 : i32 to index
    %c0_59 = arith.constant 0 : index
    %165 = vector.load %arg8[%164, %c0_59] : memref<8x512xf32, #tpu.memory_space<vmem>>, vector<1x512xf32>
    tpu.vector_store %arg8[%164, %c0_59], %163 {strides = array<i32>} : memref<8x512xf32, #tpu.memory_space<vmem>>, vector<1x512xf32>,
    %c5_i32 = arith.constant 5 : i32
    %166 = arith.index_cast %c5_i32 : i32 to index
    %c0_60 = arith.constant 0 : index
    %167 = vector.load %arg1[%166, %c0_60] : memref<8x512xf32, #tpu.memory_space<vmem>>, vector<1x512xf32>
    %168 = vector.broadcast %0 : vector<32x1xf32> to vector<32x512xf32>
    %169 = vector.broadcast %167 : vector<1x512xf32> to vector<32x512xf32>
    %170 = arith.mulf %168, %169 : vector<32x512xf32>
    %171 = vector.broadcast %1 : vector<32x1xf32> to vector<32x512xf32>
    %172 = arith.addf %170, %171 : vector<32x512xf32>
    %cst_61 = arith.constant 5.000000e-01 : f32
    %173 = vector.broadcast %cst_61 : f32 to vector<32x512xf32>
    %174 = arith.mulf %173, %172 : vector<32x512xf32>
    %175 = math.tanh %174 : vector<32x512xf32>
    %cst_62 = arith.constant 1.000000e+00 : f32
    %176 = vector.broadcast %cst_62 : f32 to vector<32x512xf32>
    %177 = arith.addf %175, %176 : vector<32x512xf32>
    %cst_63 = arith.constant 5.000000e-01 : f32
    %178 = vector.broadcast %cst_63 : f32 to vector<32x512xf32>
    %179 = arith.mulf %178, %177 : vector<32x512xf32>
    %cst_64 = arith.constant dense<0.000000e+00> : vector<32x512xf32>
    %180 = tpu.matmul %2, %179, %cst_64 {dimension_numbers = #tpu.dot_dimension_numbers<[1], [0], [0], [1], [0, 0, 1, 1], [], []>} : vector<32x32xf32>, vector<32x512xf32>, vector<32x512xf32> -> vector<32x512xf32>
    %181 = vector.broadcast %3 : vector<32x1xf32> to vector<32x512xf32>
    %182 = arith.addf %180, %181 : vector<32x512xf32>
    %cst_65 = arith.constant 5.000000e-01 : f32
    %183 = vector.broadcast %cst_65 : f32 to vector<32x512xf32>
    %184 = arith.mulf %183, %182 : vector<32x512xf32>
    %185 = math.tanh %184 : vector<32x512xf32>
    %cst_66 = arith.constant 1.000000e+00 : f32
    %186 = vector.broadcast %cst_66 : f32 to vector<32x512xf32>
    %187 = arith.addf %185, %186 : vector<32x512xf32>
    %cst_67 = arith.constant 5.000000e-01 : f32
    %188 = vector.broadcast %cst_67 : f32 to vector<32x512xf32>
    %189 = arith.mulf %188, %187 : vector<32x512xf32>
    %190 = vector.broadcast %4 : vector<32x1xf32> to vector<32x512xf32>
    %191 = arith.mulf %189, %190 : vector<32x512xf32>
    %cst_68 = arith.constant dense<0.000000e+00> : vector<512xf32>
    %192 = vector.multi_reduction <add>, %191, %cst_68 [0] : vector<32x512xf32> to vector<512xf32>
    %193 = vector.shape_cast %192 : vector<512xf32> to vector<1x512xf32>
    %194 = vector.broadcast %5 : vector<1x1xf32> to vector<1x512xf32>
    %195 = arith.addf %193, %194 : vector<1x512xf32>
    %196 = arith.index_cast %c5_i32 : i32 to index
    %c0_69 = arith.constant 0 : index
    %197 = vector.load %arg8[%196, %c0_69] : memref<8x512xf32, #tpu.memory_space<vmem>>, vector<1x512xf32>
    tpu.vector_store %arg8[%196, %c0_69], %195 {strides = array<i32>} : memref<8x512xf32, #tpu.memory_space<vmem>>, vector<1x512xf32>,
    %c6_i32 = arith.constant 6 : i32
    %198 = arith.index_cast %c6_i32 : i32 to index
    %c0_70 = arith.constant 0 : index
    %199 = vector.load %arg1[%198, %c0_70] : memref<8x512xf32, #tpu.memory_space<vmem>>, vector<1x512xf32>
    %200 = vector.broadcast %0 : vector<32x1xf32> to vector<32x512xf32>
    %201 = vector.broadcast %199 : vector<1x512xf32> to vector<32x512xf32>
    %202 = arith.mulf %200, %201 : vector<32x512xf32>
    %203 = vector.broadcast %1 : vector<32x1xf32> to vector<32x512xf32>
    %204 = arith.addf %202, %203 : vector<32x512xf32>
    %cst_71 = arith.constant 5.000000e-01 : f32
    %205 = vector.broadcast %cst_71 : f32 to vector<32x512xf32>
    %206 = arith.mulf %205, %204 : vector<32x512xf32>
    %207 = math.tanh %206 : vector<32x512xf32>
    %cst_72 = arith.constant 1.000000e+00 : f32
    %208 = vector.broadcast %cst_72 : f32 to vector<32x512xf32>
    %209 = arith.addf %207, %208 : vector<32x512xf32>
    %cst_73 = arith.constant 5.000000e-01 : f32
    %210 = vector.broadcast %cst_73 : f32 to vector<32x512xf32>
    %211 = arith.mulf %210, %209 : vector<32x512xf32>
    %cst_74 = arith.constant dense<0.000000e+00> : vector<32x512xf32>
    %212 = tpu.matmul %2, %211, %cst_74 {dimension_numbers = #tpu.dot_dimension_numbers<[1], [0], [0], [1], [0, 0, 1, 1], [], []>} : vector<32x32xf32>, vector<32x512xf32>, vector<32x512xf32> -> vector<32x512xf32>
    %213 = vector.broadcast %3 : vector<32x1xf32> to vector<32x512xf32>
    %214 = arith.addf %212, %213 : vector<32x512xf32>
    %cst_75 = arith.constant 5.000000e-01 : f32
    %215 = vector.broadcast %cst_75 : f32 to vector<32x512xf32>
    %216 = arith.mulf %215, %214 : vector<32x512xf32>
    %217 = math.tanh %216 : vector<32x512xf32>
    %cst_76 = arith.constant 1.000000e+00 : f32
    %218 = vector.broadcast %cst_76 : f32 to vector<32x512xf32>
    %219 = arith.addf %217, %218 : vector<32x512xf32>
    %cst_77 = arith.constant 5.000000e-01 : f32
    %220 = vector.broadcast %cst_77 : f32 to vector<32x512xf32>
    %221 = arith.mulf %220, %219 : vector<32x512xf32>
    %222 = vector.broadcast %4 : vector<32x1xf32> to vector<32x512xf32>
    %223 = arith.mulf %221, %222 : vector<32x512xf32>
    %cst_78 = arith.constant dense<0.000000e+00> : vector<512xf32>
    %224 = vector.multi_reduction <add>, %223, %cst_78 [0] : vector<32x512xf32> to vector<512xf32>
    %225 = vector.shape_cast %224 : vector<512xf32> to vector<1x512xf32>
    %226 = vector.broadcast %5 : vector<1x1xf32> to vector<1x512xf32>
    %227 = arith.addf %225, %226 : vector<1x512xf32>
    %228 = arith.index_cast %c6_i32 : i32 to index
    %c0_79 = arith.constant 0 : index
    %229 = vector.load %arg8[%228, %c0_79] : memref<8x512xf32, #tpu.memory_space<vmem>>, vector<1x512xf32>
    tpu.vector_store %arg8[%228, %c0_79], %227 {strides = array<i32>} : memref<8x512xf32, #tpu.memory_space<vmem>>, vector<1x512xf32>,
    %c7_i32 = arith.constant 7 : i32
    %230 = arith.index_cast %c7_i32 : i32 to index
    %c0_80 = arith.constant 0 : index
    %231 = vector.load %arg1[%230, %c0_80] : memref<8x512xf32, #tpu.memory_space<vmem>>, vector<1x512xf32>
    %232 = vector.broadcast %0 : vector<32x1xf32> to vector<32x512xf32>
    %233 = vector.broadcast %231 : vector<1x512xf32> to vector<32x512xf32>
    %234 = arith.mulf %232, %233 : vector<32x512xf32>
    %235 = vector.broadcast %1 : vector<32x1xf32> to vector<32x512xf32>
    %236 = arith.addf %234, %235 : vector<32x512xf32>
    %cst_81 = arith.constant 5.000000e-01 : f32
    %237 = vector.broadcast %cst_81 : f32 to vector<32x512xf32>
    %238 = arith.mulf %237, %236 : vector<32x512xf32>
    %239 = math.tanh %238 : vector<32x512xf32>
    %cst_82 = arith.constant 1.000000e+00 : f32
    %240 = vector.broadcast %cst_82 : f32 to vector<32x512xf32>
    %241 = arith.addf %239, %240 : vector<32x512xf32>
    %cst_83 = arith.constant 5.000000e-01 : f32
    %242 = vector.broadcast %cst_83 : f32 to vector<32x512xf32>
    %243 = arith.mulf %242, %241 : vector<32x512xf32>
    %cst_84 = arith.constant dense<0.000000e+00> : vector<32x512xf32>
    %244 = tpu.matmul %2, %243, %cst_84 {dimension_numbers = #tpu.dot_dimension_numbers<[1], [0], [0], [1], [0, 0, 1, 1], [], []>} : vector<32x32xf32>, vector<32x512xf32>, vector<32x512xf32> -> vector<32x512xf32>
    %245 = vector.broadcast %3 : vector<32x1xf32> to vector<32x512xf32>
    %246 = arith.addf %244, %245 : vector<32x512xf32>
    %cst_85 = arith.constant 5.000000e-01 : f32
    %247 = vector.broadcast %cst_85 : f32 to vector<32x512xf32>
    %248 = arith.mulf %247, %246 : vector<32x512xf32>
    %249 = math.tanh %248 : vector<32x512xf32>
    %cst_86 = arith.constant 1.000000e+00 : f32
    %250 = vector.broadcast %cst_86 : f32 to vector<32x512xf32>
    %251 = arith.addf %249, %250 : vector<32x512xf32>
    %cst_87 = arith.constant 5.000000e-01 : f32
    %252 = vector.broadcast %cst_87 : f32 to vector<32x512xf32>
    %253 = arith.mulf %252, %251 : vector<32x512xf32>
    %254 = vector.broadcast %4 : vector<32x1xf32> to vector<32x512xf32>
    %255 = arith.mulf %253, %254 : vector<32x512xf32>
    %cst_88 = arith.constant dense<0.000000e+00> : vector<512xf32>
    %256 = vector.multi_reduction <add>, %255, %cst_88 [0] : vector<32x512xf32> to vector<512xf32>
    %257 = vector.shape_cast %256 : vector<512xf32> to vector<1x512xf32>
    %258 = vector.broadcast %5 : vector<1x1xf32> to vector<1x512xf32>
    %259 = arith.addf %257, %258 : vector<1x512xf32>
    %260 = arith.index_cast %c7_i32 : i32 to index
    %c0_89 = arith.constant 0 : index
    %261 = vector.load %arg8[%260, %c0_89] : memref<8x512xf32, #tpu.memory_space<vmem>>, vector<1x512xf32>
    tpu.vector_store %arg8[%260, %c0_89], %259 {strides = array<i32>} : memref<8x512xf32, #tpu.memory_space<vmem>>, vector<1x512xf32>,
    %c8_i32 = arith.constant 8 : i32
    return
  }
  func.func @transform_0(%arg0: i32) -> (i32, i32) {
    %c0_i32 = arith.constant 0 : i32
    %c0_i32_0 = arith.constant 0 : i32
    return %arg0, %c0_i32 : i32, i32
  }
  func.func @transform_1(%arg0: i32) -> (i32, i32) {
    %c0_i32 = arith.constant 0 : i32
    %c0_i32_0 = arith.constant 0 : i32
    %c0_i32_1 = arith.constant 0 : i32
    return %c0_i32, %c0_i32_0 : i32, i32
  }
  func.func @transform_2(%arg0: i32) -> (i32, i32) {
    %c0_i32 = arith.constant 0 : i32
    %c0_i32_0 = arith.constant 0 : i32
    %c0_i32_1 = arith.constant 0 : i32
    return %c0_i32, %c0_i32_0 : i32, i32
  }
  func.func @transform_3(%arg0: i32) -> (i32, i32) {
    %c0_i32 = arith.constant 0 : i32
    %c0_i32_0 = arith.constant 0 : i32
    %c0_i32_1 = arith.constant 0 : i32
    return %c0_i32, %c0_i32_0 : i32, i32
  }
  func.func @transform_4(%arg0: i32) -> (i32, i32) {
    %c0_i32 = arith.constant 0 : i32
    %c0_i32_0 = arith.constant 0 : i32
    %c0_i32_1 = arith.constant 0 : i32
    return %c0_i32, %c0_i32_0 : i32, i32
  }
  func.func @transform_5(%arg0: i32) -> (i32, i32) {
    %c0_i32 = arith.constant 0 : i32
    %c0_i32_0 = arith.constant 0 : i32
    %c0_i32_1 = arith.constant 0 : i32
    return %c0_i32, %c0_i32_0 : i32, i32
  }
  func.func @transform_6(%arg0: i32) -> (i32, i32) {
    %c0_i32 = arith.constant 0 : i32
    %c0_i32_0 = arith.constant 0 : i32
    %c0_i32_1 = arith.constant 0 : i32
    return %c0_i32, %c0_i32_0 : i32, i32
  }
  func.func @transform_7(%arg0: i32) -> (i32, i32) {
    %c0_i32 = arith.constant 0 : i32
    %c0_i32_0 = arith.constant 0 : i32
    return %arg0, %c0_i32 : i32, i32
  }
}

</mosaic_0001>

<bundles_post_ra>
// kernel: tpu_custom_call.1
= control target key start
LH: loop header
LB: loop body
LE: loop exit
PB: predicated region body
PF: predicated region fallthrough
CT: control target
= control target key end

     0   :  { %s6649_s0 = inlined_call_operand.vmem [shape: f32[16,512], index: 0, kind: input, shape index: {}]   ;;  %s6650_s1 = inlined_call_operand.vmem [shape: f32[32,1], index: 1, kind: input, shape index: {}]   ;;  %s6651_s2 = inlined_call_operand.vmem [shape: f32[32,1], index: 2, kind: input, shape index: {}]   ;;  %s6652_s3 = inlined_call_operand.vmem [shape: f32[32,32], index: 3, kind: input, shape index: {}]   ;;  %s6653_s4 = inlined_call_operand.vmem [shape: f32[32,1], index: 4, kind: input, shape index: {}]   ;;  %s6654_s5 = inlined_call_operand.vmem [shape: f32[32,1], index: 5, kind: input, shape index: {}]   ;;  %s6655_s6 = inlined_call_operand.<no memory space> [shape: f32[1,1], index: 6, kind: input, shape index: {}]   ;;  %s6656_s7 = inlined_call_operand.hbm [shape: f32[16,512], index: 7, kind: output, shape index: {}]  }
   0x1   :  { %v12_v0 = vstv %s6655_s6 }
   0x2   :  { %13 = vst [vmem:[#allocation2] sm:$0x1] %v12_v0 }
   0x3   :  { %14 = vsyncpa [#allocation4], 0 }
   0x4   :  { %16 = vsyncpa [#allocation4 + $0x1], 0  ;;  %s4961_s26 = smov 0   ;;  %s4963_s27 = smov 0  }
   0x5   :  { %s4965_s28 = smov 0   ;;  %s4967_s29 = smov 0  }
   0x6 LB: > { %s4982_s6 = sadd.s32 4294967295, %s4912_s29   ;;  %s4070_s30 = sadd.s32 4294967294, %s4912_s29   ;;  %s4912_s29 = sphi %s4967_s29, %s6702_s29   ;;  %s4908_s28 = sphi %s4965_s28, %s6701_s28   ;;  %s4904_s27 = sphi %s4963_s27, %s6700_s27   ;;  %s4900_s26 = sphi %s4961_s26, %s6699_s26  }
   0x7   : > { %s4986_s8 = sadd.s32 1, %s4912_s29   ;;  %s181_s9 = sadd.s32 1, %s4908_s28 }
   0x8   : > { %s178_s10 = ssub.s32 %s4912_s29, %s4986_s8  ;;  %p191_p0 = scmp.ne.s32.totalorder %s4908_s28, %s4904_s27 }
   0x9   : > { %p179_p1 = scmp.eq.s32.totalorder %s178_s10, 0  ;;  %p192_p2 = scmp.eq.s32.totalorder %s4982_s6, 1 }
   0xa   : > { %p197_p3 = scmp.ne.s32.totalorder %s4904_s27, %s4900_s26  ;;  %p198_p4 = scmp.eq.s32.totalorder %s4070_s30, 1 }
   0xb   : > { %s4997_s11 = scalar_select %p179_p1, %s4908_s28, %s181_s9  }
   0xc   : > { %p4999_p5 = por %p192_p2, %p191_p0  ;;  %p5003_p6 = por %p198_p4, %p197_p3 }
   0xd   : > { %p4073_p7 = scmp.ge.s32.totalorder %s4912_s29, 1  ;;  %p242_p8 = scmp.lt.s32.totalorder %s4912_s29, 3 }
   0xf   : > { %p243_p9 = pnand %p4073_p7, %p242_p8 }
  0x11   : > { %246 = sbr.rel (%p243_p9) target bundleno = 742 (0x2e6), region = 48 }
  0x18   : > { %v283_v1 = vld [vmem:[%s6651_s2] sm:$0xff]  ;;  %v4914_v3 = vmov 0   ;;  %v284_v4 = vld [vmem:[%s6651_s2 + $0x8] sm:$0xff]  ;;  %v282_v6 = vld [vmem:[%s6650_s1 + $0x18] sm:$0xff]  ;;  %v4915_v19 = vmov 0.0   ;;  %p274_p10 = scmp.lt.s32.totalorder %s4982_s6, 1  ;;  %v6657_v20 = vlaneseq }
  0x19   : > { %v279_v2 = vld [vmem:[%s6650_s1] sm:$0xff]  ;;  %4333 = vset.pattern.permute.xlu1 %v4914_v3  ;;  %4332 = vset.pattern.permute.xlu0 %v4914_v3  ;;  %v280_v5 = vld [vmem:[%s6650_s1 + $0x8] sm:$0xff]  ;;  %v281_v7 = vld [vmem:[%s6650_s1 + $0x10] sm:$0xff]  ;;  %vm478_vm0 = vcmask 261120   ;;  %s4161_s25 = sshll.u32 %s4982_s6, 9 }
  0x1a   : > { %360 = vperm.xlu1 %4333, %v283_v1   ;;  %303 = vperm.xlu0 %4332, %v279_v2   ;;  %v286_v8 = vld [vmem:[%s6651_s2 + $0x18] sm:$0xff]  ;;  %v285_v9 = vld [vmem:[%s6651_s2 + $0x10] sm:$0xff]  ;;  %v292_v10 = vld [vmem:[%s6653_s4 + $0x8] sm:$0xff]  ;;  %s275_s16 = scalar_select %p274_p10, %s4982_s6, 1  ;;  %v5062_v21 = vshrl.u32 %v6657_v20, 7 }
  0x1b   : > { %v291_v11 = vld [vmem:[%s6653_s4] sm:$0xff]  ;;  %v294_v12 = vld [vmem:[%s6653_s4 + $0x18] sm:$0xff]  ;;  %v293_v13 = vld [vmem:[%s6653_s4 + $0x10] sm:$0xff]  ;;  %555 = vmatprep.mubr.f32.mxu0 %v4915_v19  ;;  %644 = vmatprep.mubr.f32.mxu1 %v4915_v19  ;;  %s6602_s14 = scalar_lea.hbm %s6656_s7, %s4161_s25 }
  0x1c   : > { %v296_v14 = vld [vmem:[%s6654_s5 + $0x8] sm:$0xff]  ;;  %v295_v15 = vld [vmem:[%s6654_s5] sm:$0xff]  ;;  %v298_v16 = vld [vmem:[%s6654_s5 + $0x18] sm:$0xff]  ;;  %s4160_s17 = sshll.u32 %s275_s16, 5  ;;  %v5070_v22 = vsub.s32 1, %v5062_v21  ;;  %v5073_v23 = vsub.s32 3, %v5062_v21 }
  0x1d   : > { %v297_v17 = vld [vmem:[%s6654_s5 + $0x10] sm:$0xff]  ;;  %v299_v18 = vld [vmem:[#allocation2] sm:$0x1]  ;;  %s5067_s20 = scalar_lea.vmem %s6649_s0, %s4160_s17  ;;  %v5076_v24 = vsub.s32 0, %v5062_v21  ;;  %v5080_v26 = vsub.s32 2, %v5062_v21  ;;  %s4917_s16 = smov [#allocation3]  }
  0x1e   : > { %365 = vperm.xlu1 %4333, %v284_v4   ;;  %308 = vperm.xlu0 %4332, %v280_v5   ;;  %v300_v25 = vld [vmem:[%s5067_s20] ss:$8 sm:$0xf]  ;;  %v4085_v27 = vld [vmem:[%s5067_s20 + $0x1] ss:$8 sm:$0xf] }
  0x1f   : > { %v4095_v28 = vld [vmem:[%s5067_s20 + $0x2] ss:$8 sm:$0xf]  ;;  %v5085_v29 = vrot.slane %v300_v25, %v5070_v22  ;;  %v5088_v30 = vrot.slane %v300_v25, %v5073_v23  ;;  %v5091_v31 = vrot.slane %v300_v25, %v5076_v24  ;;  %v4105_v32 = vld [vmem:[%s5067_s20 + $0x3] ss:$8 sm:$0xf]  ;;  %v5095_v33 = vrot.slane %v300_v25, %v5080_v26 }
  0x20   : > { %v5098_v34 = vrot.slane %v4085_v27, %v5070_v22  ;;  %v5101_v35 = vrot.slane %v4085_v27, %v5073_v23  ;;  %v5104_v36 = vrot.slane %v4085_v27, %v5076_v24  ;;  %v4115_v37 = vld [vmem:[%s5067_s20 + $0x4] ss:$8 sm:$0xf]  ;;  %v5108_v38 = vrot.slane %v4085_v27, %v5080_v26  ;;  %v5120_v42 = vld [vmem:[%s5067_s20 + $0x5] ss:$8 sm:$0xf] }
  0x21   : > { %v5111_v39 = vrot.slane %v4095_v28, %v5070_v22  ;;  %v5114_v40 = vrot.slane %v4095_v28, %v5073_v23  ;;  %v5117_v41 = vrot.slane %v4095_v28, %v5076_v24  ;;  %v5123_v43 = vrot.slane %v4095_v28, %v5080_v26  ;;  %s4854_s17 = sshll.u32 %s4917_s16, 4  ;;  %s4855_s17 = int_to_ptr.vmem [resolvable:$false] %s4854_s17 }
  0x22   : > { %318 = vperm.xlu1 %4333, %v282_v6   ;;  %313 = vperm.xlu0 %4332, %v281_v7   ;;  %v5126_v44 = vrot.slane %v4105_v32, %v5070_v22  ;;  %v5129_v45 = vrot.slane %v4105_v32, %v5073_v23  ;;  %v5132_v46 = vrot.slane %v4105_v32, %v5076_v24  ;;  %s4856_s18 = scalar_lea.vmem %s4855_s17, 1024 }
  0x23   : > { %v5135_v47 = vrot.slane %v4105_v32, %v5080_v26  ;;  %v5138_v48 = vrot.slane %v4115_v37, %v5070_v22  ;;  %v5141_v49 = vrot.slane %v4115_v37, %v5073_v23  ;;  %v5144_v50 = vrot.slane %v4115_v37, %v5076_v24 }
  0x24   : > { %v5151_v53 = vrot.slane %v4115_v37, %v5080_v26  ;;  %v5155_v54 = vrot.slane %v5120_v42, %v5070_v22  ;;  %v5159_v55 = vrot.slane %v5120_v42, %v5073_v23  ;;  %v5163_v56 = vrot.slane %v5120_v42, %v5076_v24 }
  0x26   : > { %375 = vperm.xlu1 %4333, %v286_v8   ;;  %370 = vperm.xlu0 %4332, %v285_v9  }
  0x2a   : > { %465 = vperm.xlu1 %4333, %v292_v10   ;;  %460 = vperm.xlu0 %4332, %v291_v11  }
  0x2e   : > { %475 = vperm.xlu1 %4333, %v294_v12   ;;  %470 = vperm.xlu0 %4332, %v293_v13  }
  0x32   : > { %740 = vperm.xlu1 %4333, %v296_v14   ;;  %735 = vperm.xlu0 %4332, %v295_v15  }
  0x36   : > { %750 = vperm.xlu1 %4333, %v298_v16   ;;  %745 = vperm.xlu0 %4332, %v297_v17  }
  0x3a   : > { %807 = vperm.xlu0 %4332, %v299_v18  }
  0x99   : > { %v5146_v51 = vpop.permute.xlu1 %360  ;;  %v5148_v52 = vpop.permute.xlu0 %303 }
  0x9a   : > { %v343_v57 = vmul.f32 %v5085_v29, %v5148_v52  ;;  %v345_v58 = vmul.f32 %v5088_v30, %v5148_v52  ;;  %v342_v59 = vmul.f32 %v5091_v31, %v5148_v52  ;;  %v344_v60 = vmul.f32 %v5095_v33, %v5148_v52 }
  0x9b   : > { %v877_v61 = vmul.f32 %v5098_v34, %v5148_v52  ;;  %v879_v62 = vmul.f32 %v5101_v35, %v5148_v52  ;;  %v876_v63 = vmul.f32 %v5104_v36, %v5148_v52  ;;  %v878_v0 = vmul.f32 %v5108_v38, %v5148_v52 }
  0x9c   : > { %v379_v1 = vadd.f32 %v5146_v51, %v343_v57  ;;  %v381_v2 = vadd.f32 %v5146_v51, %v345_v58  ;;  %v378_v3 = vadd.f32 %v5146_v51, %v342_v59  ;;  %v380_v4 = vadd.f32 %v5146_v51, %v344_v60 }
  0x9d   : > { %v5185_v5 = vpop.permute.xlu1 %365  ;;  %v5187_v6 = vpop.permute.xlu0 %308  ;;  %v893_v7 = vadd.f32 %v877_v61, %v5146_v51  ;;  %v5191_v8 = vadd.f32 %v879_v62, %v5146_v51  ;;  %v5194_v9 = vadd.f32 %v876_v63, %v5146_v51  ;;  %v5197_v10 = vadd.f32 %v878_v0, %v5146_v51 }
  0x9e   : > { %v347_v11 = vmul.f32 %v5085_v29, %v5187_v6  ;;  %v395_v12 = vmul.f32 0.5, %v379_v1  ;;  %v349_v13 = vmul.f32 %v5088_v30, %v5187_v6  ;;  %v397_v14 = vmul.f32 0.5, %v381_v2 }
  0x9f   : > { %v346_v15 = vmul.f32 %v5091_v31, %v5187_v6  ;;  %v394_v16 = vmul.f32 0.5, %v378_v3  ;;  %v348_v17 = vmul.f32 %v5095_v33, %v5187_v6  ;;  %v396_v18 = vmul.f32 0.5, %v380_v4 }
  0xa0   : > { %v383_v25 = vadd.f32 %v5185_v5, %v347_v11  ;;  %4334 = vtanh.f32 %v395_v12  ;;  %v385_v27 = vadd.f32 %v5185_v5, %v349_v13  ;;  %v881_v28 = vmul.f32 %v5098_v34, %v5187_v6 }
  0xa1   : > { %v5211_v32 = vpop.permute.xlu1 %318  ;;  %v5213_v37 = vpop.permute.xlu0 %313  ;;  %4336 = vtanh.f32 %v397_v14  ;;  %v382_v57 = vadd.f32 %v5185_v5, %v346_v15  ;;  %v384_v58 = vadd.f32 %v5185_v5, %v348_v17  ;;  %v5217_v59 = vmul.f32 0.5, %v893_v7 }
  0xa2   : > { %v399_v60 = vmul.f32 0.5, %v383_v25  ;;  %v401_v61 = vmul.f32 0.5, %v385_v27  ;;  %4338 = vtanh.f32 %v394_v16  ;;  %v351_v62 = vmul.f32 %v5085_v29, %v5213_v37 }
  0xa3   : > { %v398_v63 = vmul.f32 0.5, %v382_v57  ;;  %v400_v0 = vmul.f32 0.5, %v384_v58  ;;  %4340 = vtanh.f32 %v396_v18  ;;  %v355_v1 = vmul.f32 %v5085_v29, %v5211_v32 }
  0xa4   : > { %4342 = vtanh.f32 %v399_v60  ;;  %v353_v2 = vmul.f32 %v5088_v30, %v5213_v37  ;;  %v357_v3 = vmul.f32 %v5088_v30, %v5211_v32  ;;  %v350_v4 = vmul.f32 %v5091_v31, %v5213_v37 }
  0xa5   : > { %v5229_v7 = vpop.permute.xlu1 %375  ;;  %v5231_v11 = vpop.permute.xlu0 %370  ;;  %4344 = vtanh.f32 %v401_v61  ;;  %v354_v12 = vmul.f32 %v5091_v31, %v5211_v32  ;;  %v352_v29 = vmul.f32 %v5095_v33, %v5213_v37  ;;  %v356_v13 = vmul.f32 %v5095_v33, %v5211_v32 }
  0xa6   : > { %4346 = vtanh.f32 %v398_v63  ;;  %v387_v30 = vadd.f32 %v5231_v11, %v351_v62  ;;  %v391_v14 = vadd.f32 %v5229_v7, %v355_v1  ;;  %v389_v15 = vadd.f32 %v5231_v11, %v353_v2 }
  0xa7   : > { %4348 = vtanh.f32 %v400_v0  ;;  %v393_v16 = vadd.f32 %v5229_v7, %v357_v3  ;;  %v386_v17 = vadd.f32 %v5231_v11, %v350_v4  ;;  %v390_v31 = vadd.f32 %v5229_v7, %v354_v12 }
  0xa8   : > { %v403_v18 = vmul.f32 0.5, %v387_v30  ;;  %v407_v25 = vmul.f32 0.5, %v391_v14  ;;  %v405_v27 = vmul.f32 0.5, %v389_v15  ;;  %v388_v57 = vadd.f32 %v5231_v11, %v352_v29 }
  0xa9   : > { %v409_v33 = vmul.f32 0.5, %v393_v16  ;;  %v402_v58 = vmul.f32 0.5, %v386_v17  ;;  %v406_v60 = vmul.f32 0.5, %v390_v31  ;;  %v392_v61 = vadd.f32 %v5229_v7, %v356_v13 }
  0xaa   : > { %v4335_v62 = vpop.eup %4334  ;;  %4350 = vtanh.f32 %v403_v18  ;;  %v404_v63 = vmul.f32 0.5, %v388_v57  ;;  %v897_v0 = vadd.f32 %v881_v28, %v5185_v5  ;;  %v883_v1 = vmul.f32 %v5101_v35, %v5187_v6 }
  0xab   : > { %v4337_v2 = vpop.eup %4336  ;;  %v427_v3 = vadd.f32 1.0, %v4335_v62  ;;  %4352 = vtanh.f32 %v407_v25  ;;  %v408_v4 = vmul.f32 0.5, %v392_v61  ;;  %v911_v12 = vmul.f32 0.5, %v5191_v8 }
  0xac   : > { %v4339_v29 = vpop.eup %4338  ;;  %v429_v30 = vadd.f32 1.0, %v4337_v2  ;;  %4354 = vtanh.f32 %v405_v27  ;;  %v913_v14 = vmul.f32 0.5, %v897_v0  ;;  %v899_v13 = vadd.f32 %v883_v1, %v5185_v5 }
  0xad   : > { %v4341_v15 = vpop.eup %4340  ;;  %v443_v16 = vmul.f32 0.5, %v427_v3  ;;  %v426_v17 = vadd.f32 1.0, %v4339_v29  ;;  %4356 = vtanh.f32 %v409_v33  ;;  %v880_v28 = vmul.f32 %v5104_v36, %v5187_v6 }
  0xae   : > { %v4343_v31 = vpop.eup %4342  ;;  %v445_v18 = vmul.f32 0.5, %v429_v30  ;;  %v428_v57 = vadd.f32 1.0, %v4341_v15  ;;  %4358 = vtanh.f32 %v402_v58  ;;  %v915_v25 = vmul.f32 0.5, %v899_v13 }
  0xaf   : > { %v4345_v61 = vpop.eup %4344  ;;  %v431_v8 = vadd.f32 1.0, %v4343_v31  ;;  %v442_v62 = vmul.f32 0.5, %v426_v17  ;;  %4360 = vtanh.f32 %v406_v60  ;;  %v896_v27 = vadd.f32 %v880_v28, %v5185_v5 }
  0xb0   : > { %v4347_v0 = vpop.eup %4346  ;;  %v433_v1 = vadd.f32 1.0, %v4345_v61  ;;  %v444_v2 = vmul.f32 0.5, %v428_v57  ;;  %4362 = vtanh.f32 %v404_v63  ;;  %v908_v33 = vmul.f32 0.5, %v5194_v9 }
  0xb1   : > { %v4349_v3 = vpop.eup %4348  ;;  %v447_v29 = vmul.f32 0.5, %v431_v8  ;;  %v430_v20 = vadd.f32 1.0, %v4347_v0  ;;  %4364 = vtanh.f32 %v408_v4  ;;  %v912_v30 = vmul.f32 0.5, %v896_v27 }
  0xb2   : > { %v449_v15 = vmul.f32 0.5, %v433_v1  ;;  %v432_v58 = vadd.f32 1.0, %v4349_v3  ;;  %4366 = vtanh.f32 %v5217_v59  ;;  %v882_v60 = vmul.f32 %v5108_v38, %v5187_v6 }
  0xb3   : > { %v4162_v13 = vpack.c.bf16 %v447_v29, %v443_v16  ;;  %v446_v17 = vmul.f32 0.5, %v430_v20  ;;  %4368 = vtanh.f32 %v913_v14  ;;  %v910_v28 = vmul.f32 0.5, %v5197_v10 }
  0xb4   : > { %v4351_v63 = vpop.eup %4350  ;;  %v4170_v31 = vpack.c.bf16 %v449_v15, %v445_v18  ;;  %v448_v9 = vmul.f32 0.5, %v432_v58  ;;  %4370 = vtanh.f32 %v911_v12  ;;  %v898_v57 = vadd.f32 %v882_v60, %v5185_v5 }
  0xb5   : > { %v4353_v4 = vpop.eup %4352  ;;  %4163 = vmatprep.subr.bf16.mxu0 %v4162_v13  ;;  %v4164_v61 = vpack.c.bf16 %v446_v17, %v442_v62  ;;  %v435_v8 = vadd.f32 1.0, %v4351_v63  ;;  %4372 = vtanh.f32 %v915_v25  ;;  %v885_v59 = vmul.f32 %v5098_v34, %v5213_v37 }
  0xb6   : > { %v4355_v27 = vpop.eup %4354  ;;  %4171 = vmatprep.subr.bf16.mxu1 %v4170_v31  ;;  %v4172_v20 = vpack.c.bf16 %v448_v9, %v444_v2  ;;  %v439_v14 = vadd.f32 1.0, %v4353_v4  ;;  %4374 = vtanh.f32 %v908_v33  ;;  %v914_v10 = vmul.f32 0.5, %v898_v57 }
  0xb7   : > { %v4357_v16 = vpop.eup %4356  ;;  %4165 = vmatpush1.bf16.msra.mxu0 %v4164_v61  ;;  %v451_v18 = vmul.f32 0.5, %v435_v8  ;;  %v437_v12 = vadd.f32 1.0, %v4355_v27  ;;  %4376 = vtanh.f32 %v912_v30  ;;  %v889_v0 = vmul.f32 %v5098_v34, %v5211_v32 }
  0xb8   : > { %v4359_v62 = vpop.eup %4358  ;;  %4173 = vmatpush1.bf16.msra.mxu1 %v4172_v20  ;;  %v455_v25 = vmul.f32 0.5, %v439_v14  ;;  %v441_v1 = vadd.f32 1.0, %v4357_v16  ;;  %4378 = vtanh.f32 %v910_v28  ;;  %v901_v3 = vadd.f32 %v885_v59, %v5231_v11 }
  0xb9   : > { %v4361_v2 = vpop.eup %4360  ;;  %v453_v29 = vmul.f32 0.5, %v437_v12  ;;  %v434_v33 = vadd.f32 1.0, %v4359_v62  ;;  %4380 = vtanh.f32 %v914_v10  ;;  %v905_v15 = vadd.f32 %v889_v0, %v5229_v7 }
  0xba   : > { %v4363_v58 = vpop.eup %4362  ;;  %v4166_v60 = vpack.c.bf16 %v455_v25, %v451_v18  ;;  %v457_v30 = vmul.f32 0.5, %v441_v1  ;;  %v438_v13 = vadd.f32 1.0, %v4361_v2  ;;  %v5269_v34 = vrot.slane %v5120_v42, %v5080_v26 }
  0xbb   : > { %v4365_v17 = vpop.eup %4364  ;;  %v450_v63 = vmul.f32 0.5, %v434_v33  ;;  %v436_v31 = vadd.f32 1.0, %v4363_v58  ;;  %v917_v28 = vmul.f32 0.5, %v901_v3  ;;  %v921_v9 = vmul.f32 0.5, %v905_v15 }
  0xbc   : > { %v4367_v57 = vpop.eup %4366  ;;  %4167 = vmatprep.subr.bf16.mxu0 %v4166_v60  ;;  %v4174_v4 = vpack.c.bf16 %v457_v30, %v453_v29  ;;  %v454_v61 = vmul.f32 0.5, %v438_v13  ;;  %v440_v8 = vadd.f32 1.0, %v4365_v17  ;;  %v887_v59 = vmul.f32 %v5101_v35, %v5213_v37 }
  0xbd   : > { %v4369_v27 = vpop.eup %4368  ;;  %v452_v20 = vmul.f32 0.5, %v436_v31  ;;  %v941_v14 = vadd.f32 1.0, %v4367_v57  ;;  %4382 = vtanh.f32 %v917_v28  ;;  %v891_v42 = vmul.f32 %v5101_v35, %v5211_v32  ;;  %v5280_v35 = vld [vmem:[%s6652_s3] sm:$0xff] }
  0xbe   : > { %v4371_v10 = vpop.eup %4370  ;;  %4175 = vmatprep.subr.bf16.mxu1 %v4174_v4  ;;  %v4168_v16 = vpack.c.bf16 %v454_v61, %v450_v63  ;;  %v456_v18 = vmul.f32 0.5, %v440_v8  ;;  %v945_v12 = vadd.f32 1.0, %v4369_v27  ;;  %4384 = vtanh.f32 %v921_v9 }
  0xbf   : > { %v4373_v0 = vpop.eup %4372  ;;  %v957_v62 = vmul.f32 0.5, %v941_v14  ;;  %v943_v25 = vadd.f32 1.0, %v4371_v10  ;;  %v903_v1 = vadd.f32 %v887_v59, %v5231_v11  ;;  %v907_v3 = vadd.f32 %v891_v42, %v5229_v7 }
  0xc0   : > { %v4375_v2 = vpop.eup %4374  ;;  %4169 = vmatpush1.bf16.msra.mxu0 %v4168_v16  ;;  %v4176_v29 = vpack.c.bf16 %v456_v18, %v452_v20  ;;  %v961_v33 = vmul.f32 0.5, %v945_v12  ;;  %v947_v15 = vadd.f32 1.0, %v4373_v0  ;;  %v884_v58 = vmul.f32 %v5104_v36, %v5213_v37 }
  0xc1   : > { %v4377_v60 = vpop.eup %4376  ;;  %v959_v30 = vmul.f32 0.5, %v943_v25  ;;  %v940_v13 = vadd.f32 1.0, %v4375_v2  ;;  %v919_v17 = vmul.f32 0.5, %v903_v1  ;;  %v923_v63 = vmul.f32 0.5, %v907_v3 }
  0xc2   : > { %v4379_v31 = vpop.eup %4378  ;;  %4177 = vmatpush1.bf16.msra.mxu1 %v4176_v29  ;;  %v4178_v28 = vpack.c.bf16 %v961_v33, %v957_v62  ;;  %v963_v9 = vmul.f32 0.5, %v947_v15  ;;  %v944_v57 = vadd.f32 1.0, %v4377_v60  ;;  %v888_v4 = vmul.f32 %v5104_v36, %v5211_v32  ;;  %v5293_v36 = vld [vmem:[%s6652_s3 + $0x8] sm:$0xff] }
  0xc3   : > { %v4381_v61 = vpop.eup %4380  ;;  %4077 = vmatmul.mubr.msk.f32.vlgmr.msra.gmra.mrb[0].mxu0 %vm478_vm0, %v5280_v35  ;;  %v956_v8 = vmul.f32 0.5, %v940_v13  ;;  %v942_v59 = vadd.f32 1.0, %v4379_v31  ;;  %4386 = vtanh.f32 %v919_v17  ;;  %v900_v27 = vadd.f32 %v884_v58, %v5231_v11  ;;  %v5316_v13 = vld [vmem:[%s6652_s3 + $0x10] sm:$0xff] }
  0xc4   : > { %4179 = vmatprep.subr.bf16.mxu0 %v4178_v28  ;;  %v4186_v20 = vpack.c.bf16 %v963_v9, %v959_v30  ;;  %v960_v14 = vmul.f32 0.5, %v944_v57  ;;  %v946_v42 = vadd.f32 1.0, %v4381_v61  ;;  %4388 = vtanh.f32 %v923_v63  ;;  %561 = vmatprep.mubr.f32.mxu0 %v4915_v19 }
  0xc5   : > { %4081 = vmatmul.mubr.msk.f32.vlgmr.msra.gmra.mrb[0].mxu1 %vm478_vm0, %v5280_v35  ;;  %v958_v10 = vmul.f32 0.5, %v942_v59  ;;  %v904_v16 = vadd.f32 %v888_v4, %v5229_v7  ;;  %v916_v18 = vmul.f32 0.5, %v900_v27  ;;  %v886_v12 = vmul.f32 %v5108_v38, %v5213_v37 }
  0xc6   : > { %4187 = vmatprep.subr.bf16.mxu1 %v4186_v20  ;;  %v4180_v0 = vpack.c.bf16 %v960_v14, %v956_v8  ;;  %v962_v62 = vmul.f32 0.5, %v946_v42  ;;  %650 = vmatprep.mubr.f32.mxu1 %v4915_v19  ;;  %v890_v25 = vmul.f32 %v5108_v38, %v5211_v32  ;;  %v1326_v1 = vmul.f32 %v5111_v39, %v5148_v52  ;;  %v5333_v20 = vld [vmem:[%s6652_s3 + $0x18] sm:$0xff] }
  0xc7   : > { %v4383_v3 = vpop.eup %4382  ;;  %4078 = vmatmul.mubr.msk.f32.gmra.mrb[2].mxu0 %vm478_vm0, %v5293_v36  ;;  %v920_v2 = vmul.f32 0.5, %v904_v16  ;;  %4390 = vtanh.f32 %v916_v18  ;;  %v902_v29 = vadd.f32 %v886_v12, %v5231_v11  ;;  %v1330_v33 = vmul.f32 %v5111_v39, %v5187_v6 }
  0xc8   : > { %v4385_v15 = vpop.eup %4384  ;;  %4181 = vmatpush1.bf16.msra.mxu0 %v4180_v0  ;;  %v4188_v58 = vpack.c.bf16 %v962_v62, %v958_v10  ;;  %v949_v60 = vadd.f32 1.0, %v4383_v3  ;;  %v906_v38 = vadd.f32 %v890_v25, %v5229_v7  ;;  %v1342_v30 = vadd.f32 %v1326_v1, %v5146_v51  ;;  %567 = vmatprep.mubr.f32.mxu0 %v4915_v19 }
  0xc9   : > { %v953_v17 = vadd.f32 1.0, %v4385_v15  ;;  %4082 = vmatmul.mubr.msk.f32.gmra.mrb[2].mxu1 %vm478_vm0, %v5293_v36  ;;  %4392 = vtanh.f32 %v920_v2  ;;  %v918_v63 = vmul.f32 0.5, %v902_v29  ;;  %v1346_v31 = vadd.f32 %v1330_v33, %v5185_v5 }
  0xca   : > { %4189 = vmatpush1.bf16.msra.mxu1 %v4188_v58  ;;  %v965_v28 = vmul.f32 0.5, %v949_v60  ;;  %v922_v9 = vmul.f32 0.5, %v906_v38  ;;  %v1358_v57 = vmul.f32 0.5, %v1342_v30  ;;  %v1328_v4 = vmul.f32 %v5114_v40, %v5148_v52  ;;  %656 = vmatprep.mubr.f32.mxu1 %v4915_v19 }
  0xcb   : > { %v969_v61 = vmul.f32 0.5, %v953_v17  ;;  %4394 = vtanh.f32 %v918_v63  ;;  %v1362_v8 = vmul.f32 0.5, %v1346_v31  ;;  %v1332_v59 = vmul.f32 %v5114_v40, %v5187_v6  ;;  %4079 = vmatmul.mubr.msk.f32.gmra.mrb[4].mxu0 %vm478_vm0, %v5316_v13 }
  0xcc   : > { %4396 = vtanh.f32 %v922_v9  ;;  %v1344_v27 = vadd.f32 %v1328_v4, %v5146_v51  ;;  %573 = vmatprep.mubr.f32.mxu0 %v4915_v19  ;;  %v1325_v14 = vmul.f32 %v5117_v41, %v5148_v52  ;;  %v1329_v42 = vmul.f32 %v5117_v41, %v5187_v6 }
  0xcd   : > { %v4387_v10 = vpop.eup %4386  ;;  %v4182_v16 = vpack.c.bf16 %v969_v61, %v965_v28  ;;  %4398 = vtanh.f32 %v1358_v57  ;;  %v1348_v18 = vadd.f32 %v1332_v59, %v5185_v5  ;;  %4083 = vmatmul.mubr.msk.f32.gmra.mrb[4].mxu1 %vm478_vm0, %v5316_v13  ;;  %v1327_v12 = vmul.f32 %v5123_v43, %v5148_v52 }
  0xce   : > { %v4389_v0 = vpop.eup %4388  ;;  %v951_v62 = vadd.f32 1.0, %v4387_v10  ;;  %4400 = vtanh.f32 %v1362_v8  ;;  %v1360_v25 = vmul.f32 0.5, %v1344_v27  ;;  %662 = vmatprep.mubr.f32.mxu1 %v4915_v19  ;;  %v1341_v1 = vadd.f32 %v1325_v14, %v5146_v51 }
  0xcf   : > { %4183 = vmatprep.subr.bf16.mxu0 %v4182_v16  ;;  %v955_v3 = vadd.f32 1.0, %v4389_v0  ;;  %v1364_v2 = vmul.f32 0.5, %v1348_v18  ;;  %4080 = vmatmul.mubr.msk.f32.gmra.mrb[6].mxu0 %vm478_vm0, %v5333_v20  ;;  %v1345_v29 = vadd.f32 %v1329_v42, %v5185_v5  ;;  %v1331_v33 = vmul.f32 %v5123_v43, %v5187_v6 }
  0xd0   : > { %v967_v15 = vmul.f32 0.5, %v951_v62  ;;  %4402 = vtanh.f32 %v1360_v25  ;;  %1036 = vmatprep.mubr.f32.mxu0 %v4915_v19  ;;  %v1357_v58 = vmul.f32 0.5, %v1341_v1  ;;  %v1343_v60 = vadd.f32 %v1327_v12, %v5146_v51 }
  0xd1   : > { %v4391_v38 = vpop.eup %4390  ;;  %v971_v30 = vmul.f32 0.5, %v955_v3  ;;  %4404 = vtanh.f32 %v1364_v2  ;;  %4084 = vmatmul.mubr.msk.f32.gmra.mrb[6].mxu1 %vm478_vm0, %v5333_v20  ;;  %v1361_v17 = vmul.f32 0.5, %v1345_v29  ;;  %v1347_v63 = vadd.f32 %v1331_v33, %v5185_v5 }
  0xd2   : > { %v948_v31 = vadd.f32 1.0, %v4391_v38  ;;  %1125 = vmatprep.mubr.f32.mxu1 %v4915_v19  ;;  %4406 = vtanh.f32 %v1357_v58  ;;  %v1359_v28 = vmul.f32 0.5, %v1343_v60  ;;  %v1334_v9 = vmul.f32 %v5111_v39, %v5213_v37 }
  0xd3   : > { %v4393_v57 = vpop.eup %4392  ;;  %v4190_v4 = vpack.c.bf16 %v971_v30, %v967_v15  ;;  %4408 = vtanh.f32 %v1361_v17  ;;  %v1363_v61 = vmul.f32 0.5, %v1347_v63  ;;  %v1338_v8 = vmul.f32 %v5111_v39, %v5211_v32 }
  0xd4   : > { %v952_v59 = vadd.f32 1.0, %v4393_v57  ;;  %v964_v27 = vmul.f32 0.5, %v948_v31  ;;  %4410 = vtanh.f32 %v1359_v28  ;;  %v1350_v14 = vadd.f32 %v1334_v9, %v5231_v11 }
  0xd5   : > { %v4395_v42 = vpop.eup %4394  ;;  %4191 = vmatprep.subr.bf16.mxu1 %v4190_v4  ;;  %4412 = vtanh.f32 %v1363_v61  ;;  %v1354_v10 = vadd.f32 %v1338_v8, %v5229_v7  ;;  %v1336_v16 = vmul.f32 %v5114_v40, %v5213_v37  ;;  %v1340_v18 = vmul.f32 %v5114_v40, %v5211_v32 }
  0xd6   : > { %v4397_v12 = vpop.eup %4396  ;;  %v968_v0 = vmul.f32 0.5, %v952_v59  ;;  %v950_v62 = vadd.f32 1.0, %v4395_v42  ;;  %v1366_v39 = vmul.f32 0.5, %v1350_v14  ;;  %v1333_v25 = vmul.f32 %v5117_v41, %v5213_v37 }
  0xd7   : > { %v4399_v1 = vpop.eup %4398  ;;  %v954_v3 = vadd.f32 1.0, %v4397_v12  ;;  %v1370_v2 = vmul.f32 0.5, %v1354_v10  ;;  %v1352_v29 = vadd.f32 %v1336_v16, %v5231_v11  ;;  %v1356_v33 = vadd.f32 %v1340_v18, %v5229_v7 }
  0xd8   : > { %v4401_v15 = vpop.eup %4400  ;;  %v4184_v58 = vpack.c.bf16 %v968_v0, %v964_v27  ;;  %v966_v60 = vmul.f32 0.5, %v950_v62  ;;  %v1390_v38 = vadd.f32 1.0, %v4399_v1  ;;  %4414 = vtanh.f32 %v1366_v39 }
  0xd9   : > { %v970_v40 = vmul.f32 0.5, %v954_v3  ;;  %v1394_v30 = vadd.f32 1.0, %v4401_v15  ;;  %4416 = vtanh.f32 %v1370_v2  ;;  %v1368_v17 = vmul.f32 0.5, %v1352_v29 }
  0xda   : > { %v4403_v63 = vpop.eup %4402  ;;  %4185 = vmatpush1.bf16.msra.mxu0 %v4184_v58  ;;  %v1406_v31 = vmul.f32 0.5, %v1390_v38  ;;  %v1372_v28 = vmul.f32 0.5, %v1356_v33  ;;  %v1337_v9 = vmul.f32 %v5117_v41, %v5211_v32  ;;  %v1349_v57 = vadd.f32 %v1333_v25, %v5231_v11 }
  0xdb   : > { %v4405_v4 = vpop.eup %4404  ;;  %v4192_v61 = vpack.c.bf16 %v970_v40, %v966_v60  ;;  %v1410_v8 = vmul.f32 0.5, %v1394_v30  ;;  %v1392_v59 = vadd.f32 1.0, %v4403_v63  ;;  %4418 = vtanh.f32 %v1368_v17 }
  0xdc   : > { %v4407_v27 = vpop.eup %4406  ;;  %v1396_v14 = vadd.f32 1.0, %v4405_v4  ;;  %4420 = vtanh.f32 %v1372_v28  ;;  %v1353_v42 = vadd.f32 %v1337_v9, %v5229_v7  ;;  %v1365_v10 = vmul.f32 0.5, %v1349_v57 }
  0xdd   : > { %v4409_v16 = vpop.eup %4408  ;;  %4193 = vmatpush1.bf16.msra.mxu1 %v4192_v61  ;;  %v4194_v18 = vpack.c.bf16 %v1410_v8, %v1406_v31  ;;  %v1408_v12 = vmul.f32 0.5, %v1392_v59  ;;  %4086 = vmatmul.mubr.msk.f32.vlgmr.msra.gmra.mrb[8].mxu0 %vm478_vm0, %v5280_v35  ;;  %v1389_v41 = vadd.f32 1.0, %v4407_v27  ;;  %v1335_v0 = vmul.f32 %v5123_v43, %v5213_v37 }
  0xde   : > { %v4411_v62 = vpop.eup %4410  ;;  %v1412_v39 = vmul.f32 0.5, %v1396_v14  ;;  %v1393_v25 = vadd.f32 1.0, %v4409_v16  ;;  %1042 = vmatprep.mubr.f32.mxu0 %v4915_v19  ;;  %v1369_v1 = vmul.f32 0.5, %v1353_v42  ;;  %4422 = vtanh.f32 %v1365_v10 }
  0xdf   : > { %v4413_v3 = vpop.eup %4412  ;;  %4195 = vmatprep.subr.bf16.mxu0 %v4194_v18  ;;  %v1405_v2 = vmul.f32 0.5, %v1389_v41  ;;  %v1391_v29 = vadd.f32 1.0, %v4411_v62  ;;  %v1339_v33 = vmul.f32 %v5123_v43, %v5211_v32  ;;  %v1351_v15 = vadd.f32 %v1335_v0, %v5231_v11 }
  0xe0   : > { %v4202_v58 = vpack.c.bf16 %v1412_v39, %v1408_v12  ;;  %4090 = vmatmul.mubr.msk.f32.vlgmr.msra.gmra.mrb[8].mxu1 %vm478_vm0, %v5280_v35  ;;  %v1409_v60 = vmul.f32 0.5, %v1393_v25  ;;  %v1395_v38 = vadd.f32 1.0, %v4413_v3  ;;  %4424 = vtanh.f32 %v1369_v1 }
  0xe1   : > { %v1407_v40 = vmul.f32 0.5, %v1391_v29  ;;  %1131 = vmatprep.mubr.f32.mxu1 %v4915_v19  ;;  %4087 = vmatmul.mubr.msk.f32.gmra.mrb[10].mxu0 %vm478_vm0, %v5293_v36  ;;  %v1355_v30 = vadd.f32 %v1339_v33, %v5229_v7  ;;  %v1367_v17 = vmul.f32 0.5, %v1351_v15  ;;  %v1775_v43 = vmul.f32 %v5126_v44, %v5148_v52 }
  0xe2   : > { %v4415_v63 = vpop.eup %4414  ;;  %4203 = vmatprep.subr.bf16.mxu1 %v4202_v58  ;;  %v4196_v31 = vpack.c.bf16 %v1409_v60, %v1405_v2  ;;  %v1411_v28 = vmul.f32 0.5, %v1395_v38  ;;  %v1779_v9 = vmul.f32 %v5126_v44, %v5187_v6  ;;  %v1777_v57 = vmul.f32 %v5129_v45, %v5148_v52  ;;  %1048 = vmatprep.mubr.f32.mxu0 %v4915_v19 }
  0xe3   : > { %v4417_v4 = vpop.eup %4416  ;;  %v1398_v61 = vadd.f32 1.0, %v4415_v63  ;;  %v1371_v8 = vmul.f32 0.5, %v1355_v30  ;;  %4426 = vtanh.f32 %v1367_v17  ;;  %v1791_v59 = vadd.f32 %v1775_v43, %v5146_v51 }
  0xe4   : > { %4197 = vmatpush1.bf16.msra.mxu0 %v4196_v31  ;;  %v4204_v27 = vpack.c.bf16 %v1411_v28, %v1407_v40  ;;  %v1402_v14 = vadd.f32 1.0, %v4417_v4  ;;  %4091 = vmatmul.mubr.msk.f32.gmra.mrb[10].mxu1 %vm478_vm0, %v5293_v36  ;;  %v1795_v42 = vadd.f32 %v1779_v9, %v5185_v5  ;;  %v1781_v10 = vmul.f32 %v5129_v45, %v5187_v6 }
  0xe5   : > { %v4419_v16 = vpop.eup %4418  ;;  %v1414_v18 = vmul.f32 0.5, %v1398_v61  ;;  %4428 = vtanh.f32 %v1371_v8  ;;  %v1807_v12 = vmul.f32 0.5, %v1791_v59  ;;  %v1793_v41 = vadd.f32 %v1777_v57, %v5146_v51  ;;  %1137 = vmatprep.mubr.f32.mxu1 %v4915_v19  ;;  %4088 = vmatmul.mubr.msk.f32.gmra.mrb[12].mxu0 %vm478_vm0, %v5316_v13 }
  0xe6   : > { %v4421_v0 = vpop.eup %4420  ;;  %4205 = vmatpush1.bf16.msra.mxu1 %v4204_v27  ;;  %v1418_v62 = vmul.f32 0.5, %v1402_v14  ;;  %v1400_v39 = vadd.f32 1.0, %v4419_v16  ;;  %v1811_v25 = vmul.f32 0.5, %v1795_v42  ;;  %v1797_v1 = vadd.f32 %v1781_v10, %v5185_v5  ;;  %1054 = vmatprep.mubr.f32.mxu0 %v4915_v19 }
  0xe7   : > { %v1404_v3 = vadd.f32 1.0, %v4421_v0  ;;  %4430 = vtanh.f32 %v1807_v12  ;;  %v1809_v2 = vmul.f32 0.5, %v1793_v41  ;;  %v1774_v29 = vmul.f32 %v5132_v46, %v5148_v52 }
  0xe8   : > { %v4423_v33 = vpop.eup %4422  ;;  %v4198_v15 = vpack.c.bf16 %v1418_v62, %v1414_v18  ;;  %v1416_v58 = vmul.f32 0.5, %v1400_v39  ;;  %4432 = vtanh.f32 %v1811_v25  ;;  %v1813_v60 = vmul.f32 0.5, %v1797_v1  ;;  %4092 = vmatmul.mubr.msk.f32.gmra.mrb[12].mxu1 %vm478_vm0, %v5316_v13 }
  0xe9   : > { %v1420_v38 = vmul.f32 0.5, %v1404_v3  ;;  %v1397_v40 = vadd.f32 1.0, %v4423_v33  ;;  %4434 = vtanh.f32 %v1809_v2  ;;  %1143 = vmatprep.mubr.f32.mxu1 %v4915_v19  ;;  %4089 = vmatmul.mubr.msk.f32.gmra.mrb[14].mxu0 %vm478_vm0, %v5333_v20  ;;  %v1778_v30 = vmul.f32 %v5132_v46, %v5187_v6 }
  0xea   : > { %v4425_v17 = vpop.eup %4424  ;;  %4199 = vmatprep.subr.bf16.mxu0 %v4198_v15  ;;  %4436 = vtanh.f32 %v1813_v60  ;;  %1485 = vmatprep.mubr.f32.mxu0 %v4915_v19  ;;  %v1790_v43 = vadd.f32 %v1774_v29, %v5146_v51  ;;  %v1776_v63 = vmul.f32 %v5135_v47, %v5148_v52  ;;  %v1780_v31 = vmul.f32 %v5135_v47, %v5187_v6 }
  0xeb   : > { %v4206_v28 = vpack.c.bf16 %v1420_v38, %v1416_v58  ;;  %v1401_v9 = vadd.f32 1.0, %v4425_v17  ;;  %v1413_v57 = vmul.f32 0.5, %v1397_v40  ;;  %v1794_v4 = vadd.f32 %v1778_v30, %v5185_v5 }
  0xec   : > { %4093 = vmatmul.mubr.msk.f32.gmra.mrb[14].mxu1 %vm478_vm0, %v5333_v20  ;;  %v1806_v61 = vmul.f32 0.5, %v1790_v43  ;;  %v1792_v8 = vadd.f32 %v1776_v63, %v5146_v51  ;;  %v1796_v59 = vadd.f32 %v1780_v31, %v5185_v5  ;;  %v1783_v27 = vmul.f32 %v5126_v44, %v5213_v37 }
  0xed   : > { %v4427_v14 = vpop.eup %4426  ;;  %4207 = vmatprep.subr.bf16.mxu1 %v4206_v28  ;;  %v1417_v42 = vmul.f32 0.5, %v1401_v9  ;;  %1574 = vmatprep.mubr.f32.mxu1 %v4915_v19  ;;  %v1810_v10 = vmul.f32 0.5, %v1794_v4  ;;  %v1787_v16 = vmul.f32 %v5126_v44, %v5211_v32  ;;  %v1785_v18 = vmul.f32 %v5129_v45, %v5213_v37 }
  0xee   : > { %v1399_v12 = vadd.f32 1.0, %v4427_v14  ;;  %4438 = vtanh.f32 %v1806_v61  ;;  %v1808_v41 = vmul.f32 0.5, %v1792_v8  ;;  %v1812_v0 = vmul.f32 0.5, %v1796_v59 }
  0xef   : > { %v4429_v62 = vpop.eup %4428  ;;  %v4200_v39 = vpack.c.bf16 %v1417_v42, %v1413_v57  ;;  %4440 = vtanh.f32 %v1810_v10  ;;  %v1799_v25 = vadd.f32 %v1783_v27, %v5231_v11  ;;  %v1803_v1 = vadd.f32 %v1787_v16, %v5229_v7 }
  0xf0   : > { %v1403_v3 = vadd.f32 1.0, %v4429_v62  ;;  %v1415_v2 = vmul.f32 0.5, %v1399_v12  ;;  %4442 = vtanh.f32 %v1808_v41  ;;  %v1789_v44 = vmul.f32 %v5129_v45, %v5211_v32 }
  0xf1   : > { %v4431_v29 = vpop.eup %4430  ;;  %4201 = vmatpush1.bf16.msra.mxu0 %v4200_v39  ;;  %4444 = vtanh.f32 %v1812_v0  ;;  %v1815_v33 = vmul.f32 0.5, %v1799_v25  ;;  %v1819_v15 = vmul.f32 0.5, %v1803_v1  ;;  %v1801_v58 = vadd.f32 %v1785_v18, %v5231_v11 }
  0xf2   : > { %v4433_v60 = vpop.eup %4432  ;;  %v1419_v38 = vmul.f32 0.5, %v1403_v3  ;;  %v1839_v40 = vadd.f32 1.0, %v4431_v29  ;;  %v1805_v30 = vadd.f32 %v1789_v44, %v5229_v7  ;;  %v1782_v17 = vmul.f32 %v5132_v46, %v5213_v37 }
  0xf3   : > { %v4435_v43 = vpop.eup %4434  ;;  %v1843_v63 = vadd.f32 1.0, %v4433_v60  ;;  %4446 = vtanh.f32 %v1815_v33  ;;  %v1817_v31 = vmul.f32 0.5, %v1801_v58  ;;  %v1786_v45 = vmul.f32 %v5132_v46, %v5211_v32 }
  0xf4   : > { %v4437_v28 = vpop.eup %4436  ;;  %v4208_v9 = vpack.c.bf16 %v1419_v38, %v1415_v2  ;;  %v1855_v57 = vmul.f32 0.5, %v1839_v40  ;;  %v1841_v4 = vadd.f32 1.0, %v4435_v43  ;;  %4096 = vmatmul.mubr.msk.f32.vlgmr.msra.gmra.mrb[16].mxu0 %vm478_vm0, %v5280_v35  ;;  %4448 = vtanh.f32 %v1819_v15 }
  0xf5   : > { %v1859_v61 = vmul.f32 0.5, %v1843_v63  ;;  %v1845_v8 = vadd.f32 1.0, %v4437_v28  ;;  %v1821_v59 = vmul.f32 0.5, %v1805_v30  ;;  %4450 = vtanh.f32 %v1817_v31  ;;  %1491 = vmatprep.mubr.f32.mxu0 %v4915_v19 }
  0xf6   : > { %4209 = vmatpush1.bf16.msra.mxu1 %v4208_v9  ;;  %v1857_v27 = vmul.f32 0.5, %v1841_v4  ;;  %v1798_v14 = vadd.f32 %v1782_v17, %v5231_v11  ;;  %v1802_v46 = vadd.f32 %v1786_v45, %v5229_v7  ;;  %v1784_v42 = vmul.f32 %v5135_v47, %v5213_v37 }
  0xf7   : > { %v4210_v10 = vpack.c.bf16 %v1859_v61, %v1855_v57  ;;  %v1861_v16 = vmul.f32 0.5, %v1845_v8  ;;  %4452 = vtanh.f32 %v1821_v59  ;;  %v1788_v18 = vmul.f32 %v5135_v47, %v5211_v32 }
  0xf8   : > { %v4439_v12 = vpop.eup %4438  ;;  %4097 = vmatmul.mubr.msk.f32.gmra.mrb[18].mxu0 %vm478_vm0, %v5293_v36  ;;  %v1814_v41 = vmul.f32 0.5, %v1798_v14  ;;  %v1818_v0 = vmul.f32 0.5, %v1802_v46  ;;  %v1800_v62 = vadd.f32 %v1784_v42, %v5231_v11  ;;  %v2224_v39 = vmul.f32 %v5138_v48, %v5148_v52 }
  0xf9   : > { %v4441_v25 = vpop.eup %4440  ;;  %4211 = vmatprep.subr.bf16.mxu0 %v4210_v10  ;;  %v4218_v1 = vpack.c.bf16 %v1861_v16, %v1857_v27  ;;  %4100 = vmatmul.mubr.msk.f32.vlgmr.msra.gmra.mrb[16].mxu1 %vm478_vm0, %v5280_v35  ;;  %v1838_v3 = vadd.f32 1.0, %v4439_v12  ;;  %v1804_v47 = vadd.f32 %v1788_v18, %v5229_v7  ;;  %v2228_v2 = vmul.f32 %v5138_v48, %v5187_v6 }
  0xfa   : > { %v4443_v44 = vpop.eup %4442  ;;  %v1842_v29 = vadd.f32 1.0, %v4441_v25  ;;  %1580 = vmatprep.mubr.f32.mxu1 %v4915_v19  ;;  %4454 = vtanh.f32 %v1814_v41  ;;  %v1816_v33 = vmul.f32 0.5, %v1800_v62  ;;  %v2240_v15 = vadd.f32 %v2224_v39, %v5146_v51  ;;  %1497 = vmatprep.mubr.f32.mxu0 %v4915_v19 }
  0xfb   : > { %v4445_v58 = vpop.eup %4444  ;;  %4219 = vmatprep.subr.bf16.mxu1 %v4218_v1  ;;  %v1854_v60 = vmul.f32 0.5, %v1838_v3  ;;  %v1840_v38 = vadd.f32 1.0, %v4443_v44  ;;  %4456 = vtanh.f32 %v1818_v0  ;;  %v1820_v40 = vmul.f32 0.5, %v1804_v47 }
  0xfc   : > { %v1858_v30 = vmul.f32 0.5, %v1842_v29  ;;  %v1844_v17 = vadd.f32 1.0, %v4445_v58  ;;  %4458 = vtanh.f32 %v1816_v33  ;;  %v2244_v43 = vadd.f32 %v2228_v2, %v5185_v5  ;;  %4098 = vmatmul.mubr.msk.f32.gmra.mrb[20].mxu0 %vm478_vm0, %v5316_v13 }
  0xfd   : > { %v4447_v63 = vpop.eup %4446  ;;  %v1856_v31 = vmul.f32 0.5, %v1840_v38  ;;  %4101 = vmatmul.mubr.msk.f32.gmra.mrb[18].mxu1 %vm478_vm0, %v5293_v36  ;;  %4460 = vtanh.f32 %v1820_v40  ;;  %v2256_v45 = vmul.f32 0.5, %v2240_v15  ;;  %v2226_v28 = vmul.f32 %v5141_v49, %v5148_v52  ;;  %1503 = vmatprep.mubr.f32.mxu0 %v4915_v19 }
  0xfe   : > { %v4449_v9 = vpop.eup %4448  ;;  %v4212_v57 = vpack.c.bf16 %v1858_v30, %v1854_v60  ;;  %v1860_v4 = vmul.f32 0.5, %v1844_v17  ;;  %v1847_v61 = vadd.f32 1.0, %v4447_v63  ;;  %v2260_v8 = vmul.f32 0.5, %v2244_v43  ;;  %1586 = vmatprep.mubr.f32.mxu1 %v4915_v19 }
  0xff   : > { %v4451_v59 = vpop.eup %4450  ;;  %v1851_v27 = vadd.f32 1.0, %v4449_v9  ;;  %4462 = vtanh.f32 %v2256_v45  ;;  %v2230_v14 = vmul.f32 %v5141_v49, %v5187_v6  ;;  %v2242_v46 = vadd.f32 %v2226_v28, %v5146_v51 }
 0x100   : > { %4213 = vmatpush1.bf16.msra.mxu0 %v4212_v57  ;;  %v4220_v42 = vpack.c.bf16 %v1860_v4, %v1856_v31  ;;  %v1863_v10 = vmul.f32 0.5, %v1847_v61  ;;  %v1849_v16 = vadd.f32 1.0, %v4451_v59  ;;  %4464 = vtanh.f32 %v2260_v8 }
 0x101   : > { %v4453_v18 = vpop.eup %4452  ;;  %v1867_v12 = vmul.f32 0.5, %v1851_v27  ;;  %v2246_v41 = vadd.f32 %v2230_v14, %v5185_v5  ;;  %v2258_v0 = vmul.f32 0.5, %v2242_v46  ;;  %4102 = vmatmul.mubr.msk.f32.gmra.mrb[20].mxu1 %vm478_vm0, %v5316_v13  ;;  %4099 = vmatmul.mubr.msk.f32.gmra.mrb[22].mxu0 %vm478_vm0, %v5333_v20  ;;  %v2223_v62 = vmul.f32 %v5144_v50, %v5148_v52 }
 0x102   : > { %4221 = vmatpush1.bf16.msra.mxu1 %v4220_v42  ;;  %v1853_v39 = vadd.f32 1.0, %v4453_v18  ;;  %v1865_v25 = vmul.f32 0.5, %v1849_v16  ;;  %1592 = vmatprep.mubr.f32.mxu1 %v4915_v19  ;;  %v2227_v1 = vmul.f32 %v5144_v50, %v5187_v6  ;;  %v2225_v3 = vmul.f32 %v5151_v53, %v5148_v52 }
 0x103   : > { %v4214_v47 = vpack.c.bf16 %v1867_v12, %v1863_v10  ;;  %v2262_v2 = vmul.f32 0.5, %v2246_v41  ;;  %4466 = vtanh.f32 %v2258_v0  ;;  %1934 = vmatprep.mubr.f32.mxu0 %v4915_v19  ;;  %v2239_v44 = vadd.f32 %v2223_v62, %v5146_v51 }
 0x104   : > { %v4455_v29 = vpop.eup %4454  ;;  %v1869_v33 = vmul.f32 0.5, %v1853_v39  ;;  %v2243_v15 = vadd.f32 %v2227_v1, %v5185_v5  ;;  %v2229_v58 = vmul.f32 %v5151_v53, %v5187_v6  ;;  %v2241_v60 = vadd.f32 %v2225_v3, %v5146_v51 }
 0x105   : > { %v4457_v38 = vpop.eup %4456  ;;  %4215 = vmatprep.subr.bf16.mxu0 %v4214_v47  ;;  %v1846_v40 = vadd.f32 1.0, %v4455_v29  ;;  %4468 = vtanh.f32 %v2262_v2  ;;  %4103 = vmatmul.mubr.msk.f32.gmra.mrb[22].mxu1 %vm478_vm0, %v5333_v20  ;;  %v2255_v30 = vmul.f32 0.5, %v2239_v44  ;;  %v2232_v17 = vmul.f32 %v5138_v48, %v5213_v37 }
 0x106   : > { %v4459_v43 = vpop.eup %4458  ;;  %v4222_v63 = vpack.c.bf16 %v1869_v33, %v1865_v25  ;;  %v1850_v31 = vadd.f32 1.0, %v4457_v38  ;;  %2023 = vmatprep.mubr.f32.mxu1 %v4915_v19  ;;  %v2259_v45 = vmul.f32 0.5, %v2243_v15  ;;  %v2245_v28 = vadd.f32 %v2229_v58, %v5185_v5 }
 0x107   : > { %v4461_v9 = vpop.eup %4460  ;;  %v1862_v57 = vmul.f32 0.5, %v1846_v40  ;;  %v1848_v4 = vadd.f32 1.0, %v4459_v43  ;;  %4470 = vtanh.f32 %v2255_v30  ;;  %v2257_v61 = vmul.f32 0.5, %v2241_v60 }
 0x108   : > { %4223 = vmatprep.subr.bf16.mxu1 %v4222_v63  ;;  %v1866_v8 = vmul.f32 0.5, %v1850_v31  ;;  %v1852_v59 = vadd.f32 1.0, %v4461_v9  ;;  %4472 = vtanh.f32 %v2259_v45  ;;  %v2261_v27 = vmul.f32 0.5, %v2245_v28 }
 0x109   : > { %v4463_v14 = vpop.eup %4462  ;;  %v1864_v46 = vmul.f32 0.5, %v1848_v4  ;;  %4474 = vtanh.f32 %v2257_v61  ;;  %v2236_v42 = vmul.f32 %v5138_v48, %v5211_v32  ;;  %v2248_v10 = vadd.f32 %v2232_v17, %v5231_v11 }
 0x10a   : > { %v4465_v16 = vpop.eup %4464  ;;  %v4216_v18 = vpack.c.bf16 %v1866_v8, %v1862_v57  ;;  %v1868_v12 = vmul.f32 0.5, %v1852_v59  ;;  %v2288_v41 = vadd.f32 1.0, %v4463_v14  ;;  %4476 = vtanh.f32 %v2261_v27 }
 0x10b   : > { %v2292_v0 = vadd.f32 1.0, %v4465_v16  ;;  %v2252_v62 = vadd.f32 %v2236_v42, %v5229_v7  ;;  %v2264_v39 = vmul.f32 0.5, %v2248_v10  ;;  %v2234_v25 = vmul.f32 %v5141_v49, %v5213_v37 }
 0x10c   : > { %4217 = vmatpush1.bf16.msra.mxu0 %v4216_v18  ;;  %v4224_v1 = vpack.c.bf16 %v1868_v12, %v1864_v46  ;;  %v2304_v3 = vmul.f32 0.5, %v2288_v41  ;;  %v2238_v48 = vmul.f32 %v5141_v49, %v5211_v32  ;;  %v2231_v47 = vmul.f32 %v5144_v50, %v5213_v37 }
 0x10d   : > { %v4467_v2 = vpop.eup %4466  ;;  %v2308_v44 = vmul.f32 0.5, %v2292_v0  ;;  %v2268_v29 = vmul.f32 0.5, %v2252_v62  ;;  %4478 = vtanh.f32 %v2264_v39  ;;  %v2250_v33 = vadd.f32 %v2234_v25, %v5231_v11 }
 0x10e   : > { %4225 = vmatpush1.bf16.msra.mxu1 %v4224_v1  ;;  %v2290_v15 = vadd.f32 1.0, %v4467_v2  ;;  %v2254_v58 = vadd.f32 %v2238_v48, %v5229_v7  ;;  %v2235_v60 = vmul.f32 %v5144_v50, %v5211_v32  ;;  %v2247_v38 = vadd.f32 %v2231_v47, %v5231_v11 }
 0x10f   : > { %v4469_v40 = vpop.eup %4468  ;;  %v4226_v49 = vpack.c.bf16 %v2308_v44, %v2304_v3  ;;  %4106 = vmatmul.mubr.msk.f32.vlgmr.msra.gmra.mrb[24].mxu0 %vm478_vm0, %v5280_v35  ;;  %4480 = vtanh.f32 %v2268_v29  ;;  %v2266_v30 = vmul.f32 0.5, %v2250_v33  ;;  %v2233_v17 = vmul.f32 %v5151_v53, %v5213_v37 }
 0x110   : > { %v2294_v43 = vadd.f32 1.0, %v4469_v40  ;;  %v2306_v63 = vmul.f32 0.5, %v2290_v15  ;;  %v2270_v31 = vmul.f32 0.5, %v2254_v58  ;;  %1940 = vmatprep.mubr.f32.mxu0 %v4915_v19  ;;  %v2251_v45 = vadd.f32 %v2235_v60, %v5229_v7 }
 0x111   : > { %v4471_v50 = vpop.eup %4470  ;;  %4227 = vmatprep.subr.bf16.mxu0 %v4226_v49  ;;  %4110 = vmatmul.mubr.msk.f32.vlgmr.msra.gmra.mrb[24].mxu1 %vm478_vm0, %v5280_v35  ;;  %4482 = vtanh.f32 %v2266_v30  ;;  %v2263_v28 = vmul.f32 0.5, %v2247_v38  ;;  %v2237_v9 = vmul.f32 %v5151_v53, %v5211_v32  ;;  %v2249_v57 = vadd.f32 %v2233_v17, %v5231_v11 }
 0x112   : > { %v4473_v4 = vpop.eup %4472  ;;  %v2310_v61 = vmul.f32 0.5, %v2294_v43  ;;  %v2287_v8 = vadd.f32 1.0, %v4471_v50  ;;  %4484 = vtanh.f32 %v2270_v31  ;;  %2029 = vmatprep.mubr.f32.mxu1 %v4915_v19  ;;  %v2267_v59 = vmul.f32 0.5, %v2251_v45 }
 0x113   : > { %v4475_v27 = vpop.eup %4474  ;;  %v2291_v14 = vadd.f32 1.0, %v4473_v4  ;;  %4107 = vmatmul.mubr.msk.f32.gmra.mrb[26].mxu0 %vm478_vm0, %v5293_v36  ;;  %4486 = vtanh.f32 %v2263_v28  ;;  %v2253_v35 = vadd.f32 %v2237_v9, %v5229_v7  ;;  %v2265_v46 = vmul.f32 0.5, %v2249_v57 }
 0x114   : > { %v4477_v42 = vpop.eup %4476  ;;  %v4234_v53 = vpack.c.bf16 %v2310_v61, %v2306_v63  ;;  %v2303_v10 = vmul.f32 0.5, %v2287_v8  ;;  %v2289_v16 = vadd.f32 1.0, %v4475_v27  ;;  %4488 = vtanh.f32 %v2267_v59  ;;  %1946 = vmatprep.mubr.f32.mxu0 %v4915_v19 }
 0x115   : > { %v2307_v18 = vmul.f32 0.5, %v2291_v14  ;;  %v2293_v12 = vadd.f32 1.0, %v4477_v42  ;;  %4111 = vmatmul.mubr.msk.f32.gmra.mrb[26].mxu1 %vm478_vm0, %v5293_v36  ;;  %v2269_v41 = vmul.f32 0.5, %v2253_v35  ;;  %4490 = vtanh.f32 %v2265_v46 }
 0x116   : > { %4235 = vmatprep.subr.bf16.mxu1 %v4234_v53  ;;  %v2305_v0 = vmul.f32 0.5, %v2289_v16  ;;  %v2673_v62 = vmul.f32 %v5155_v54, %v5148_v52  ;;  %v2677_v39 = vmul.f32 %v5155_v54, %v5187_v6  ;;  %v2675_v25 = vmul.f32 %v5159_v55, %v5148_v52  ;;  %2035 = vmatprep.mubr.f32.mxu1 %v4915_v19 }
 0x117   : > { %v4479_v1 = vpop.eup %4478  ;;  %v4228_v3 = vpack.c.bf16 %v2307_v18, %v2303_v10  ;;  %v2309_v48 = vmul.f32 0.5, %v2293_v12  ;;  %4492 = vtanh.f32 %v2269_v41  ;;  %v2679_v36 = vmul.f32 %v5159_v55, %v5187_v6  ;;  %4108 = vmatmul.mubr.msk.f32.gmra.mrb[28].mxu0 %vm478_vm0, %v5316_v13 }
 0x118   : > { %v2296_v47 = vadd.f32 1.0, %v4479_v1  ;;  %v2689_v2 = vadd.f32 %v2673_v62, %v5146_v51  ;;  %v2693_v44 = vadd.f32 %v2677_v39, %v5185_v5  ;;  %v2691_v29 = vadd.f32 %v2675_v25, %v5146_v51  ;;  %1952 = vmatprep.mubr.f32.mxu0 %v4915_v19 }
 0x119   : > { %v4481_v33 = vpop.eup %4480  ;;  %4229 = vmatpush1.bf16.msra.mxu0 %v4228_v3  ;;  %v4236_v15 = vpack.c.bf16 %v2309_v48, %v2305_v0  ;;  %v2695_v58 = vadd.f32 %v2679_v36, %v5185_v5  ;;  %4112 = vmatmul.mubr.msk.f32.gmra.mrb[28].mxu1 %vm478_vm0, %v5316_v13  ;;  %v2672_v60 = vmul.f32 %v5163_v56, %v5148_v52 }
 0x11a   : > { %v2300_v38 = vadd.f32 1.0, %v4481_v33  ;;  %v2312_v40 = vmul.f32 0.5, %v2296_v47  ;;  %v2705_v49 = vmul.f32 0.5, %v2689_v2  ;;  %v2709_v30 = vmul.f32 0.5, %v2693_v44  ;;  %2041 = vmatprep.mubr.f32.mxu1 %v4915_v19 }
 0x11b   : > { %v4483_v17 = vpop.eup %4482  ;;  %4237 = vmatpush1.bf16.msra.mxu1 %v4236_v15  ;;  %v2707_v43 = vmul.f32 0.5, %v2691_v29  ;;  %v2711_v63 = vmul.f32 0.5, %v2695_v58  ;;  %4109 = vmatmul.mubr.msk.f32.gmra.mrb[30].mxu0 %vm478_vm0, %v5333_v20  ;;  %v2676_v31 = vmul.f32 %v5163_v56, %v5187_v6  ;;  %v2688_v13 = vadd.f32 %v2672_v60, %v5146_v51 }
 0x11c   : > { %v4485_v45 = vpop.eup %4484  ;;  %v2316_v50 = vmul.f32 0.5, %v2300_v38  ;;  %v2298_v28 = vadd.f32 1.0, %v4483_v17  ;;  %4494 = vtanh.f32 %v2705_v49  ;;  %2383 = vmatprep.mubr.f32.mxu0 %v4915_v19  ;;  %v2674_v9 = vmul.f32 %v5269_v34, %v5148_v52 }
 0x11d   : > { %v4487_v57 = vpop.eup %4486  ;;  %v2302_v4 = vadd.f32 1.0, %v4485_v45  ;;  %4496 = vtanh.f32 %v2709_v30  ;;  %4113 = vmatmul.mubr.msk.f32.gmra.mrb[30].mxu1 %vm478_vm0, %v5333_v20  ;;  %v2692_v61 = vadd.f32 %v2676_v31, %v5185_v5  ;;  %v2704_v8 = vmul.f32 0.5, %v2688_v13 }
 0x11e   : > { %v4489_v59 = vpop.eup %4488  ;;  %v4230_v27 = vpack.c.bf16 %v2316_v50, %v2312_v40  ;;  %v2314_v14 = vmul.f32 0.5, %v2298_v28  ;;  %v2295_v35 = vadd.f32 1.0, %v4487_v57  ;;  %4498 = vtanh.f32 %v2707_v43  ;;  %2472 = vmatprep.mubr.f32.mxu1 %v4915_v19  ;;  %v5592_v50 = vld [vmem:[%s6652_s3] sm:$0xff] }
 0x11f   : > { %v4491_v46 = vpop.eup %4490  ;;  %v2318_v42 = vmul.f32 0.5, %v2302_v4  ;;  %v2299_v53 = vadd.f32 1.0, %v4489_v59  ;;  %4500 = vtanh.f32 %v2711_v63  ;;  %v2708_v10 = vmul.f32 0.5, %v2692_v61 }
 0x120   : > { %4231 = vmatprep.subr.bf16.mxu0 %v4230_v27  ;;  %v2311_v16 = vmul.f32 0.5, %v2295_v35  ;;  %v2297_v18 = vadd.f32 1.0, %v4491_v46  ;;  %4502 = vtanh.f32 %v2704_v8  ;;  %v2678_v20 = vmul.f32 %v5269_v34, %v5187_v6 }
 0x121   : > { %v4493_v12 = vpop.eup %4492  ;;  %v4238_v41 = vpack.c.bf16 %v2318_v42, %v2314_v14  ;;  %v2315_v0 = vmul.f32 0.5, %v2299_v53  ;;  %4504 = vtanh.f32 %v2708_v10  ;;  %v2690_v62 = vadd.f32 %v2674_v9, %v5146_v51  ;;  %v4135_v10 = vld [vmem:[%s5067_s20 + $0x6] ss:$8 sm:$0xf] }
 0x122   : > { %v2301_v39 = vadd.f32 1.0, %v4493_v12  ;;  %v2313_v25 = vmul.f32 0.5, %v2297_v18  ;;  %v2694_v1 = vadd.f32 %v2678_v20, %v5185_v5  ;;  %v2681_v3 = vmul.f32 %v5155_v54, %v5213_v37  ;;  %v5606_v12 = vld [vmem:[%s6652_s3 + $0x8] sm:$0xff] }
 0x123   : > { %4239 = vmatprep.subr.bf16.mxu1 %v4238_v41  ;;  %v4232_v48 = vpack.c.bf16 %v2315_v0, %v2311_v16  ;;  %v2706_v36 = vmul.f32 0.5, %v2690_v62  ;;  %v2685_v47 = vmul.f32 %v5155_v54, %v5211_v32  ;;  %v2683_v2 = vmul.f32 %v5159_v55, %v5213_v37 }
 0x124   : > { %v2317_v44 = vmul.f32 0.5, %v2301_v39  ;;  %v2710_v29 = vmul.f32 0.5, %v2694_v1  ;;  %v2697_v33 = vadd.f32 %v2681_v3, %v5231_v11  ;;  %v2687_v15 = vmul.f32 %v5159_v55, %v5211_v32 }
 0x125   : > { %4233 = vmatpush1.bf16.msra.mxu0 %v4232_v48  ;;  %4506 = vtanh.f32 %v2706_v36  ;;  %v2701_v58 = vadd.f32 %v2685_v47, %v5229_v7  ;;  %v2699_v60 = vadd.f32 %v2683_v2, %v5231_v11  ;;  %v2680_v38 = vmul.f32 %v5163_v56, %v5213_v37 }
 0x126   : > { %v4495_v54 = vpop.eup %4494  ;;  %v4240_v40 = vpack.c.bf16 %v2317_v44, %v2313_v25  ;;  %4508 = vtanh.f32 %v2710_v29  ;;  %v2713_v49 = vmul.f32 0.5, %v2697_v33  ;;  %v2703_v30 = vadd.f32 %v2687_v15, %v5229_v7 }
 0x127   : > { %v4497_v17 = vpop.eup %4496  ;;  %v2737_v43 = vadd.f32 1.0, %v4495_v54  ;;  %v2717_v63 = vmul.f32 0.5, %v2701_v58  ;;  %v2715_v31 = vmul.f32 0.5, %v2699_v60  ;;  %v2684_v55 = vmul.f32 %v5163_v56, %v5211_v32 }
 0x128   : > { %v4499_v13 = vpop.eup %4498  ;;  %4241 = vmatpush1.bf16.msra.mxu1 %v4240_v40  ;;  %v2741_v45 = vadd.f32 1.0, %v4497_v17  ;;  %4116 = vmatmul.mubr.msk.f32.vlgmr.msra.gmra.mrb[32].mxu0 %vm478_vm0, %v5592_v50  ;;  %4510 = vtanh.f32 %v2713_v49  ;;  %v2719_v28 = vmul.f32 0.5, %v2703_v30  ;;  %v2696_v9 = vadd.f32 %v2680_v38, %v5231_v11  ;;  %v5641_v49 = vld [vmem:[%s6652_s3 + $0x10] sm:$0xff] }
 0x129   : > { %v4501_v57 = vpop.eup %4500  ;;  %v2753_v4 = vmul.f32 0.5, %v2737_v43  ;;  %v2739_v61 = vadd.f32 1.0, %v4499_v13  ;;  %4512 = vtanh.f32 %v2717_v63  ;;  %2389 = vmatprep.mubr.f32.mxu0 %v4915_v19  ;;  %v2700_v56 = vadd.f32 %v2684_v55, %v5229_v7 }
 0x12a   : > { %v4503_v8 = vpop.eup %4502  ;;  %v2757_v59 = vmul.f32 0.5, %v2741_v45  ;;  %v2743_v27 = vadd.f32 1.0, %v4501_v57  ;;  %4514 = vtanh.f32 %v2715_v31  ;;  %v2712_v14 = vmul.f32 0.5, %v2696_v9 }
 0x12b   : > { %v4505_v35 = vpop.eup %4504  ;;  %v2755_v46 = vmul.f32 0.5, %v2739_v61  ;;  %4120 = vmatmul.mubr.msk.f32.vlgmr.msra.gmra.mrb[32].mxu1 %vm478_vm0, %v5592_v50  ;;  %v2736_v42 = vadd.f32 1.0, %v4503_v8  ;;  %4516 = vtanh.f32 %v2719_v28  ;;  %v2716_v53 = vmul.f32 0.5, %v2700_v56 }
 0x12c   : > { %v4242_v16 = vpack.c.bf16 %v2757_v59, %v2753_v4  ;;  %v2759_v18 = vmul.f32 0.5, %v2743_v27  ;;  %v2740_v20 = vadd.f32 1.0, %v4505_v35  ;;  %2478 = vmatprep.mubr.f32.mxu1 %v4915_v19  ;;  %4117 = vmatmul.mubr.msk.f32.gmra.mrb[34].mxu0 %vm478_vm0, %v5606_v12  ;;  %4518 = vtanh.f32 %v2712_v14  ;;  %v5658_v35 = vld [vmem:[%s6652_s3 + $0x18] sm:$0xff] }
 0x12d   : > { %v2752_v41 = vmul.f32 0.5, %v2736_v42  ;;  %4520 = vtanh.f32 %v2716_v53  ;;  %v2682_v0 = vmul.f32 %v5269_v34, %v5213_v37  ;;  %v2686_v62 = vmul.f32 %v5269_v34, %v5211_v32  ;;  %2395 = vmatprep.mubr.f32.mxu0 %v4915_v19 }
 0x12e   : > { %4243 = vmatprep.subr.bf16.mxu0 %v4242_v16  ;;  %v4250_v39 = vpack.c.bf16 %v2759_v18, %v2755_v46  ;;  %v2756_v25 = vmul.f32 0.5, %v2740_v20  ;;  %v5616_v1 = vrot.slane %v4135_v10, %v5070_v22  ;;  %v5619_v3 = vrot.slane %v4135_v10, %v5073_v23 }
 0x12f   : > { %v4507_v48 = vpop.eup %4506  ;;  %4121 = vmatmul.mubr.msk.f32.gmra.mrb[34].mxu1 %vm478_vm0, %v5606_v12  ;;  %v2698_v36 = vadd.f32 %v2682_v0, %v5231_v11  ;;  %v2702_v47 = vadd.f32 %v2686_v62, %v5229_v7  ;;  %v5626_v34 = vrot.slane %v4135_v10, %v5076_v24  ;;  %v5629_v2 = vrot.slane %v4135_v10, %v5080_v26 }
 0x130   : > { %v4509_v44 = vpop.eup %4508  ;;  %4251 = vmatprep.subr.bf16.mxu1 %v4250_v39  ;;  %v4244_v29 = vpack.c.bf16 %v2756_v25, %v2752_v41  ;;  %v2738_v33 = vadd.f32 1.0, %v4507_v48  ;;  %v3122_v15 = vmul.f32 %v5616_v1, %v5148_v52  ;;  %v3126_v58 = vmul.f32 %v5616_v1, %v5187_v6  ;;  %2484 = vmatprep.mubr.f32.mxu1 %v4915_v19 }
 0x131   : > { %v2742_v60 = vadd.f32 1.0, %v4509_v44  ;;  %v2714_v38 = vmul.f32 0.5, %v2698_v36  ;;  %v2718_v54 = vmul.f32 0.5, %v2702_v47  ;;  %v3124_v40 = vmul.f32 %v5619_v3, %v5148_v52  ;;  %4118 = vmatmul.mubr.msk.f32.gmra.mrb[36].mxu0 %vm478_vm0, %v5641_v49 }
 0x132   : > { %v4511_v30 = vpop.eup %4510  ;;  %4245 = vmatpush1.bf16.msra.mxu0 %v4244_v29  ;;  %v2754_v17 = vmul.f32 0.5, %v2738_v33  ;;  %v3138_v43 = vadd.f32 %v3122_v15, %v5146_v51  ;;  %v3142_v63 = vadd.f32 %v3126_v58, %v5185_v5  ;;  %v3128_v31 = vmul.f32 %v5619_v3, %v5187_v6  ;;  %2401 = vmatprep.mubr.f32.mxu0 %v4915_v19 }
 0x133   : > { %v4513_v55 = vpop.eup %4512  ;;  %v2758_v13 = vmul.f32 0.5, %v2742_v60  ;;  %v2745_v45 = vadd.f32 1.0, %v4511_v30  ;;  %4522 = vtanh.f32 %v2714_v38  ;;  %v3140_v28 = vadd.f32 %v3124_v40, %v5146_v51  ;;  %4122 = vmatmul.mubr.msk.f32.gmra.mrb[36].mxu1 %vm478_vm0, %v5641_v49 }
 0x134   : > { %v4515_v9 = vpop.eup %4514  ;;  %v2749_v57 = vadd.f32 1.0, %v4513_v55  ;;  %4524 = vtanh.f32 %v2718_v54  ;;  %v3154_v4 = vmul.f32 0.5, %v3138_v43  ;;  %v3158_v61 = vmul.f32 0.5, %v3142_v63  ;;  %2490 = vmatprep.mubr.f32.mxu1 %v4915_v19 }
 0x135   : > { %v4517_v56 = vpop.eup %4516  ;;  %v4252_v8 = vpack.c.bf16 %v2758_v13, %v2754_v17  ;;  %v2761_v59 = vmul.f32 0.5, %v2745_v45  ;;  %v2747_v27 = vadd.f32 1.0, %v4515_v9  ;;  %v3144_v14 = vadd.f32 %v3128_v31, %v5185_v5  ;;  %4119 = vmatmul.mubr.msk.f32.gmra.mrb[38].mxu0 %vm478_vm0, %v5658_v35 }
 0x136   : > { %v4519_v46 = vpop.eup %4518  ;;  %v2765_v42 = vmul.f32 0.5, %v2749_v57  ;;  %v2751_v53 = vadd.f32 1.0, %v4517_v56  ;;  %4526 = vtanh.f32 %v3154_v4  ;;  %v3156_v10 = vmul.f32 0.5, %v3140_v28  ;;  %2832 = vmatprep.mubr.f32.mxu0 %v4915_v19 }
 0x137   : > { %v4521_v16 = vpop.eup %4520  ;;  %4253 = vmatpush1.bf16.msra.mxu1 %v4252_v8  ;;  %v2763_v18 = vmul.f32 0.5, %v2747_v27  ;;  %v2744_v20 = vadd.f32 1.0, %v4519_v46  ;;  %4528 = vtanh.f32 %v3158_v61  ;;  %v3160_v41 = vmul.f32 0.5, %v3144_v14 }
 0x138   : > { %v4246_v0 = vpack.c.bf16 %v2765_v42, %v2761_v59  ;;  %v2767_v62 = vmul.f32 0.5, %v2751_v53  ;;  %v2748_v39 = vadd.f32 1.0, %v4521_v16  ;;  %4530 = vtanh.f32 %v3156_v10  ;;  %4123 = vmatmul.mubr.msk.f32.gmra.mrb[38].mxu1 %vm478_vm0, %v5658_v35 }
 0x139   : > { %v2760_v25 = vmul.f32 0.5, %v2744_v20  ;;  %4532 = vtanh.f32 %v3160_v41  ;;  %2921 = vmatprep.mubr.f32.mxu1 %v4915_v19  ;;  %v3121_v48 = vmul.f32 %v5626_v34, %v5148_v52  ;;  %v3125_v36 = vmul.f32 %v5626_v34, %v5187_v6 }
 0x13a   : > { %4247 = vmatprep.subr.bf16.mxu0 %v4246_v0  ;;  %v4254_v47 = vpack.c.bf16 %v2767_v62, %v2763_v18  ;;  %v2764_v44 = vmul.f32 0.5, %v2748_v39  ;;  %v3123_v29 = vmul.f32 %v5629_v2, %v5148_v52  ;;  %v3127_v33 = vmul.f32 %v5629_v2, %v5187_v6 }
 0x13b   : > { %v3137_v15 = vadd.f32 %v3121_v48, %v5146_v51  ;;  %v3141_v58 = vadd.f32 %v3125_v36, %v5185_v5  ;;  %v3130_v60 = vmul.f32 %v5616_v1, %v5213_v37  ;;  %v3134_v38 = vmul.f32 %v5616_v1, %v5211_v32 }
 0x13c   : > { %4255 = vmatprep.subr.bf16.mxu1 %v4254_v47  ;;  %v4248_v54 = vpack.c.bf16 %v2764_v44, %v2760_v25  ;;  %v3139_v40 = vadd.f32 %v3123_v29, %v5146_v51  ;;  %v3143_v30 = vadd.f32 %v3127_v33, %v5185_v5  ;;  %v3132_v17 = vmul.f32 %v5619_v3, %v5213_v37  ;;  %v5698_v47 = vld [vmem:[%s5067_s20 + $0x7] ss:$8 sm:$0xf]  ;;  %s271_s20 = sand.u32 1, %s4904_s27  }
 0x13d   : > { %v4523_v43 = vpop.eup %4522  ;;  %v3153_v63 = vmul.f32 0.5, %v3137_v15  ;;  %v3157_v31 = vmul.f32 0.5, %v3141_v58  ;;  %v3146_v55 = vadd.f32 %v3130_v60, %v5231_v11  ;;  %v3150_v13 = vadd.f32 %v3134_v38, %v5229_v7  ;;  %s5941_s23 = sshll.u32 %s271_s20, 5  ;;  %s3997_s15 = scalar_lea.sflag [#allocation4], %s271_s20 }
 0x13e   : > { %v4525_v45 = vpop.eup %4524  ;;  %4249 = vmatpush1.bf16.msra.mxu0 %v4248_v54  ;;  %v2746_v28 = vadd.f32 1.0, %v4523_v43  ;;  %v3155_v1 = vmul.f32 0.5, %v3139_v40  ;;  %v3159_v9 = vmul.f32 0.5, %v3143_v30  ;;  %v3136_v57 = vmul.f32 %v5619_v3, %v5211_v32  ;;  %s5960_s24 = scalar_lea.vmem [#allocation3], %s5941_s23 }
 0x13f   : > { %v2750_v4 = vadd.f32 1.0, %v4525_v45  ;;  %4534 = vtanh.f32 %v3153_v63  ;;  %v3162_v61 = vmul.f32 0.5, %v3146_v55  ;;  %v3166_v56 = vmul.f32 0.5, %v3150_v13  ;;  %s4011_s30 = sshll.u32 %s5960_s24, 4  ;;  %s6604_s30 = int_to_ptr.vmem [resolvable:$true] %s4011_s30 }
 0x140   : > { %v4527_v8 = vpop.eup %4526  ;;  %v2762_v59 = vmul.f32 0.5, %v2746_v28  ;;  %4536 = vtanh.f32 %v3157_v31  ;;  %v3148_v27 = vadd.f32 %v3132_v17, %v5231_v11  ;;  %v3152_v14 = vadd.f32 %v3136_v57, %v5229_v7  ;;  %s4850_s6 = scalar_lea.vmem %s6604_s30, 512  ;;  %p4857_p0 = scmp.lt.s32.totalorder %s6604_s30, %s4855_s17 }
 0x141   : > { %v4529_v46 = vpop.eup %4528  ;;  %v2766_v42 = vmul.f32 0.5, %v2750_v4  ;;  %v3186_v53 = vadd.f32 1.0, %v4527_v8  ;;  %4126 = vmatmul.mubr.msk.f32.vlgmr.msra.gmra.mrb[40].mxu0 %vm478_vm0, %v5592_v50  ;;  %4538 = vtanh.f32 %v3155_v1  ;;  %v3129_v3 = vmul.f32 %v5626_v34, %v5213_v37  ;;  %p4851_p11 = scmp.ne.s32.totalorder %s6604_s30, %s4850_s6  ;;  %p4858_p1 = scmp.lt.s32.totalorder %s4856_s18, %s4850_s6 }
 0x142   : > { %v4531_v10 = vpop.eup %4530  ;;  %v3190_v16 = vadd.f32 1.0, %v4529_v46  ;;  %4540 = vtanh.f32 %v3159_v9  ;;  %v3164_v18 = vmul.f32 0.5, %v3148_v27  ;;  %v3168_v20 = vmul.f32 0.5, %v3152_v14  ;;  %2838 = vmatprep.mubr.f32.mxu0 %v4915_v19 }
 0x143   : > { %v4533_v41 = vpop.eup %4532  ;;  %v4256_v0 = vpack.c.bf16 %v2766_v42, %v2762_v59  ;;  %v3202_v62 = vmul.f32 0.5, %v3186_v53  ;;  %v3188_v39 = vadd.f32 1.0, %v4531_v10  ;;  %4542 = vtanh.f32 %v3162_v61  ;;  %p4852_p12 = pnand %p4851_p11, %p4999_p5  ;;  %p4859_p2 = por %p4858_p1, %p4857_p0 }
 0x144   : > { %v3206_v25 = vmul.f32 0.5, %v3190_v16  ;;  %v3192_v48 = vadd.f32 1.0, %v4533_v41  ;;  %4544 = vtanh.f32 %v3166_v56  ;;  %v3133_v36 = vmul.f32 %v5626_v34, %v5211_v32 }
 0x145   : > { %4257 = vmatpush1.bf16.msra.mxu1 %v4256_v0  ;;  %v3204_v44 = vmul.f32 0.5, %v3188_v39  ;;  %4546 = vtanh.f32 %v3164_v18  ;;  %4127 = vmatmul.mubr.msk.f32.gmra.mrb[42].mxu0 %vm478_vm0, %v5606_v12  ;;  %v3145_v29 = vadd.f32 %v3129_v3, %v5231_v11  ;;  %v3131_v33 = vmul.f32 %v5629_v2, %v5213_v37  ;;  %p4853_p13 = pneg %p4852_p12 }
 0x146   : > { %v4258_v15 = vpack.c.bf16 %v3206_v25, %v3202_v62  ;;  %v3208_v58 = vmul.f32 0.5, %v3192_v48  ;;  %4548 = vtanh.f32 %v3168_v20  ;;  %v3149_v60 = vadd.f32 %v3133_v36, %v5229_v7  ;;  %2844 = vmatprep.mubr.f32.mxu0 %v4915_v19 }
 0x147   : > { %v3161_v34 = vmul.f32 0.5, %v3145_v29  ;;  %v3135_v38 = vmul.f32 %v5629_v2, %v5211_v32  ;;  %v3147_v54 = vadd.f32 %v3131_v33, %v5231_v11  ;;  %v5712_v40 = vrot.slane %v5698_v47, %v5070_v22  ;;  %p4860_p3 = pnand %p4859_p2, %p4853_p13 }
 0x148   : > { %4259 = vmatprep.subr.bf16.mxu0 %v4258_v15  ;;  %v4266_v30 = vpack.c.bf16 %v3208_v58, %v3204_v44  ;;  %4130 = vmatmul.mubr.msk.f32.vlgmr.msra.gmra.mrb[40].mxu1 %vm478_vm0, %v5592_v50  ;;  %v3165_v17 = vmul.f32 0.5, %v3149_v60  ;;  %v5718_v43 = vrot.slane %v5698_v47, %v5073_v23  ;;  %v5722_v63 = vrot.slane %v5698_v47, %v5076_v24 }
 0x149   : > { %v4535_v2 = vpop.eup %4534  ;;  %2927 = vmatprep.mubr.f32.mxu1 %v4915_v19  ;;  %4550 = vtanh.f32 %v3161_v34  ;;  %v3151_v22 = vadd.f32 %v3135_v38, %v5229_v7  ;;  %v3163_v31 = vmul.f32 0.5, %v3147_v54  ;;  %v3571_v55 = vmul.f32 %v5712_v40, %v5148_v52  ;;  %4128 = vmatmul.mubr.msk.f32.gmra.mrb[44].mxu0 %vm478_vm0, %v5641_v49 }
 0x14a   : > { %v4537_v13 = vpop.eup %4536  ;;  %4267 = vmatprep.subr.bf16.mxu1 %v4266_v30  ;;  %v3185_v23 = vadd.f32 1.0, %v4535_v2  ;;  %4552 = vtanh.f32 %v3165_v17  ;;  %v3575_v45 = vmul.f32 %v5712_v40, %v5187_v6  ;;  %v3573_v28 = vmul.f32 %v5718_v43, %v5148_v52  ;;  %2850 = vmatprep.mubr.f32.mxu0 %v4915_v19 }
 0x14b   : > { %v4539_v1 = vpop.eup %4538  ;;  %v3189_v9 = vadd.f32 1.0, %v4537_v13  ;;  %v3167_v57 = vmul.f32 0.5, %v3151_v22  ;;  %4554 = vtanh.f32 %v3163_v31  ;;  %v3587_v4 = vadd.f32 %v3571_v55, %v5146_v51 }
 0x14c   : > { %v4541_v61 = vpop.eup %4540  ;;  %v3201_v56 = vmul.f32 0.5, %v3185_v23  ;;  %v3187_v8 = vadd.f32 1.0, %v4539_v1  ;;  %4131 = vmatmul.mubr.msk.f32.gmra.mrb[42].mxu1 %vm478_vm0, %v5606_v12  ;;  %v3591_v59 = vadd.f32 %v3575_v45, %v5185_v5  ;;  %v3577_v27 = vmul.f32 %v5718_v43, %v5187_v6 }
 0x14d   : > { %v4543_v14 = vpop.eup %4542  ;;  %v3205_v46 = vmul.f32 0.5, %v3189_v9  ;;  %v3191_v42 = vadd.f32 1.0, %v4541_v61  ;;  %4556 = vtanh.f32 %v3167_v57  ;;  %v3603_v53 = vmul.f32 0.5, %v3587_v4  ;;  %2933 = vmatprep.mubr.f32.mxu1 %v4915_v19  ;;  %4129 = vmatmul.mubr.msk.f32.gmra.mrb[46].mxu0 %vm478_vm0, %v5658_v35 }
 0x14e   : > { %v4545_v3 = vpop.eup %4544  ;;  %v3203_v10 = vmul.f32 0.5, %v3187_v8  ;;  %v3194_v16 = vadd.f32 1.0, %v4543_v14  ;;  %v3607_v18 = vmul.f32 0.5, %v3591_v59  ;;  %v3589_v20 = vadd.f32 %v3573_v28, %v5146_v51  ;;  %3281 = vmatprep.mubr.f32.mxu0 %v4915_v19 }
 0x14f   : > { %v4547_v41 = vpop.eup %4546  ;;  %v4260_v0 = vpack.c.bf16 %v3205_v46, %v3201_v56  ;;  %v3207_v62 = vmul.f32 0.5, %v3191_v42  ;;  %v3198_v39 = vadd.f32 1.0, %v4545_v3  ;;  %4558 = vtanh.f32 %v3603_v53 }
 0x150   : > { %v4549_v25 = vpop.eup %4548  ;;  %v3210_v48 = vmul.f32 0.5, %v3194_v16  ;;  %v3196_v36 = vadd.f32 1.0, %v4547_v41  ;;  %4560 = vtanh.f32 %v3607_v18  ;;  %v3593_v44 = vadd.f32 %v3577_v27, %v5185_v5  ;;  %4132 = vmatmul.mubr.msk.f32.gmra.mrb[44].mxu1 %vm478_vm0, %v5641_v49 }
 0x151   : > { %4261 = vmatpush1.bf16.msra.mxu0 %v4260_v0  ;;  %v4268_v29 = vpack.c.bf16 %v3207_v62, %v3203_v10  ;;  %v3214_v33 = vmul.f32 0.5, %v3198_v39  ;;  %v3200_v15 = vadd.f32 1.0, %v4549_v25  ;;  %v3605_v58 = vmul.f32 0.5, %v3589_v20  ;;  %2939 = vmatprep.mubr.f32.mxu1 %v4915_v19 }
 0x152   : > { %v3212_v60 = vmul.f32 0.5, %v3196_v36  ;;  %v3609_v34 = vmul.f32 0.5, %v3593_v44  ;;  %v3570_v38 = vmul.f32 %v5722_v63, %v5148_v52  ;;  %v3574_v54 = vmul.f32 %v5722_v63, %v5187_v6 }
 0x153   : > { %v4551_v30 = vpop.eup %4550  ;;  %4269 = vmatpush1.bf16.msra.mxu1 %v4268_v29  ;;  %v4262_v17 = vpack.c.bf16 %v3214_v33, %v3210_v48  ;;  %v3216_v2 = vmul.f32 0.5, %v3200_v15  ;;  %4562 = vtanh.f32 %v3605_v58  ;;  %v5756_v22 = vrot.slane %v5698_v47, %v5080_v26 }
 0x154   : > { %v4553_v31 = vpop.eup %4552  ;;  %v3193_v55 = vadd.f32 1.0, %v4551_v30  ;;  %4564 = vtanh.f32 %v3609_v34  ;;  %4133 = vmatmul.mubr.msk.f32.gmra.mrb[46].mxu1 %vm478_vm0, %v5658_v35  ;;  %v3586_v13 = vadd.f32 %v3570_v38, %v5146_v51  ;;  %v3590_v23 = vadd.f32 %v3574_v54, %v5185_v5 }
 0x155   : > { %v4555_v45 = vpop.eup %4554  ;;  %4263 = vmatprep.subr.bf16.mxu0 %v4262_v17  ;;  %v4270_v28 = vpack.c.bf16 %v3216_v2, %v3212_v60  ;;  %v3197_v1 = vadd.f32 1.0, %v4553_v31  ;;  %3370 = vmatprep.mubr.f32.mxu1 %v4915_v19  ;;  %v3572_v26 = vmul.f32 %v5756_v22, %v5148_v52  ;;  %v3576_v47 = vmul.f32 %v5756_v22, %v5187_v6 }
 0x156   : > { %v3209_v9 = vmul.f32 0.5, %v3193_v55  ;;  %v3195_v57 = vadd.f32 1.0, %v4555_v45  ;;  %v3602_v4 = vmul.f32 0.5, %v3586_v13  ;;  %v3606_v61 = vmul.f32 0.5, %v3590_v23 }
 0x157   : > { %v4557_v56 = vpop.eup %4556  ;;  %4271 = vmatprep.subr.bf16.mxu1 %v4270_v28  ;;  %v3213_v8 = vmul.f32 0.5, %v3197_v1  ;;  %v3588_v59 = vadd.f32 %v3572_v26, %v5146_v51  ;;  %v3592_v27 = vadd.f32 %v3576_v47, %v5185_v5  ;;  %v3579_v14 = vmul.f32 %v5712_v40, %v5213_v37 }
 0x158   : > { %v3199_v46 = vadd.f32 1.0, %v4557_v56  ;;  %v3211_v42 = vmul.f32 0.5, %v3195_v57  ;;  %4566 = vtanh.f32 %v3602_v4  ;;  %v3583_v52 = vmul.f32 %v5712_v40, %v5211_v32 }
 0x159   : > { %v4559_v6 = vpop.eup %4558  ;;  %v4264_v53 = vpack.c.bf16 %v3213_v8, %v3209_v9  ;;  %4568 = vtanh.f32 %v3606_v61  ;;  %v3604_v3 = vmul.f32 0.5, %v3588_v59  ;;  %v3608_v10 = vmul.f32 0.5, %v3592_v27 }
 0x15a   : > { %v4561_v16 = vpop.eup %4560  ;;  %v3215_v18 = vmul.f32 0.5, %v3199_v46  ;;  %v3635_v20 = vadd.f32 1.0, %v4559_v6  ;;  %v3595_v51 = vadd.f32 %v3579_v14, %v5231_v11  ;;  %v3599_v5 = vadd.f32 %v3583_v52, %v5229_v7 }
 0x15b   : > { %4265 = vmatpush1.bf16.msra.mxu0 %v4264_v53  ;;  %v3639_v41 = vadd.f32 1.0, %v4561_v16  ;;  %4570 = vtanh.f32 %v3604_v3  ;;  %v3581_v0 = vmul.f32 %v5718_v43, %v5213_v37  ;;  %v3585_v40 = vmul.f32 %v5718_v43, %v5211_v32 }
 0x15c   : > { %v4272_v62 = vpack.c.bf16 %v3215_v18, %v3211_v42  ;;  %v3651_v39 = vmul.f32 0.5, %v3635_v20  ;;  %4572 = vtanh.f32 %v3608_v10  ;;  %v3611_v25 = vmul.f32 0.5, %v3595_v51 }
 0x15d   : > { %v4563_v48 = vpop.eup %4562  ;;  %v3655_v36 = vmul.f32 0.5, %v3639_v41  ;;  %v3615_v44 = vmul.f32 0.5, %v3599_v5  ;;  %v3597_v29 = vadd.f32 %v3581_v0, %v5231_v11  ;;  %v3601_v33 = vadd.f32 %v3585_v40, %v5229_v7 }
 0x15e   : > { %v4565_v15 = vpop.eup %4564  ;;  %4273 = vmatpush1.bf16.msra.mxu1 %v4272_v62  ;;  %v3637_v58 = vadd.f32 1.0, %v4563_v48  ;;  %4136 = vmatmul.mubr.msk.f32.vlgmr.msra.gmra.mrb[48].mxu0 %vm478_vm0, %v5592_v50  ;;  %4574 = vtanh.f32 %v3611_v25  ;;  %v3578_v43 = vmul.f32 %v5722_v63, %v5213_v37  ;;  %v3582_v60 = vmul.f32 %v5722_v63, %v5211_v32 }
 0x15f   : > { %v4274_v34 = vpack.c.bf16 %v3655_v36, %v3651_v39  ;;  %v3641_v38 = vadd.f32 1.0, %v4565_v15  ;;  %4576 = vtanh.f32 %v3615_v44  ;;  %v3613_v54 = vmul.f32 0.5, %v3597_v29  ;;  %3287 = vmatprep.mubr.f32.mxu0 %v4915_v19 }
 0x160   : > { %v3653_v30 = vmul.f32 0.5, %v3637_v58  ;;  %v3617_v17 = vmul.f32 0.5, %v3601_v33  ;;  %v3594_v2 = vadd.f32 %v3578_v43, %v5231_v11  ;;  %v3598_v31 = vadd.f32 %v3582_v60, %v5229_v7 }
 0x161   : > { %4275 = vmatprep.subr.bf16.mxu0 %v4274_v34  ;;  %v3657_v55 = vmul.f32 0.5, %v3641_v38  ;;  %4140 = vmatmul.mubr.msk.f32.vlgmr.msra.gmra.mrb[48].mxu1 %vm478_vm0, %v5592_v50  ;;  %4578 = vtanh.f32 %v3613_v54  ;;  %v3580_v63 = vmul.f32 %v5756_v22, %v5213_v37  ;;  %v3584_v13 = vmul.f32 %v5756_v22, %v5211_v32 }
 0x162   : > { %v4567_v23 = vpop.eup %4566  ;;  %4580 = vtanh.f32 %v3617_v17  ;;  %3376 = vmatprep.mubr.f32.mxu1 %v4915_v19  ;;  %4137 = vmatmul.mubr.msk.f32.gmra.mrb[50].mxu0 %vm478_vm0, %v5606_v12  ;;  %v3610_v45 = vmul.f32 0.5, %v3594_v2  ;;  %v3614_v28 = vmul.f32 0.5, %v3598_v31 }
 0x163   : > { %v4569_v1 = vpop.eup %4568  ;;  %v4282_v26 = vpack.c.bf16 %v3657_v55, %v3653_v30  ;;  %v3634_v47 = vadd.f32 1.0, %v4567_v23  ;;  %v3596_v9 = vadd.f32 %v3580_v63, %v5231_v11  ;;  %v3600_v57 = vadd.f32 %v3584_v13, %v5229_v7  ;;  %3293 = vmatprep.mubr.f32.mxu0 %v4915_v19  ;;  %v5846_v63 = vpop.permute.xlu1 %465 }
 0x164   : > { %v3638_v37 = vadd.f32 1.0, %v4569_v1  ;;  %4582 = vtanh.f32 %v3610_v45 }
 0x165   : > { %v4571_v32 = vpop.eup %4570  ;;  %4283 = vmatprep.subr.bf16.mxu1 %v4282_v26  ;;  %4141 = vmatmul.mubr.msk.f32.gmra.mrb[50].mxu1 %vm478_vm0, %v5606_v12  ;;  %4584 = vtanh.f32 %v3614_v28  ;;  %v3612_v22 = vmul.f32 0.5, %v3596_v9  ;;  %v3616_v4 = vmul.f32 0.5, %v3600_v57  ;;  %v3650_v56 = vmul.f32 0.5, %v3634_v47 }
 0x166   : > { %v4573_v61 = vpop.eup %4572  ;;  %v3654_v8 = vmul.f32 0.5, %v3638_v37  ;;  %v3636_v59 = vadd.f32 1.0, %v4571_v32  ;;  %3382 = vmatprep.mubr.f32.mxu1 %v4915_v19  ;;  %4138 = vmatmul.mubr.msk.f32.gmra.mrb[52].mxu0 %vm478_vm0, %v5641_v49 }
 0x167   : > { %v3640_v7 = vadd.f32 1.0, %v4573_v61  ;;  %4586 = vtanh.f32 %v3612_v22  ;;  %3299 = vmatprep.mubr.f32.mxu0 %v4915_v19 }
 0x168   : > { %v4575_v11 = vpop.eup %4574  ;;  %v4276_v27 = vpack.c.bf16 %v3654_v8, %v3650_v56  ;;  %4588 = vtanh.f32 %v3616_v4  ;;  %v3652_v46 = vmul.f32 0.5, %v3636_v59 }
 0x169   : > { %v4577_v14 = vpop.eup %4576  ;;  %v3656_v42 = vmul.f32 0.5, %v3640_v7  ;;  %v3643_v52 = vadd.f32 1.0, %v4575_v11  ;;  %4142 = vmatmul.mubr.msk.f32.gmra.mrb[52].mxu1 %vm478_vm0, %v5641_v49 }
 0x16a   : > { %4277 = vmatpush1.bf16.msra.mxu0 %v4276_v27  ;;  %v3647_v6 = vadd.f32 1.0, %v4577_v14  ;;  %3388 = vmatprep.mubr.f32.mxu1 %v4915_v19 }
 0x16b   : > { %v4579_v53 = vpop.eup %4578  ;;  %v4284_v3 = vpack.c.bf16 %v3656_v42, %v3652_v46  ;;  %v3659_v10 = vmul.f32 0.5, %v3643_v52  ;;  %4139 = vmatmul.mubr.msk.f32.gmra.mrb[54].mxu0 %vm478_vm0, %v5658_v35 }
 0x16c   : > { %v4581_v16 = vpop.eup %4580  ;;  %v3663_v18 = vmul.f32 0.5, %v3647_v6  ;;  %v3645_v20 = vadd.f32 1.0, %v4579_v53  ;;  %3730 = vmatprep.mubr.f32.mxu0 %v4915_v19  ;;  %v5858_v6 = vpop.permute.xlu1 %475 }
 0x16d   : > { %4285 = vmatpush1.bf16.msra.mxu1 %v4284_v3  ;;  %v3649_v51 = vadd.f32 1.0, %v4581_v16 }
 0x16e   : > { %v4583_v5 = vpop.eup %4582  ;;  %v4278_v41 = vpack.c.bf16 %v3663_v18, %v3659_v10  ;;  %v3661_v0 = vmul.f32 0.5, %v3645_v20  ;;  %4143 = vmatmul.mubr.msk.f32.gmra.mrb[54].mxu1 %vm478_vm0, %v5658_v35 }
 0x16f   : > { %v4585_v40 = vpop.eup %4584  ;;  %v3665_v62 = vmul.f32 0.5, %v3649_v51  ;;  %v3642_v39 = vadd.f32 1.0, %v4583_v5  ;;  %3819 = vmatprep.mubr.f32.mxu1 %v4915_v19  ;;  %v4916_v5 = vmov 1966171168  }
 0x170   : > { %4279 = vmatprep.subr.bf16.mxu0 %v4278_v41  ;;  %v3646_v25 = vadd.f32 1.0, %v4585_v40  ;;  %v825_v41 = vunpack.c.l.s4 %v4916_v5 }
 0x171   : > { %v4587_v48 = vpop.eup %4586  ;;  %v4286_v36 = vpack.c.bf16 %v3665_v62, %v3661_v0  ;;  %v3658_v44 = vmul.f32 0.5, %v3642_v39 }
 0x172   : > { %v4589_v29 = vpop.eup %4588  ;;  %v3662_v33 = vmul.f32 0.5, %v3646_v25  ;;  %v3644_v15 = vadd.f32 1.0, %v4587_v48 }
 0x173   : > { %4287 = vmatprep.subr.bf16.mxu1 %v4286_v36  ;;  %v3648_v58 = vadd.f32 1.0, %v4589_v29 }
 0x174   : > { %v4280_v43 = vpack.c.bf16 %v3662_v33, %v3658_v44  ;;  %v3660_v60 = vmul.f32 0.5, %v3644_v15 }
 0x175   : > { %v3664_v34 = vmul.f32 0.5, %v3648_v58 }
 0x176   : > { %4281 = vmatpush1.bf16.msra.mxu0 %v4280_v43 }
 0x177   : > { %v4288_v38 = vpack.c.bf16 %v3664_v34, %v3660_v60 }
 0x179   : > { %4289 = vmatpush1.bf16.msra.mxu1 %v4288_v38  ;;  %4146 = vmatmul.mubr.msk.f32.vlgmr.msra.gmra.mrb[56].mxu0 %vm478_vm0, %v5592_v50  ;;  %v826_v38 = vunpack.c.0.s8 %v825_v41 }
 0x17a   : > { %3736 = vmatprep.mubr.f32.mxu0 %v4915_v19 }
 0x17c   : > { %4150 = vmatmul.mubr.msk.f32.vlgmr.msra.gmra.mrb[56].mxu1 %vm478_vm0, %v5592_v50  ;;  %v5839_v50 = vpop.permute.xlu0 %460 }
 0x17d   : > { %3825 = vmatprep.mubr.f32.mxu1 %v4915_v19  ;;  %4147 = vmatmul.mubr.msk.f32.gmra.mrb[58].mxu0 %vm478_vm0, %v5606_v12 }
 0x17e   : > { %3742 = vmatprep.mubr.f32.mxu0 %v4915_v19 }
 0x180   : > { %4151 = vmatmul.mubr.msk.f32.gmra.mrb[58].mxu1 %vm478_vm0, %v5606_v12  ;;  %v5841_v54 = vpop.permute.xlu0 %470 }
 0x181   : > { %3831 = vmatprep.mubr.f32.mxu1 %v4915_v19  ;;  %4148 = vmatmul.mubr.msk.f32.gmra.mrb[60].mxu0 %vm478_vm0, %v5641_v49 }
 0x182   : > { %3748 = vmatprep.mubr.f32.mxu0 %v4915_v19 }
 0x184   : > { %4152 = vmatmul.mubr.msk.f32.gmra.mrb[60].mxu1 %vm478_vm0, %v5641_v49  ;;  %v5851_v57 = vpop.permute.xlu0 %735 }
 0x185   : > { %3837 = vmatprep.mubr.f32.mxu1 %v4915_v19  ;;  %4149 = vmatmul.mubr.msk.f32.gmra.mrb[62].mxu0 %vm478_vm0, %v5658_v35  ;;  %6662 = vst [vmem:[#allocation6_spill] sm:$0xff] %v5851_v57 }
 0x188   : > { %4153 = vmatmul.mubr.msk.f32.gmra.mrb[62].mxu1 %vm478_vm0, %v5658_v35  ;;  %v5861_v16 = vpop.permute.xlu0 %745 }
 0x196   : > { %v557_v12 = vpop.f32.mrb[0].mxu0 }
 0x197   : > { %v558_v30 = vadd.f32 %v557_v12, %v5839_v50  ;;  %v559_v17 = vpop.f32.mrb[1].mxu0 }
 0x198   : > { %v646_v2 = vpop.f32.mrb[0].mxu1  ;;  %v560_v31 = vadd.f32 %v559_v17, %v5839_v50 }
 0x199   : > { %v669_v49 = vmul.f32 0.5, %v558_v30  ;;  %v647_v19 = vadd.f32 %v646_v2, %v5839_v50  ;;  %v648_v55 = vpop.f32.mrb[1].mxu1  ;;  %v808_v2 = vpop.permute.xlu0 %807 }
 0x19a   : > { %v670_v13 = vmul.f32 0.5, %v560_v31  ;;  %v649_v35 = vadd.f32 %v648_v55, %v5839_v50  ;;  %v563_v23 = vpop.f32.mrb[2].mxu0 }
 0x19b   : > { %4590 = vtanh.f32 %v669_v49  ;;  %v671_v45 = vmul.f32 0.5, %v647_v19  ;;  %v564_v28 = vadd.f32 %v563_v23, %v5846_v63  ;;  %v565_v1 = vpop.f32.mrb[3].mxu0 }
 0x19c   : > { %4592 = vtanh.f32 %v670_v13  ;;  %v672_v26 = vmul.f32 0.5, %v649_v35  ;;  %v652_v47 = vpop.f32.mrb[2].mxu1  ;;  %v566_v9 = vadd.f32 %v565_v1, %v5846_v63 }
 0x19d   : > { %4594 = vtanh.f32 %v671_v45  ;;  %v673_v37 = vmul.f32 0.5, %v564_v28  ;;  %v653_v32 = vadd.f32 %v652_v47, %v5846_v63  ;;  %v654_v22 = vpop.f32.mrb[3].mxu1  ;;  %v5871_v47 = vrot.slane %v808_v2, %v5076_v24 }
 0x19e   : > { %4596 = vtanh.f32 %v672_v26  ;;  %v674_v4 = vmul.f32 0.5, %v566_v9  ;;  %v655_v61 = vadd.f32 %v654_v22, %v5846_v63  ;;  %v569_v56 = vpop.f32.mrb[4].mxu0  ;;  %v5868_v26 = vsub.s32 %v826_v38, %v5062_v21  ;;  %v5873_v22 = vpop.permute.xlu1 %740 }
 0x19f   : > { %4598 = vtanh.f32 %v673_v37  ;;  %v675_v8 = vmul.f32 0.5, %v653_v32  ;;  %v570_v59 = vadd.f32 %v569_v56, %v5841_v54  ;;  %v571_v7 = vpop.f32.mrb[5].mxu0 }
 0x1a0   : > { %4600 = vtanh.f32 %v674_v4  ;;  %v676_v11 = vmul.f32 0.5, %v655_v61  ;;  %v658_v27 = vpop.f32.mrb[4].mxu1  ;;  %v572_v14 = vadd.f32 %v571_v7, %v5841_v54 }
 0x1a1   : > { %4602 = vtanh.f32 %v675_v8  ;;  %v677_v46 = vmul.f32 0.5, %v570_v59  ;;  %v659_v42 = vadd.f32 %v658_v27, %v5841_v54  ;;  %v660_v52 = vpop.f32.mrb[5].mxu1 }
 0x1a2   : > { %4604 = vtanh.f32 %v676_v11  ;;  %v678_v53 = vmul.f32 0.5, %v572_v14  ;;  %v661_v3 = vadd.f32 %v660_v52, %v5841_v54  ;;  %v575_v10 = vpop.f32.mrb[6].mxu0 }
 0x1a3   : > { %4606 = vtanh.f32 %v677_v46  ;;  %v679_v18 = vmul.f32 0.5, %v659_v42  ;;  %v576_v20 = vadd.f32 %v575_v10, %v5858_v6  ;;  %v577_v51 = vpop.f32.mrb[7].mxu0 }
 0x1a4   : > { %4608 = vtanh.f32 %v678_v53  ;;  %v680_v0 = vmul.f32 0.5, %v661_v3  ;;  %v664_v40 = vpop.f32.mrb[6].mxu1  ;;  %v578_v62 = vadd.f32 %v577_v51, %v5858_v6 }
 0x1a5   : > { %v4591_v39 = vpop.eup %4590  ;;  %4610 = vtanh.f32 %v679_v18  ;;  %v681_v25 = vmul.f32 0.5, %v576_v20  ;;  %v665_v48 = vadd.f32 %v664_v40, %v5858_v6  ;;  %v666_v36 = vpop.f32.mrb[7].mxu1 }
 0x1a6   : > { %v4593_v44 = vpop.eup %4592  ;;  %v701_v29 = vadd.f32 1.0, %v4591_v39  ;;  %4612 = vtanh.f32 %v680_v0  ;;  %v682_v33 = vmul.f32 0.5, %v578_v62  ;;  %v667_v15 = vadd.f32 %v666_v36, %v5858_v6 }
 0x1a7   : > { %v4595_v58 = vpop.eup %4594  ;;  %v702_v43 = vadd.f32 1.0, %v4593_v44  ;;  %4614 = vtanh.f32 %v681_v25  ;;  %v683_v60 = vmul.f32 0.5, %v665_v48 }
 0x1a8   : > { %v4597_v34 = vpop.eup %4596  ;;  %v703_v12 = vadd.f32 1.0, %v4595_v58  ;;  %4616 = vtanh.f32 %v682_v33  ;;  %v684_v30 = vmul.f32 0.5, %v667_v15  ;;  %v717_v31 = vmul.f32 0.5, %v701_v29 }
 0x1a9   : > { %v4599_v17 = vpop.eup %4598  ;;  %v718_v49 = vmul.f32 0.5, %v702_v43  ;;  %v704_v19 = vadd.f32 1.0, %v4597_v34  ;;  %4618 = vtanh.f32 %v683_v60 }
 0x1aa   : > { %v4601_v55 = vpop.eup %4600  ;;  %v719_v13 = vmul.f32 0.5, %v703_v12  ;;  %v705_v35 = vadd.f32 1.0, %v4599_v17  ;;  %4620 = vtanh.f32 %v684_v30  ;;  %v753_v4 = vmul.f32 %v5851_v57, %v717_v31 }
 0x1ab   : > { %v4603_v23 = vpop.eup %4602  ;;  %v720_v45 = vmul.f32 0.5, %v704_v19  ;;  %v706_v28 = vadd.f32 1.0, %v4601_v55  ;;  %v754_v61 = vmul.f32 %v5851_v57, %v718_v49  ;;  %v5886_v19 = vpop.permute.xlu1 %750 }
 0x1ac   : > { %v4605_v1 = vpop.eup %4604  ;;  %v721_v9 = vmul.f32 0.5, %v705_v35  ;;  %v707_v37 = vadd.f32 1.0, %v4603_v23  ;;  %v755_v7 = vmul.f32 %v5851_v57, %v719_v13 }
 0x1ad   : > { %v4607_v32 = vpop.eup %4606  ;;  %v722_v56 = vmul.f32 0.5, %v706_v28  ;;  %v708_v8 = vadd.f32 1.0, %v4605_v1  ;;  %v756_v14 = vmul.f32 %v5851_v57, %v720_v45 }
 0x1ae   : > { %v4609_v59 = vpop.eup %4608  ;;  %v757_v21 = vmul.f32 %v5873_v22, %v721_v9  ;;  %v723_v11 = vmul.f32 0.5, %v707_v37  ;;  %v709_v27 = vadd.f32 1.0, %v4607_v32 }
 0x1af   : > { %v4611_v24 = vpop.eup %4610  ;;  %v758_v46 = vmul.f32 %v5873_v22, %v722_v56  ;;  %v724_v42 = vmul.f32 0.5, %v708_v8  ;;  %v710_v52 = vadd.f32 1.0, %v4609_v59 }
 0x1b0   : > { %v4613_v53 = vpop.eup %4612  ;;  %v769_v3 = vadd.f32 %v757_v21, %v753_v4  ;;  %v759_v10 = vmul.f32 %v5873_v22, %v723_v11  ;;  %v725_v18 = vmul.f32 0.5, %v709_v27  ;;  %v711_v20 = vadd.f32 1.0, %v4611_v24  ;;  %v1038_v51 = vpop.f32.mrb[8].mxu0 }
 0x1b1   : > { %v4615_v5 = vpop.eup %4614  ;;  %v778_v41 = vadd.f32 %v758_v46, %v754_v61  ;;  %v760_v0 = vmul.f32 %v5873_v22, %v724_v42  ;;  %v726_v40 = vmul.f32 0.5, %v710_v52  ;;  %v712_v62 = vadd.f32 1.0, %v4613_v53  ;;  %v1040_v39 = vpop.f32.mrb[9].mxu0 }
 0x1b2   : > { %v4617_v25 = vpop.eup %4616  ;;  %v787_v48 = vadd.f32 %v759_v10, %v755_v7  ;;  %v761_v36 = vmul.f32 %v5861_v16, %v725_v18  ;;  %v727_v44 = vmul.f32 0.5, %v711_v20  ;;  %v713_v29 = vadd.f32 1.0, %v4615_v5 }
 0x1b3   : > { %v4619_v33 = vpop.eup %4618  ;;  %v796_v15 = vadd.f32 %v760_v0, %v756_v14  ;;  %v762_v58 = vmul.f32 %v5861_v16, %v726_v40  ;;  %v728_v43 = vmul.f32 0.5, %v712_v62  ;;  %v714_v60 = vadd.f32 1.0, %v4617_v25  ;;  %v1127_v34 = vpop.f32.mrb[8].mxu1 }
 0x1b4   : > { %v4621_v38 = vpop.eup %4620  ;;  %v770_v12 = vadd.f32 %v769_v3, %v761_v36  ;;  %v763_v30 = vmul.f32 %v5861_v16, %v727_v44  ;;  %v729_v17 = vmul.f32 0.5, %v713_v29  ;;  %v715_v2 = vadd.f32 1.0, %v4619_v33  ;;  %v1129_v31 = vpop.f32.mrb[9].mxu1 }
 0x1b5   : > { %v1044_v49 = vpop.f32.mrb[10].mxu0  ;;  %v779_v55 = vadd.f32 %v778_v41, %v762_v58  ;;  %v764_v13 = vmul.f32 %v5861_v16, %v728_v43  ;;  %v730_v35 = vmul.f32 0.5, %v714_v60  ;;  %v716_v23 = vadd.f32 1.0, %v4621_v38 }
 0x1b6   : > { %v1046_v45 = vpop.f32.mrb[11].mxu0  ;;  %v788_v28 = vadd.f32 %v787_v48, %v763_v30  ;;  %v765_v1 = vmul.f32 %v5886_v19, %v729_v17  ;;  %v731_v9 = vmul.f32 0.5, %v715_v2  ;;  %v1039_v37 = vadd.f32 %v1038_v51, %v5839_v50 }
 0x1b7   : > { %v797_v32 = vadd.f32 %v796_v15, %v764_v13  ;;  %v766_v4 = vmul.f32 %v5886_v19, %v730_v35  ;;  %v732_v61 = vmul.f32 0.5, %v716_v23  ;;  %v1128_v56 = vadd.f32 %v1127_v34, %v5839_v50  ;;  %v1133_v8 = vpop.f32.mrb[10].mxu1 }
 0x1b8   : > { %v771_v59 = vadd.f32 %v770_v12, %v765_v1  ;;  %v767_v7 = vmul.f32 %v5886_v19, %v731_v9  ;;  %v1150_v21 = vmul.f32 0.5, %v1039_v37  ;;  %v1041_v11 = vadd.f32 %v1040_v39, %v5839_v50  ;;  %v1135_v27 = vpop.f32.mrb[11].mxu1  ;;  %v1050_v24 = vpop.f32.mrb[12].mxu0 }
 0x1b9   : > { %v780_v14 = vadd.f32 %v779_v55, %v766_v4  ;;  %v768_v46 = vmul.f32 %v5886_v19, %v732_v61  ;;  %v1152_v42 = vmul.f32 0.5, %v1128_v56  ;;  %v1130_v52 = vadd.f32 %v1129_v31, %v5839_v50  ;;  %v1052_v53 = vpop.f32.mrb[13].mxu0 }
 0x1ba   : > { %v772_v3 = vrot.slane %v771_v59, 4  ;;  %v789_v10 = vadd.f32 %v788_v28, %v767_v7  ;;  %4622 = vtanh.f32 %v1150_v21  ;;  %v1151_v18 = vmul.f32 0.5, %v1041_v11 }
 0x1bb   : > { %v781_v20 = vrot.slane %v780_v14, 4  ;;  %v798_v51 = vadd.f32 %v797_v32, %v768_v46  ;;  %4624 = vtanh.f32 %v1152_v42  ;;  %v1153_v5 = vmul.f32 0.5, %v1130_v52  ;;  %v1139_v41 = vpop.f32.mrb[12].mxu1 }
 0x1bc   : > { %v773_v0 = vadd.f32 %v772_v3, %v771_v59  ;;  %v790_v40 = vrot.slane %v789_v10, 4  ;;  %4626 = vtanh.f32 %v1151_v18  ;;  %v1045_v62 = vadd.f32 %v1044_v49, %v5846_v63  ;;  %v5898_v39 = vpop.f32.mrb[13].mxu1  ;;  %v5900_v25 = vpop.f32.mrb[14].mxu0 }
 0x1bd   : > { %v782_v48 = vadd.f32 %v781_v20, %v780_v14  ;;  %v799_v36 = vrot.slane %v798_v51, 4  ;;  %4628 = vtanh.f32 %v1153_v5  ;;  %v1134_v44 = vadd.f32 %v1133_v8, %v5846_v63  ;;  %v5903_v29 = vpop.f32.mrb[15].mxu0 }
 0x1be   : > { %v774_v33 = vrot.slane %v773_v0, 2  ;;  %v791_v15 = vadd.f32 %v790_v40, %v789_v10  ;;  %v1154_v58 = vmul.f32 0.5, %v1045_v62  ;;  %v1047_v43 = vadd.f32 %v1046_v45, %v5846_v63 }
 0x1bf   : > { %v783_v60 = vrot.slane %v782_v48, 2  ;;  %v800_v34 = vadd.f32 %v799_v36, %v798_v51  ;;  %v1156_v38 = vmul.f32 0.5, %v1134_v44  ;;  %v1136_v12 = vadd.f32 %v1135_v27, %v5846_v63  ;;  %v5907_v30 = vpop.f32.mrb[14].mxu1 }
 0x1c0   : > { %v775_v17 = vadd.f32 %v774_v33, %v773_v0  ;;  %v792_v2 = vrot.slane %v791_v15, 2  ;;  %4630 = vtanh.f32 %v1154_v58  ;;  %v1155_v31 = vmul.f32 0.5, %v1047_v43  ;;  %v5909_v49 = vpop.f32.mrb[15].mxu1 }
 0x1c1   : > { %v784_v55 = vadd.f32 %v783_v60, %v782_v48  ;;  %v801_v13 = vrot.slane %v800_v34, 2  ;;  %4632 = vtanh.f32 %v1156_v38  ;;  %v1157_v35 = vmul.f32 0.5, %v1136_v12 }
 0x1c2   : > { %v776_v23 = vrot.slane %v775_v17, 1  ;;  %v793_v28 = vadd.f32 %v792_v2, %v791_v15  ;;  %4634 = vtanh.f32 %v1155_v31  ;;  %v1051_v45 = vadd.f32 %v1050_v24, %v5841_v54 }
 0x1c3   : > { %v785_v1 = vrot.slane %v784_v55, 1  ;;  %v802_v9 = vadd.f32 %v801_v13, %v800_v34  ;;  %4636 = vtanh.f32 %v1157_v35  ;;  %v1140_v37 = vadd.f32 %v1139_v41, %v5841_v54 }
 0x1c4   : > { %v4623_v32 = vpop.eup %4622  ;;  %v777_v4 = vadd.f32 %v776_v23, %v775_v17  ;;  %v794_v61 = vrot.slane %v793_v28, 1  ;;  %v1158_v56 = vmul.f32 0.5, %v1051_v45  ;;  %v1053_v8 = vadd.f32 %v1052_v53, %v5841_v54 }
 0x1c5   : > { %v4625_v59 = vpop.eup %4624  ;;  %v786_v7 = vadd.f32 %v785_v1, %v784_v55  ;;  %v803_v21 = vrot.slane %v802_v9, 1  ;;  %v1182_v11 = vadd.f32 1.0, %v4623_v32  ;;  %v1160_v27 = vmul.f32 0.5, %v1140_v37 }
 0x1c6   : > { %v4627_v14 = vpop.eup %4626  ;;  %v814_v46 = vadd.f32 %v5871_v47, %v777_v4  ;;  %v795_v24 = vadd.f32 %v794_v61, %v793_v28  ;;  %v1184_v42 = vadd.f32 1.0, %v4625_v59  ;;  %4638 = vtanh.f32 %v1158_v56 }
 0x1c7   : > { %v4629_v52 = vpop.eup %4628  ;;  %v815_v3 = vadd.f32 %v5871_v47, %v786_v7  ;;  %v804_v10 = vadd.f32 %v803_v21, %v802_v9  ;;  %v1198_v18 = vmul.f32 0.5, %v1182_v11  ;;  %v1183_v20 = vadd.f32 1.0, %v4627_v14  ;;  %v5916_v51 = vpop.f32.mrb[16].mxu0 }
 0x1c8   : > { %v816_v53 = vadd.f32 %v5871_v47, %v795_v24  ;;  %v6663_v5 = vlaneseq  ;;  %v1200_v0 = vmul.f32 0.5, %v1184_v42  ;;  %v1185_v40 = vadd.f32 1.0, %v4629_v52  ;;  %v5924_v62 = vpop.f32.mrb[17].mxu0 }
 0x1c9   : > { %4640 = vtanh.f32 %v1160_v27  ;;  %v822_v48 = vcombine.low %v814_v46, %v815_v3  ;;  %v817_v36 = vadd.f32 %v5871_v47, %v804_v10  ;;  %v1214_v44 = vmul.f32 %v1198_v18, %v5851_v57 }
 0x1ca   : > { %vm5920_vm1 = vcmp.lt.s32.totalorder %v6663_v5, 512  ;;  %v1199_v33 = vmul.f32 0.5, %v1183_v20  ;;  %v4631_v15 = vpop.eup %4630  ;;  %v1216_v58 = vmul.f32 %v1200_v0, %v5851_v57  ;;  %v1201_v43 = vmul.f32 0.5, %v1185_v40 }
 0x1cb   : > { %v1159_v60 = vmul.f32 0.5, %v1053_v8  ;;  %v1142_v34 = vadd.f32 %v5898_v39, %v5841_v54  ;;  %v4633_v38 = vpop.eup %4632  ;;  %v830_v12 = vrot.slane %v822_v48, %v5868_v26  ;;  %v823_v17 = vcombine.low %v816_v53, %v817_v36  ;;  %v5934_v55 = vpop.f32.mrb[18].mxu0 }
 0x1cc   : > { %v1215_v2 = vmul.f32 %v1199_v33, %v5851_v57  ;;  %v1186_v31 = vadd.f32 1.0, %v4631_v15  ;;  %v4635_v13 = vpop.eup %4634  ;;  %v1217_v35 = vmul.f32 %v1201_v43, %v5851_v57  ;;  %v1188_v23 = vadd.f32 1.0, %v4633_v38  ;;  %v1576_v45 = vpop.f32.mrb[16].mxu1 }
 0x1cd   : > { %4642 = vtanh.f32 %v1159_v60  ;;  %v1161_v28 = vmul.f32 0.5, %v1142_v34  ;;  %v5937_v1 = vpop.f32.mrb[19].mxu0  ;;  %v4637_v9 = vpop.eup %4636  ;;  %v837_v39 = vrot.slane %v823_v17, %v5868_v26  ;;  %v1187_v32 = vadd.f32 1.0, %v4635_v13 }
 0x1ce   : > { %v1202_v37 = vmul.f32 0.5, %v1186_v31  ;;  %v1057_v4 = vadd.f32 %v5900_v25, %v5858_v6  ;;  %v1578_v61 = vpop.f32.mrb[17].mxu1  ;;  %v1204_v56 = vmul.f32 0.5, %v1188_v23  ;;  %v1189_v8 = vadd.f32 1.0, %v4637_v9 }
 0x1cf   : > { %4644 = vtanh.f32 %v1161_v28  ;;  %v1146_v59 = vadd.f32 %v5907_v30, %v5858_v6  ;;  %v838_v7 = vcombine.low %v830_v12, %v837_v39  ;;  %v1203_v11 = vmul.f32 0.5, %v1187_v32  ;;  %v5949_v14 = vpop.f32.mrb[20].mxu0 }
 0x1d0   : > { %v1218_v21 = vmul.f32 %v1202_v37, %v5873_v22  ;;  %v1162_v27 = vmul.f32 0.5, %v1057_v4  ;;  %v4639_v46 = vpop.eup %4638  ;;  %v1220_v24 = vmul.f32 %v1204_v56, %v5873_v22  ;;  %v1205_v42 = vmul.f32 0.5, %v1189_v8  ;;  %v1582_v3 = vpop.f32.mrb[18].mxu1 }
 0x1d1   : > { %v1164_v25 = vmul.f32 0.5, %v1146_v59  ;;  %v1059_v52 = vadd.f32 %v5903_v29, %v5858_v6  ;;  %v5954_v10 = vpop.f32.mrb[21].mxu0  ;;  %v845_v30 = vrot.slane %v838_v7, %v5868_v26  ;;  %v1219_v20 = vmul.f32 %v1203_v11, %v5873_v22  ;;  %v1584_v5 = vpop.f32.mrb[19].mxu1 }
 0x1d2   : > { %v1230_v18 = vadd.f32 %v1218_v21, %v1214_v44  ;;  %v1190_v53 = vadd.f32 1.0, %v4639_v46  ;;  %v1248_v40 = vadd.f32 %v1220_v24, %v1216_v58  ;;  %v1221_v48 = vmul.f32 %v1205_v42, %v5873_v22 }
 0x1d3   : > { %v4641_v0 = vpop.eup %4640  ;;  %4646 = vtanh.f32 %v1162_v27  ;;  %v1163_v36 = vmul.f32 0.5, %v1059_v52  ;;  %851 = vst.msk [vmem:[%s5960_s24] ss:$8 sm:$0xf] %vm5920_vm1, %v845_v30  ;;  %v1239_v29 = vadd.f32 %v1219_v20, %v1215_v2  ;;  %v1148_v43 = vadd.f32 %v5909_v49, %v5858_v6 }
 0x1d4   : > { %v1206_v33 = vmul.f32 0.5, %v1190_v53  ;;  %v1192_v15 = vadd.f32 1.0, %v4641_v0  ;;  %4648 = vtanh.f32 %v1164_v25  ;;  %v1257_v44 = vadd.f32 %v1221_v48, %v1217_v35  ;;  %v1588_v60 = vpop.f32.mrb[20].mxu1  ;;  %v5969_v34 = vpop.f32.mrb[22].mxu0 }
 0x1d5   : > { %4650 = vtanh.f32 %v1163_v36  ;;  %v1488_v58 = vadd.f32 %v5916_v51, %v5839_v50  ;;  %v1577_v17 = vadd.f32 %v1576_v45, %v5839_v50  ;;  %v1490_v2 = vadd.f32 %v5924_v62, %v5839_v50  ;;  %v1590_v31 = vpop.f32.mrb[21].mxu1  ;;  %v5975_v13 = vpop.f32.mrb[23].mxu0 }
 0x1d6   : > { %v1222_v38 = vmul.f32 %v1206_v33, %v5861_v16  ;;  %v1208_v12 = vmul.f32 0.5, %v1192_v15  ;;  %v1165_v23 = vmul.f32 0.5, %v1148_v43  ;;  %v1579_v28 = vadd.f32 %v1578_v61, %v5839_v50 }
 0x1d7   : > { %v4643_v35 = vpop.eup %4642  ;;  %v1599_v49 = vmul.f32 0.5, %v1488_v58  ;;  %v1494_v51 = vadd.f32 %v5934_v55, %v5846_v63  ;;  %v1601_v32 = vmul.f32 0.5, %v1577_v17  ;;  %v1600_v4 = vmul.f32 0.5, %v1490_v2 }
 0x1d8   : > { %v1231_v9 = vadd.f32 %v1230_v18, %v1222_v38  ;;  %v1224_v39 = vmul.f32 %v1208_v12, %v5861_v16  ;;  %v1191_v37 = vadd.f32 1.0, %v4643_v35  ;;  %4652 = vtanh.f32 %v1165_v23  ;;  %v5981_v8 = vpop.f32.mrb[22].mxu1 }
 0x1d9   : > { %v4645_v45 = vpop.eup %4644  ;;  %v1602_v62 = vmul.f32 0.5, %v1579_v28  ;;  %v1603_v56 = vmul.f32 0.5, %v1494_v51  ;;  %4654 = vtanh.f32 %v1599_v49  ;;  %v5983_v61 = vpop.f32.mrb[23].mxu1  ;;  %v1583_v55 = vadd.f32 %v1582_v3, %v5846_v63 }
 0x1da   : > { %v1249_v59 = vadd.f32 %v1248_v40, %v1224_v39  ;;  %v1207_v7 = vmul.f32 0.5, %v1191_v37  ;;  %v1193_v21 = vadd.f32 1.0, %v4645_v45  ;;  %4656 = vtanh.f32 %v1601_v32 }
 0x1db   : > { %v1496_v11 = vadd.f32 %v5937_v1, %v5846_v63  ;;  %v1585_v27 = vadd.f32 %v1584_v5, %v5846_v63  ;;  %4658 = vtanh.f32 %v1600_v4  ;;  %v1500_v42 = vadd.f32 %v5949_v14, %v5841_v54 }
 0x1dc   : > { %v1223_v46 = vmul.f32 %v1207_v7, %v5861_v16  ;;  %v1209_v24 = vmul.f32 0.5, %v1193_v21  ;;  %4660 = vtanh.f32 %v1602_v62  ;;  %v1605_v52 = vmul.f32 0.5, %v1583_v55 }
 0x1dd   : > { %v4647_v25 = vpop.eup %4646  ;;  %v1604_v30 = vmul.f32 0.5, %v1496_v11  ;;  %v1606_v18 = vmul.f32 0.5, %v1585_v27  ;;  %4662 = vtanh.f32 %v1603_v56  ;;  %v1607_v40 = vmul.f32 0.5, %v1500_v42 }
 0x1de   : > { %v4649_v20 = vpop.eup %4648  ;;  %v1240_v53 = vadd.f32 %v1239_v29, %v1223_v46  ;;  %v1225_v3 = vmul.f32 %v1209_v24, %v5861_v16  ;;  %v1194_v0 = vadd.f32 1.0, %v4647_v25  ;;  %4664 = vtanh.f32 %v1605_v52 }
 0x1df   : > { %v4651_v1 = vpop.eup %4650  ;;  %v1196_v5 = vadd.f32 1.0, %v4649_v20  ;;  %v1589_v48 = vadd.f32 %v1588_v60, %v5841_v54  ;;  %4666 = vtanh.f32 %v1604_v30  ;;  %v1502_v29 = vadd.f32 %v5954_v10, %v5841_v54 }
 0x1e0   : > { %v1258_v36 = vadd.f32 %v1257_v44, %v1225_v3  ;;  %v1210_v33 = vmul.f32 0.5, %v1194_v0  ;;  %v1195_v14 = vadd.f32 1.0, %v4651_v1  ;;  %4668 = vtanh.f32 %v1606_v18 }
 0x1e1   : > { %v1212_v15 = vmul.f32 0.5, %v1196_v5  ;;  %v1609_v43 = vmul.f32 0.5, %v1589_v48  ;;  %4670 = vtanh.f32 %v1607_v40  ;;  %v1591_v12 = vadd.f32 %v1590_v31, %v5841_v54 }
 0x1e2   : > { %v1226_v58 = vmul.f32 %v1210_v33, %v5886_v19  ;;  %v1211_v38 = vmul.f32 0.5, %v1195_v14  ;;  %v4653_v17 = vpop.eup %4652  ;;  %v1608_v44 = vmul.f32 0.5, %v1502_v29  ;;  %v1506_v60 = vadd.f32 %v5969_v34, %v5858_v6  ;;  %v6001_v35 = vpop.f32.mrb[24].mxu0 }
 0x1e3   : > { %v1228_v2 = vmul.f32 %v1212_v15, %v5886_v19  ;;  %4672 = vtanh.f32 %v1609_v43  ;;  %v4655_v23 = vpop.eup %4654  ;;  %v1197_v28 = vadd.f32 1.0, %v4653_v17  ;;  %v1610_v51 = vmul.f32 0.5, %v1591_v12  ;;  %v6004_v39 = vpop.f32.mrb[25].mxu0 }
 0x1e4   : > { %v1232_v49 = vadd.f32 %v1231_v9, %v1226_v58  ;;  %v1227_v10 = vmul.f32 %v1211_v38, %v5886_v19  ;;  %v4657_v37 = vpop.eup %4656  ;;  %v1631_v32 = vadd.f32 1.0, %v4655_v23  ;;  %4674 = vtanh.f32 %v1608_v44  ;;  %v6008_v4 = vpop.f32.mrb[24].mxu1 }
 0x1e5   : > { %v1250_v31 = vadd.f32 %v1249_v59, %v1228_v2  ;;  %v6006_v45 = vmul.f32 0.5, %v1506_v60  ;;  %v4659_v62 = vpop.eup %4658  ;;  %v1213_v7 = vmul.f32 0.5, %v1197_v28  ;;  %v1633_v21 = vadd.f32 1.0, %v4657_v37  ;;  %v6010_v9 = vpop.f32.mrb[25].mxu1 }
 0x1e6   : > { %v1233_v34 = vrot.slane %v1232_v49, 4  ;;  %v1241_v56 = vadd.f32 %v1240_v53, %v1227_v10  ;;  %v4661_v55 = vpop.eup %4660  ;;  %v1647_v27 = vmul.f32 0.5, %v1631_v32  ;;  %v1632_v46 = vadd.f32 1.0, %v4659_v62  ;;  %v6012_v24 = vpop.f32.mrb[26].mxu0 }
 0x1e7   : > { %v1251_v11 = vrot.slane %v1250_v31, 4  ;;  %4676 = vtanh.f32 %v1610_v51  ;;  %v4663_v59 = vpop.eup %4662  ;;  %v1229_v52 = vmul.f32 %v1213_v7, %v5886_v19  ;;  %v1649_v30 = vmul.f32 0.5, %v1633_v21  ;;  %v6015_v18 = vpop.f32.mrb[27].mxu0 }
 0x1e8   : > { %v1234_v42 = vadd.f32 %v1233_v34, %v1232_v49  ;;  %v1242_v25 = vrot.slane %v1241_v56, 4  ;;  %v4665_v20 = vpop.eup %4664  ;;  %v1663_v3 = vmul.f32 %v1647_v27, %v5851_v57  ;;  %v1648_v0 = vmul.f32 0.5, %v1632_v46  ;;  %v6018_v5 = vpop.f32.mrb[26].mxu1 }
 0x1e9   : > { %v1252_v53 = vadd.f32 %v1251_v11, %v1250_v31  ;;  %v1634_v1 = vadd.f32 1.0, %v4661_v55  ;;  %v4667_v40 = vpop.eup %4666  ;;  %v1259_v14 = vadd.f32 %v1258_v36, %v1229_v52  ;;  %v1665_v15 = vmul.f32 %v1649_v30, %v5851_v57  ;;  %v6021_v43 = vpop.f32.mrb[27].mxu1 }
 0x1ea   : > { %v1235_v48 = vrot.slane %v1234_v42, 2  ;;  %v1243_v33 = vadd.f32 %v1242_v25, %v1241_v56  ;;  %v4669_v29 = vpop.eup %4668  ;;  %v1664_v38 = vmul.f32 %v1648_v0, %v5851_v57  ;;  %v1635_v17 = vadd.f32 1.0, %v4663_v59  ;;  %v6024_v2 = vpop.f32.mrb[28].mxu0 }
 0x1eb   : > { %v1253_v58 = vrot.slane %v1252_v53, 2  ;;  %v1650_v12 = vmul.f32 0.5, %v1634_v1  ;;  %v4671_v44 = vpop.eup %4670  ;;  %v1260_v49 = vrot.slane %v1259_v14, 4  ;;  %v1637_v10 = vadd.f32 1.0, %v4665_v20  ;;  %v6026_v28 = vpop.f32.mrb[29].mxu0 }
 0x1ec   : > { %v1236_v60 = vadd.f32 %v1235_v48, %v1234_v42  ;;  %v1244_v23 = vrot.slane %v1243_v33, 2  ;;  %v1651_v31 = vmul.f32 0.5, %v1635_v17  ;;  %v1636_v32 = vadd.f32 1.0, %v4667_v40  ;;  %v6029_v62 = vpop.f32.mrb[28].mxu1 }
 0x1ed   : > { %v4673_v36 = vpop.eup %4672  ;;  %v1254_v51 = vadd.f32 %v1253_v58, %v1252_v53  ;;  %v1666_v37 = vmul.f32 %v1650_v12, %v5851_v57  ;;  %v1261_v7 = vadd.f32 %v1260_v49, %v1259_v14  ;;  %v1653_v21 = vmul.f32 0.5, %v1637_v10  ;;  %v6031_v55 = vpop.f32.mrb[29].mxu1 }
 0x1ee   : > { %v1237_v34 = vrot.slane %v1236_v60, 1  ;;  %v1245_v56 = vadd.f32 %v1244_v23, %v1243_v33  ;;  %v4675_v11 = vpop.eup %4674  ;;  %v1667_v46 = vmul.f32 %v1651_v31, %v5873_v22  ;;  %v1652_v59 = vmul.f32 0.5, %v1636_v32  ;;  %v6034_v25 = vpop.f32.mrb[30].mxu0 }
 0x1ef   : > { %v1255_v27 = vrot.slane %v1254_v51, 1  ;;  %v1638_v42 = vadd.f32 1.0, %v4669_v29  ;;  %v1262_v20 = vrot.slane %v1261_v7, 2  ;;  %v1669_v53 = vmul.f32 %v1653_v21, %v5873_v22  ;;  %v6037_v0 = vpop.f32.mrb[31].mxu0 }
 0x1f0   : > { %v1238_v52 = vadd.f32 %v1237_v34, %v1236_v60  ;;  %v1246_v30 = vrot.slane %v1245_v56, 1  ;;  %v1679_v48 = vadd.f32 %v1667_v46, %v1663_v3  ;;  %v1668_v33 = vmul.f32 %v1652_v59, %v5873_v22  ;;  %v6040_v58 = vpop.f32.mrb[30].mxu1 }
 0x1f1   : > { %v4677_v1 = vpop.eup %4676  ;;  %v1256_v40 = vadd.f32 %v1255_v27, %v1254_v51  ;;  %v1654_v14 = vmul.f32 0.5, %v1638_v42  ;;  %v1263_v17 = vadd.f32 %v1262_v20, %v1261_v7  ;;  %v1697_v23 = vadd.f32 %v1669_v53, %v1665_v15  ;;  %v6043_v60 = vpop.f32.mrb[31].mxu1 }
 0x1f2   : > { %v1266_v12 = vadd.f32 %v1238_v52, %v5871_v47  ;;  %v1247_v29 = vadd.f32 %v1246_v30, %v1245_v56  ;;  %v1688_v10 = vadd.f32 %v1668_v33, %v1664_v38  ;;  %v1639_v32 = vadd.f32 1.0, %v4671_v44 }
 0x1f3   : > { %v1268_v49 = vadd.f32 %v1256_v40, %v5871_v47  ;;  %v1670_v31 = vmul.f32 %v1654_v14, %v5873_v22  ;;  %v1264_v51 = vrot.slane %v1263_v17, 1  ;;  %v1641_v34 = vadd.f32 1.0, %v4673_v36 }
 0x1f4   : > { %v1267_v3 = vadd.f32 %v1247_v29, %v5871_v47  ;;  %v1640_v21 = vadd.f32 1.0, %v4675_v11  ;;  %v1655_v46 = vmul.f32 0.5, %v1639_v32  ;;  %v1642_v59 = vadd.f32 1.0, %v4677_v1 }
 0x1f5   : > { %v1706_v27 = vadd.f32 %v1670_v31, %v1666_v37  ;;  %4678 = vtanh.f32 %v6006_v45  ;;  %v1265_v15 = vadd.f32 %v1264_v51, %v1263_v17  ;;  %v1657_v7 = vmul.f32 0.5, %v1641_v34 }
 0x1f6   : > { %v1274_v56 = vcombine.low %v1266_v12, %v1267_v3  ;;  %v1656_v42 = vmul.f32 0.5, %v1640_v21  ;;  %v1671_v52 = vmul.f32 %v1655_v46, %v5861_v16  ;;  %v1658_v38 = vmul.f32 0.5, %v1642_v59 }
 0x1f7   : > { %v1595_v44 = vadd.f32 %v5981_v8, %v5858_v6  ;;  %v1508_v30 = vadd.f32 %v5975_v13, %v5858_v6  ;;  %v1269_v37 = vadd.f32 %v1265_v15, %v5871_v47  ;;  %v1673_v11 = vmul.f32 %v1657_v7, %v5861_v16 }
 0x1f8   : > { %v1282_v36 = vrot.slane %v1274_v56, %v5868_v26  ;;  %v1672_v45 = vmul.f32 %v1656_v42, %v5861_v16  ;;  %v6058_v20 = vadd.f32 %v1679_v48, %v1671_v52  ;;  %v1674_v53 = vmul.f32 %v1658_v38, %v5861_v16 }
 0x1f9   : > { %v1613_v1 = vmul.f32 0.5, %v1595_v44  ;;  %v1612_v40 = vmul.f32 0.5, %v1508_v30  ;;  %v1275_v33 = vcombine.low %v1268_v49, %v1269_v37  ;;  %v6061_v14 = vadd.f32 %v1697_v23, %v1673_v11 }
 0x1fa   : > { %v6063_v8 = vadd.f32 %v1688_v10, %v1672_v45  ;;  %v1597_v13 = vadd.f32 %v5983_v61, %v5858_v6  ;;  %v6067_v12 = vadd.f32 %v1706_v27, %v1674_v53  ;;  %v1937_v29 = vadd.f32 %v6001_v35, %v5839_v50 }
 0x1fb   : > { %4680 = vtanh.f32 %v1613_v1  ;;  %v2026_v48 = vadd.f32 %v6008_v4, %v5839_v50  ;;  %v1289_v17 = vrot.slane %v1275_v33, %v5868_v26  ;;  %v1939_v23 = vadd.f32 %v6004_v39, %v5839_v50  ;;  %v6076_v10 = vpop.f32.mrb[32].mxu0 }
 0x1fc   : > { %4682 = vtanh.f32 %v1612_v40  ;;  %v1614_v49 = vmul.f32 0.5, %v1597_v13  ;;  %v2048_v31 = vmul.f32 0.5, %v1937_v29  ;;  %v2028_v32 = vadd.f32 %v6010_v9, %v5839_v50  ;;  %v6082_v3 = vpop.f32.mrb[33].mxu0 }
 0x1fd   : > { %v2050_v61 = vmul.f32 0.5, %v2026_v48  ;;  %v1943_v35 = vadd.f32 %v6012_v24, %v5846_v63  ;;  %v1290_v4 = vcombine.low %v1282_v36, %v1289_v17  ;;  %v2049_v51 = vmul.f32 0.5, %v1939_v23 }
 0x1fe   : > { %4684 = vtanh.f32 %v1614_v49  ;;  %v2032_v34 = vadd.f32 %v6018_v5, %v5846_v63  ;;  %v2051_v39 = vmul.f32 0.5, %v2028_v32  ;;  %v1945_v46 = vadd.f32 %v6015_v18, %v5846_v63  ;;  %v6088_v9 = vpop.f32.mrb[32].mxu1 }
 0x1ff   : > { %v4679_v21 = vpop.eup %4678  ;;  %4686 = vtanh.f32 %v2048_v31  ;;  %v2052_v27 = vmul.f32 0.5, %v1943_v35  ;;  %v1297_v24 = vrot.slane %v1290_v4, %v5868_v26  ;;  %v6091_v15 = vpop.f32.mrb[33].mxu1  ;;  %v2034_v42 = vadd.f32 %v6021_v43, %v5846_v63 }
 0x200   : > { %v1643_v59 = vadd.f32 1.0, %v4679_v21  ;;  %4688 = vtanh.f32 %v2050_v61  ;;  %v2054_v56 = vmul.f32 0.5, %v2032_v34  ;;  %v6093_v7 = vpop.f32.mrb[34].mxu0  ;;  %v2053_v5 = vmul.f32 0.5, %v1945_v46 }
 0x201   : > { %4690 = vtanh.f32 %v2049_v51  ;;  %v1949_v52 = vadd.f32 %v6024_v2, %v5841_v54  ;;  %v6099_v18 = vpop.f32.mrb[35].mxu0  ;;  %4094 = vst.msk [vmem:[%s5960_s24 + $0x1] ss:$8 sm:$0xf] %vm5920_vm1, %v1297_v24  ;;  %v2038_v44 = vadd.f32 %v6029_v62, %v5841_v54  ;;  %v1951_v30 = vadd.f32 %v6026_v28, %v5841_v54 }
 0x202   : > { %v1659_v38 = vmul.f32 0.5, %v1643_v59  ;;  %4692 = vtanh.f32 %v2051_v39  ;;  %v2055_v36 = vmul.f32 0.5, %v2034_v42  ;;  %v2040_v43 = vadd.f32 %v6031_v55, %v5841_v54  ;;  %v6110_v2 = vpop.f32.mrb[34].mxu1 }
 0x203   : > { %4694 = vtanh.f32 %v2052_v27  ;;  %v2056_v37 = vmul.f32 0.5, %v1949_v52  ;;  %v2058_v45 = vmul.f32 0.5, %v2038_v44  ;;  %v2057_v53 = vmul.f32 0.5, %v1951_v30  ;;  %v6113_v1 = vpop.f32.mrb[35].mxu1 }
 0x204   : > { %v1675_v11 = vmul.f32 %v1659_v38, %v5886_v19  ;;  %4696 = vtanh.f32 %v2054_v56  ;;  %v2059_v62 = vmul.f32 0.5, %v2040_v43  ;;  %v1955_v28 = vadd.f32 %v6034_v25, %v5858_v6  ;;  %v6119_v13 = vpop.f32.mrb[36].mxu0 }
 0x205   : > { %v4681_v40 = vpop.eup %4680  ;;  %4698 = vtanh.f32 %v2053_v5  ;;  %v2044_v33 = vadd.f32 %v6040_v58, %v5858_v6  ;;  %v1957_v17 = vadd.f32 %v6037_v0, %v5858_v6  ;;  %v6124_v49 = vpop.f32.mrb[37].mxu0  ;;  %v6136_v21 = vadd.f32 %v6043_v60, %v5858_v6 }
 0x206   : > { %v4683_v55 = vpop.eup %4682  ;;  %v1681_v29 = vadd.f32 %v6058_v20, %v1675_v11  ;;  %v1645_v48 = vadd.f32 1.0, %v4681_v40  ;;  %4700 = vtanh.f32 %v2055_v36  ;;  %v2060_v31 = vmul.f32 0.5, %v1955_v28  ;;  %v6128_v25 = vpop.f32.mrb[36].mxu1 }
 0x207   : > { %v1644_v23 = vadd.f32 1.0, %v4683_v55  ;;  %4702 = vtanh.f32 %v2056_v37  ;;  %v6126_v61 = vmul.f32 0.5, %v2044_v33  ;;  %v6130_v4 = vmul.f32 0.5, %v1957_v17  ;;  %v6132_v20 = vpop.f32.mrb[37].mxu1 }
 0x208   : > { %v4685_v58 = vpop.eup %4684  ;;  %v1682_v32 = vrot.slane %v1681_v29, 4  ;;  %v1661_v35 = vmul.f32 0.5, %v1645_v48  ;;  %4704 = vtanh.f32 %v2058_v45  ;;  %v6138_v39 = vpop.f32.mrb[38].mxu0 }
 0x209   : > { %v4687_v51 = vpop.eup %4686  ;;  %v1660_v34 = vmul.f32 0.5, %v1644_v23  ;;  %v1646_v0 = vadd.f32 1.0, %v4685_v58  ;;  %4706 = vtanh.f32 %v2057_v53  ;;  %v6141_v56 = vpop.f32.mrb[39].mxu0 }
 0x20a   : > { %v4689_v27 = vpop.eup %4688  ;;  %v1683_v46 = vadd.f32 %v1682_v32, %v1681_v29  ;;  %v1677_v24 = vmul.f32 %v1661_v35, %v5886_v19  ;;  %v2080_v59 = vadd.f32 1.0, %v4687_v51  ;;  %4708 = vtanh.f32 %v2059_v62 }
 0x20b   : > { %v4691_v5 = vpop.eup %4690  ;;  %v1676_v42 = vmul.f32 %v1660_v34, %v5886_v19  ;;  %v1662_v52 = vmul.f32 0.5, %v1646_v0  ;;  %v2082_v38 = vadd.f32 1.0, %v4689_v27  ;;  %4710 = vtanh.f32 %v2060_v31  ;;  %v6145_v43 = vpop.f32.mrb[38].mxu1 }
 0x20c   : > { %v4693_v44 = vpop.eup %4692  ;;  %v1684_v30 = vrot.slane %v1683_v46, 2  ;;  %v1699_v60 = vadd.f32 %v6061_v14, %v1677_v24  ;;  %v2096_v36 = vmul.f32 0.5, %v2080_v59  ;;  %v2081_v37 = vadd.f32 1.0, %v4691_v5  ;;  %v6149_v28 = vpop.f32.mrb[39].mxu1 }
 0x20d   : > { %v4695_v11 = vpop.eup %4694  ;;  %v1690_v45 = vadd.f32 %v6063_v8, %v1676_v42  ;;  %v1678_v53 = vmul.f32 %v1662_v52, %v5886_v19  ;;  %v2098_v40 = vmul.f32 0.5, %v2082_v38  ;;  %v2083_v62 = vadd.f32 1.0, %v4693_v44  ;;  %6666 = vst [vmem:[#allocation7_spill] sm:$0xff] %v6149_v28 }
 0x20e   : > { %v4697_v33 = vpop.eup %4696  ;;  %v1685_v55 = vadd.f32 %v1684_v30, %v1683_v46  ;;  %v1700_v29 = vrot.slane %v1699_v60, 4  ;;  %v2112_v48 = vmul.f32 %v2096_v36, %v5851_v57  ;;  %v2097_v17 = vmul.f32 0.5, %v2081_v37 }
 0x20f   : > { %v4699_v14 = vpop.eup %4698  ;;  %v1691_v23 = vrot.slane %v1690_v45, 4  ;;  %v1708_v31 = vadd.f32 %v6067_v12, %v1678_v53  ;;  %v2114_v58 = vmul.f32 %v2098_v40, %v5851_v57  ;;  %v2099_v32 = vmul.f32 0.5, %v2083_v62 }
 0x210   : > { %v4701_v8 = vpop.eup %4700  ;;  %v1686_v35 = vrot.slane %v1685_v55, 1  ;;  %v1701_v51 = vadd.f32 %v1700_v29, %v1699_v60  ;;  %v2113_v34 = vmul.f32 %v2097_v17, %v5851_v57  ;;  %v2084_v0 = vadd.f32 1.0, %v4695_v11 }
 0x211   : > { %v4703_v27 = vpop.eup %4702  ;;  %v1692_v24 = vadd.f32 %v1691_v23, %v1690_v45  ;;  %v1709_v46 = vrot.slane %v1708_v31, 4  ;;  %v2115_v59 = vmul.f32 %v2099_v32, %v5851_v57  ;;  %v2086_v5 = vadd.f32 1.0, %v4697_v33 }
 0x212   : > { %v4705_v42 = vpop.eup %4704  ;;  %v1687_v52 = vadd.f32 %v1686_v35, %v1685_v55  ;;  %v1702_v38 = vrot.slane %v1701_v51, 2  ;;  %v2100_v44 = vmul.f32 0.5, %v2084_v0  ;;  %v2085_v12 = vadd.f32 1.0, %v4699_v14 }
 0x213   : > { %v4707_v30 = vpop.eup %4706  ;;  %v1693_v36 = vrot.slane %v1692_v24, 2  ;;  %v1710_v37 = vadd.f32 %v1709_v46, %v1708_v31  ;;  %v2102_v53 = vmul.f32 0.5, %v2086_v5  ;;  %v2087_v40 = vadd.f32 1.0, %v4701_v8 }
 0x214   : > { %v4709_v60 = vpop.eup %4708  ;;  %v1715_v62 = vadd.f32 %v1687_v52, %v5871_v47  ;;  %v1703_v11 = vadd.f32 %v1702_v38, %v1701_v51  ;;  %v2116_v45 = vmul.f32 %v2100_v44, %v5873_v22  ;;  %v2101_v29 = vmul.f32 0.5, %v2085_v12  ;;  %v6159_v35 = vpop.f32.mrb[40].mxu0 }
 0x215   : > { %v4711_v17 = vpop.eup %4710  ;;  %v1694_v23 = vadd.f32 %v1693_v36, %v1692_v24  ;;  %v1711_v33 = vrot.slane %v1710_v37, 2  ;;  %v2118_v55 = vmul.f32 %v2102_v53, %v5873_v22  ;;  %v2103_v32 = vmul.f32 0.5, %v2087_v40  ;;  %6667 = vst [vmem:[#allocation8_spill] sm:$0xff] %v6159_v35  ;;  %v6162_v46 = vpop.f32.mrb[41].mxu0 }
 0x216   : > { %v1704_v14 = vrot.slane %v1703_v11, 1  ;;  %v2128_v0 = vadd.f32 %v2116_v45, %v2112_v48  ;;  %v2117_v31 = vmul.f32 %v2101_v29, %v5873_v22  ;;  %v2088_v8 = vadd.f32 1.0, %v4703_v27 }
 0x217   : > { %v1695_v5 = vrot.slane %v1694_v23, 1  ;;  %v1712_v51 = vadd.f32 %v1711_v33, %v1710_v37  ;;  %v2146_v52 = vadd.f32 %v2118_v55, %v2114_v58  ;;  %v2119_v38 = vmul.f32 %v2103_v32, %v5873_v22 }
 0x218   : > { %v1705_v44 = vadd.f32 %v1704_v14, %v1703_v11  ;;  %v2137_v24 = vadd.f32 %v2117_v31, %v2113_v34  ;;  %v2104_v12 = vmul.f32 0.5, %v2088_v8  ;;  %v2090_v36 = vadd.f32 1.0, %v4705_v42  ;;  %v6165_v28 = vpop.f32.mrb[42].mxu0 }
 0x219   : > { %v1696_v53 = vadd.f32 %v1695_v5, %v1694_v23  ;;  %v1713_v40 = vrot.slane %v1712_v51, 1  ;;  %v2155_v57 = vadd.f32 %v2119_v38, %v2115_v59  ;;  %v2089_v35 = vadd.f32 1.0, %v4707_v30  ;;  %v6169_v37 = vpop.f32.mrb[43].mxu0 }
 0x21a   : > { %v1717_v48 = vadd.f32 %v1705_v44, %v5871_v47  ;;  %v2120_v27 = vmul.f32 %v2104_v12, %v5861_v16  ;;  %v2106_v45 = vmul.f32 0.5, %v2090_v36  ;;  %v2091_v29 = vadd.f32 1.0, %v4709_v60 }
 0x21b   : > { %v1716_v58 = vadd.f32 %v1696_v53, %v5871_v47  ;;  %v1714_v11 = vadd.f32 %v1713_v40, %v1712_v51  ;;  %v2105_v34 = vmul.f32 0.5, %v2089_v35  ;;  %v2092_v33 = vadd.f32 1.0, %v4711_v17  ;;  %v6174_v30 = vpop.f32.mrb[40].mxu1 }
 0x21c   : > { %v2129_v42 = vadd.f32 %v2128_v0, %v2120_v27  ;;  %v2122_v23 = vmul.f32 %v2106_v45, %v5861_v16  ;;  %v2107_v59 = vmul.f32 0.5, %v2091_v29  ;;  %4712 = vtanh.f32 %v6126_v61  ;;  %v6178_v31 = vpop.f32.mrb[41].mxu1  ;;  %v6180_v8 = vpop.f32.mrb[44].mxu0 }
 0x21d   : > { %v1723_v55 = vcombine.low %v1715_v62, %v1716_v58  ;;  %v1718_v32 = vadd.f32 %v1714_v11, %v5871_v47  ;;  %v2121_v60 = vmul.f32 %v2105_v34, %v5861_v16  ;;  %v2108_v14 = vmul.f32 0.5, %v2092_v33  ;;  %v6187_v0 = vpop.f32.mrb[45].mxu0 }
 0x21e   : > { %v6182_v35 = vadd.f32 %v2146_v52, %v2122_v23  ;;  %v2123_v17 = vmul.f32 %v2107_v59, %v5861_v16  ;;  %4714 = vtanh.f32 %v6130_v4  ;;  %v2063_v61 = vmul.f32 0.5, %v6136_v21 }
 0x21f   : > { %v1731_v62 = vrot.slane %v1723_v55, %v5868_v26  ;;  %v1724_v5 = vcombine.low %v1717_v48, %v1718_v32  ;;  %v6190_v51 = vadd.f32 %v2137_v24, %v2121_v60  ;;  %v2124_v38 = vmul.f32 %v2108_v14, %v5886_v19  ;;  %v6199_v12 = vpop.f32.mrb[42].mxu1 }
 0x220   : > { %v6193_v44 = vadd.f32 %v2155_v57, %v2123_v17  ;;  %4716 = vtanh.f32 %v2063_v61  ;;  %v2386_v52 = vadd.f32 %v6076_v10, %v5839_v50  ;;  %v2475_v4 = vadd.f32 %v6088_v9, %v5839_v50  ;;  %v6206_v57 = vpop.f32.mrb[43].mxu1  ;;  %v6208_v40 = vpop.f32.mrb[46].mxu0 }
 0x221   : > { %v1738_v21 = vrot.slane %v1724_v5, %v5868_v26  ;;  %v2130_v36 = vadd.f32 %v2129_v42, %v2124_v38  ;;  %v2388_v24 = vadd.f32 %v6082_v3, %v5839_v50  ;;  %v2477_v53 = vadd.f32 %v6091_v15, %v5839_v50  ;;  %v6214_v45 = vpop.f32.mrb[47].mxu0 }
 0x222   : > { %v2497_v48 = vmul.f32 0.5, %v2386_v52  ;;  %v2499_v10 = vmul.f32 0.5, %v2475_v4  ;;  %v2392_v9 = vadd.f32 %v6093_v7, %v5846_v63  ;;  %v2481_v27 = vadd.f32 %v6110_v2, %v5846_v63 }
 0x223   : > { %v1739_v29 = vcombine.low %v1731_v62, %v1738_v21  ;;  %v2131_v58 = vrot.slane %v2130_v36, 4  ;;  %v2498_v3 = vmul.f32 0.5, %v2388_v24  ;;  %v2500_v11 = vmul.f32 0.5, %v2477_v53  ;;  %v6218_v42 = vpop.f32.mrb[44].mxu1 }
 0x224   : > { %4718 = vtanh.f32 %v2497_v48  ;;  %v2501_v15 = vmul.f32 0.5, %v2392_v9  ;;  %v2503_v34 = vmul.f32 0.5, %v2481_v27  ;;  %v2394_v33 = vadd.f32 %v6099_v18, %v5846_v63  ;;  %v6223_v59 = vpop.f32.mrb[45].mxu1 }
 0x225   : > { %v1746_v7 = vrot.slane %v1739_v29, %v5868_v26  ;;  %v2132_v23 = vadd.f32 %v2131_v58, %v2130_v36  ;;  %4720 = vtanh.f32 %v2499_v10  ;;  %v2483_v2 = vadd.f32 %v6113_v1, %v5846_v63 }
 0x226   : > { %v4713_v55 = vpop.eup %4712  ;;  %4722 = vtanh.f32 %v2498_v3  ;;  %v2502_v32 = vmul.f32 0.5, %v2394_v33  ;;  %v2398_v60 = vadd.f32 %v6119_v13, %v5841_v54  ;;  %v2487_v18 = vadd.f32 %v6128_v25, %v5841_v54 }
 0x227   : > { %4104 = vst.msk [vmem:[%s5960_s24 + $0x2] ss:$8 sm:$0xf] %vm5920_vm1, %v1746_v7  ;;  %v2133_v14 = vrot.slane %v2132_v23, 2  ;;  %v2094_v17 = vadd.f32 1.0, %v4713_v55  ;;  %4724 = vtanh.f32 %v2500_v11  ;;  %v2504_v61 = vmul.f32 0.5, %v2483_v2 }
 0x228   : > { %v4715_v62 = vpop.eup %4714  ;;  %4726 = vtanh.f32 %v2501_v15  ;;  %v2505_v1 = vmul.f32 0.5, %v2398_v60  ;;  %v2507_v5 = vmul.f32 0.5, %v2487_v18  ;;  %v2400_v38 = vadd.f32 %v6124_v49, %v5841_v54  ;;  %v6234_v52 = vpop.f32.mrb[46].mxu1 }
 0x229   : > { %v2134_v13 = vadd.f32 %v2133_v14, %v2132_v23  ;;  %v2110_v4 = vmul.f32 0.5, %v2094_v17  ;;  %v2093_v21 = vadd.f32 1.0, %v4715_v62  ;;  %4728 = vtanh.f32 %v2503_v34  ;;  %v6236_v25 = vpop.f32.mrb[47].mxu1  ;;  %v6668_v23 = vld [vmem:[#allocation7_spill] sm:$0xff] }
 0x22a   : > { %v4717_v36 = vpop.eup %4716  ;;  %4730 = vtanh.f32 %v2502_v32  ;;  %v2506_v24 = vmul.f32 0.5, %v2400_v38  ;;  %v2489_v53 = vadd.f32 %v6132_v20, %v5841_v54  ;;  %v2404_v48 = vadd.f32 %v6138_v39, %v5858_v6 }
 0x22b   : > { %v2135_v10 = vrot.slane %v2134_v13, 1  ;;  %v2126_v49 = vmul.f32 %v2110_v4, %v5886_v19  ;;  %v2109_v9 = vmul.f32 0.5, %v2093_v21  ;;  %v2095_v27 = vadd.f32 1.0, %v4717_v36 }
 0x22c   : > { %4732 = vtanh.f32 %v2504_v61  ;;  %v6243_v29 = vmul.f32 0.5, %v2489_v53  ;;  %v6245_v58 = vmul.f32 0.5, %v2404_v48  ;;  %v2493_v3 = vadd.f32 %v6145_v43, %v5858_v6 }
 0x22d   : > { %v2136_v11 = vadd.f32 %v2135_v10, %v2134_v13  ;;  %v2148_v15 = vadd.f32 %v6182_v35, %v2126_v49  ;;  %v2125_v20 = vmul.f32 %v2109_v9, %v5886_v19  ;;  %v2111_v34 = vmul.f32 0.5, %v2095_v27 }
 0x22e   : > { %v4719_v39 = vpop.eup %4718  ;;  %4734 = vtanh.f32 %v2505_v1  ;;  %v6251_v33 = vmul.f32 0.5, %v2493_v3  ;;  %v2406_v7 = vadd.f32 %v6141_v56, %v5858_v6  ;;  %v6257_v2 = vadd.f32 %v6668_v23, %v5858_v6 }
 0x22f   : > { %v4721_v55 = vpop.eup %4720  ;;  %v6260_v43 = vadd.f32 %v2136_v11, %v5871_v47  ;;  %v2149_v32 = vrot.slane %v2148_v15, 4  ;;  %v2139_v35 = vadd.f32 %v6190_v51, %v2125_v20  ;;  %v2127_v60 = vmul.f32 %v2111_v34, %v5886_v19  ;;  %v6669_v11 = vld [vmem:[#allocation6_spill] sm:$0xff] }
 0x230   : > { %v4723_v18 = vpop.eup %4722  ;;  %v2529_v14 = vadd.f32 1.0, %v4719_v39  ;;  %v2531_v17 = vadd.f32 1.0, %v4721_v55  ;;  %4736 = vtanh.f32 %v2507_v5  ;;  %v6264_v61 = vmul.f32 0.5, %v2406_v7 }
 0x231   : > { %v4725_v56 = vpop.eup %4724  ;;  %v2150_v62 = vadd.f32 %v2149_v32, %v2148_v15  ;;  %v2140_v1 = vrot.slane %v2139_v35, 4  ;;  %v2157_v38 = vadd.f32 %v6193_v44, %v2127_v60  ;;  %v2530_v13 = vadd.f32 1.0, %v4723_v18  ;;  %v6267_v51 = vpop.f32.mrb[48].mxu0 }
 0x232   : > { %v4727_v4 = vpop.eup %4726  ;;  %v2545_v21 = vmul.f32 0.5, %v2529_v14  ;;  %v2547_v36 = vmul.f32 0.5, %v2531_v17  ;;  %v2532_v53 = vadd.f32 1.0, %v4725_v56  ;;  %4738 = vtanh.f32 %v2506_v24  ;;  %v6269_v27 = vpop.f32.mrb[49].mxu0 }
 0x233   : > { %v4729_v48 = vpop.eup %4728  ;;  %v2151_v10 = vrot.slane %v2150_v62, 2  ;;  %v2141_v49 = vadd.f32 %v2140_v1, %v2139_v35  ;;  %v2158_v9 = vrot.slane %v2157_v38, 4  ;;  %v2546_v5 = vmul.f32 0.5, %v2530_v13 }
 0x234   : > { %v4731_v3 = vpop.eup %4730  ;;  %v2561_v15 = vmul.f32 %v2545_v21, %v6669_v11  ;;  %v2563_v44 = vmul.f32 %v2547_v36, %v6669_v11  ;;  %v2548_v20 = vmul.f32 0.5, %v2532_v53  ;;  %v2533_v34 = vadd.f32 1.0, %v4727_v4  ;;  %v6274_v55 = vpop.f32.mrb[48].mxu1 }
 0x235   : > { %v2152_v39 = vadd.f32 %v2151_v10, %v2150_v62  ;;  %v2142_v7 = vrot.slane %v2141_v49, 2  ;;  %v2159_v23 = vadd.f32 %v2158_v9, %v2157_v38  ;;  %v2562_v24 = vmul.f32 %v2546_v5, %v6669_v11  ;;  %v6277_v17 = vpop.f32.mrb[49].mxu1  ;;  %v6279_v56 = vpop.f32.mrb[50].mxu0 }
 0x236   : > { %v4733_v32 = vpop.eup %4732  ;;  %v2564_v35 = vmul.f32 %v2548_v20, %v6669_v11  ;;  %v2549_v60 = vmul.f32 0.5, %v2533_v34  ;;  %v2535_v18 = vadd.f32 1.0, %v4729_v48  ;;  %v2534_v14 = vadd.f32 1.0, %v4731_v3  ;;  %6670 = vst [vmem:[#allocation7_spill] sm:$0xff] %v6279_v56  ;;  %v6281_v21 = vpop.f32.mrb[51].mxu0 }
 0x237   : > { %v2153_v1 = vrot.slane %v2152_v39, 1  ;;  %v2143_v13 = vadd.f32 %v2142_v7, %v2141_v49  ;;  %v2160_v4 = vrot.slane %v2159_v23, 2  ;;  %v2536_v62 = vadd.f32 1.0, %v4733_v32  ;;  %6671 = vst [vmem:[#allocation6_spill] sm:$0xff] %v6281_v21 }
 0x238   : > { %v4735_v38 = vpop.eup %4734  ;;  %v2565_v36 = vmul.f32 %v2549_v60, %v5873_v22  ;;  %v2551_v53 = vmul.f32 0.5, %v2535_v18  ;;  %v2550_v10 = vmul.f32 0.5, %v2534_v14  ;;  %4740 = vtanh.f32 %v6243_v29  ;;  %v6285_v20 = vpop.f32.mrb[50].mxu1 }
 0x239   : > { %v2154_v9 = vadd.f32 %v2153_v1, %v2152_v39  ;;  %v2144_v48 = vrot.slane %v2143_v13, 1  ;;  %v2161_v5 = vadd.f32 %v2160_v4, %v2159_v23  ;;  %v2552_v3 = vmul.f32 0.5, %v2536_v62  ;;  %6672 = vst [vmem:[#allocation9_spill] sm:$0xff] %v6285_v20  ;;  %v6289_v21 = vpop.f32.mrb[51].mxu1  ;;  %v6291_v60 = vpop.f32.mrb[52].mxu0 }
 0x23a   : > { %v4737_v34 = vpop.eup %4736  ;;  %v2577_v56 = vadd.f32 %v2565_v36, %v2561_v15  ;;  %v2567_v49 = vmul.f32 %v2551_v53, %v5873_v22  ;;  %v2566_v7 = vmul.f32 %v2550_v10, %v5873_v22  ;;  %v2537_v32 = vadd.f32 1.0, %v4735_v38  ;;  %6673 = vst [vmem:[#allocation10_spill] sm:$0xff] %v6289_v21  ;;  %v6295_v14 = vpop.f32.mrb[53].mxu0 }
 0x23b   : > { %v2166_v18 = vadd.f32 %v2154_v9, %v5871_v47  ;;  %v2145_v29 = vadd.f32 %v2144_v48, %v2143_v13  ;;  %v2162_v39 = vrot.slane %v2161_v5, 1  ;;  %v2568_v23 = vmul.f32 %v2552_v3, %v5873_v22 }
 0x23c   : > { %v4739_v1 = vpop.eup %4738  ;;  %v2595_v4 = vadd.f32 %v2567_v49, %v2563_v44  ;;  %v2586_v15 = vadd.f32 %v2566_v7, %v2562_v24  ;;  %v2553_v62 = vmul.f32 0.5, %v2537_v32  ;;  %v2539_v36 = vadd.f32 1.0, %v4737_v34  ;;  %v6298_v20 = vpop.f32.mrb[52].mxu1 }
 0x23d   : > { %v2165_v53 = vadd.f32 %v2145_v29, %v5871_v47  ;;  %v2163_v38 = vadd.f32 %v2162_v39, %v2161_v5  ;;  %v2604_v10 = vadd.f32 %v2568_v23, %v2564_v35  ;;  %v2538_v21 = vadd.f32 1.0, %v4739_v1  ;;  %v6303_v3 = vpop.f32.mrb[53].mxu1 }
 0x23e   : > { %v2569_v9 = vmul.f32 %v2553_v62, %v5861_v16  ;;  %v2555_v13 = vmul.f32 0.5, %v2539_v36  ;;  %4742 = vtanh.f32 %v6245_v58  ;;  %v2512_v48 = vmul.f32 0.5, %v6257_v2  ;;  %v6308_v35 = vpop.f32.mrb[54].mxu0  ;;  %v6674_v58 = vld [vmem:[#allocation8_spill] sm:$0xff] }
 0x23f   : > { %v2172_v44 = vcombine.low %v6260_v43, %v2165_v53  ;;  %v2167_v24 = vadd.f32 %v2163_v38, %v5871_v47  ;;  %v2554_v34 = vmul.f32 0.5, %v2538_v21  ;;  %4744 = vtanh.f32 %v6251_v33  ;;  %v6316_v7 = vpop.f32.mrb[55].mxu0 }
 0x240   : > { %v6310_v5 = vadd.f32 %v2577_v56, %v2569_v9  ;;  %v2571_v49 = vmul.f32 %v2555_v13, %v5861_v16  ;;  %4746 = vtanh.f32 %v6264_v61  ;;  %v2835_v2 = vadd.f32 %v6674_v58, %v5839_v50 }
 0x241   : > { %v2180_v43 = vrot.slane %v2172_v44, %v5868_v26  ;;  %v2173_v32 = vcombine.low %v2166_v18, %v2167_v24  ;;  %v2570_v21 = vmul.f32 %v2554_v34, %v5861_v16  ;;  %4748 = vtanh.f32 %v2512_v48  ;;  %v6326_v23 = vpop.f32.mrb[54].mxu1 }
 0x242   : > { %v4741_v33 = vpop.eup %4740  ;;  %v6320_v29 = vadd.f32 %v2595_v4, %v2571_v49  ;;  %v2946_v56 = vmul.f32 0.5, %v2835_v2  ;;  %v2924_v39 = vadd.f32 %v6174_v30, %v5839_v50  ;;  %v2837_v61 = vadd.f32 %v6162_v46, %v5839_v50  ;;  %v6333_v53 = vpop.f32.mrb[55].mxu1 }
 0x243   : > { %v2187_v1 = vrot.slane %v2173_v32, %v5868_v26  ;;  %v6329_v62 = vadd.f32 %v2586_v15, %v2570_v21  ;;  %v2540_v18 = vadd.f32 1.0, %v4741_v33  ;;  %v2926_v36 = vadd.f32 %v6178_v31, %v5839_v50 }
 0x244   : > { %4750 = vtanh.f32 %v2946_v56  ;;  %v2948_v4 = vmul.f32 0.5, %v2924_v39  ;;  %v2947_v38 = vmul.f32 0.5, %v2837_v61  ;;  %v2841_v30 = vadd.f32 %v6165_v28, %v5846_v63 }
 0x245   : > { %v2188_v9 = vcombine.low %v2180_v43, %v2187_v1  ;;  %v2556_v46 = vmul.f32 0.5, %v2540_v18  ;;  %v2949_v13 = vmul.f32 0.5, %v2926_v36  ;;  %v2930_v15 = vadd.f32 %v6199_v12, %v5846_v63 }
 0x246   : > { %4752 = vtanh.f32 %v2948_v4  ;;  %v2950_v48 = vmul.f32 0.5, %v2841_v30  ;;  %v2843_v31 = vadd.f32 %v6169_v37, %v5846_v63  ;;  %v2932_v44 = vadd.f32 %v6206_v57, %v5846_v63 }
 0x247   : > { %v2195_v24 = vrot.slane %v2188_v9, %v5868_v26  ;;  %v2572_v34 = vmul.f32 %v2556_v46, %v5861_v16  ;;  %4754 = vtanh.f32 %v2947_v38  ;;  %v2952_v28 = vmul.f32 0.5, %v2930_v15 }
 0x248   : > { %v4743_v49 = vpop.eup %4742  ;;  %4756 = vtanh.f32 %v2949_v13  ;;  %v2951_v58 = vmul.f32 0.5, %v2843_v31  ;;  %v2953_v2 = vmul.f32 0.5, %v2932_v44  ;;  %v2847_v12 = vadd.f32 %v6180_v8, %v5841_v54 }
 0x249   : > { %v4745_v43 = vpop.eup %4744  ;;  %4114 = vst.msk [vmem:[%s5960_s24 + $0x3] ss:$8 sm:$0xf] %vm5920_vm1, %v2195_v24  ;;  %v2605_v37 = vadd.f32 %v2604_v10, %v2572_v34  ;;  %v2541_v32 = vadd.f32 1.0, %v4743_v49  ;;  %4758 = vtanh.f32 %v2950_v48  ;;  %v2936_v57 = vadd.f32 %v6218_v42, %v5841_v54 }
 0x24a   : > { %v4747_v21 = vpop.eup %4746  ;;  %v2543_v33 = vadd.f32 1.0, %v4745_v43  ;;  %4760 = vtanh.f32 %v2952_v28  ;;  %v2954_v56 = vmul.f32 0.5, %v2847_v12  ;;  %v2849_v39 = vadd.f32 %v6187_v0, %v5841_v54 }
 0x24b   : > { %v4749_v61 = vpop.eup %4748  ;;  %v2557_v1 = vmul.f32 0.5, %v2541_v32  ;;  %v2542_v8 = vadd.f32 1.0, %v4747_v21  ;;  %4762 = vtanh.f32 %v2951_v58  ;;  %v2956_v18 = vmul.f32 0.5, %v2936_v57 }
 0x24c   : > { %v2559_v36 = vmul.f32 0.5, %v2543_v33  ;;  %v2544_v4 = vadd.f32 1.0, %v4749_v61  ;;  %4764 = vtanh.f32 %v2953_v2  ;;  %v2955_v10 = vmul.f32 0.5, %v2849_v39  ;;  %v6357_v9 = vpop.f32.mrb[56].mxu0 }
 0x24d   : > { %v2573_v38 = vmul.f32 %v2557_v1, %v5886_v19  ;;  %v2558_v30 = vmul.f32 0.5, %v2542_v8  ;;  %4766 = vtanh.f32 %v2954_v56  ;;  %v2938_v42 = vadd.f32 %v6223_v59, %v5841_v54  ;;  %v6362_v48 = vpop.f32.mrb[57].mxu0 }
 0x24e   : > { %v4751_v46 = vpop.eup %4750  ;;  %v2575_v0 = vmul.f32 %v2559_v36, %v5886_v19  ;;  %v2560_v13 = vmul.f32 0.5, %v2544_v4  ;;  %4768 = vtanh.f32 %v2956_v18  ;;  %v2853_v15 = vadd.f32 %v6208_v40, %v5858_v6 }
 0x24f   : > { %v2579_v31 = vadd.f32 %v6310_v5, %v2573_v38  ;;  %v2574_v44 = vmul.f32 %v2558_v30, %v5886_v19  ;;  %v2978_v24 = vadd.f32 1.0, %v4751_v46  ;;  %4770 = vtanh.f32 %v2955_v10  ;;  %v6370_v2 = vpop.f32.mrb[56].mxu1 }
 0x250   : > { %v4753_v34 = vpop.eup %4752  ;;  %v2597_v59 = vadd.f32 %v6320_v29, %v2575_v0  ;;  %v2576_v28 = vmul.f32 %v2560_v13, %v5886_v19  ;;  %v2957_v49 = vmul.f32 0.5, %v2938_v42  ;;  %v6368_v58 = vmul.f32 0.5, %v2853_v15  ;;  %v6373_v57 = vpop.f32.mrb[57].mxu1 }
 0x251   : > { %v4755_v12 = vpop.eup %4754  ;;  %v2580_v40 = vrot.slane %v2579_v31, 4  ;;  %v2588_v43 = vadd.f32 %v6329_v62, %v2574_v44  ;;  %v2994_v32 = vmul.f32 0.5, %v2978_v24  ;;  %v2980_v5 = vadd.f32 1.0, %v4753_v34  ;;  %v6375_v21 = vpop.f32.mrb[58].mxu0 }
 0x252   : > { %6675 = vst [vmem:[#allocation8_spill] sm:$0xff] %v6375_v21  ;;  %v4757_v33 = vpop.eup %4756  ;;  %v2598_v56 = vrot.slane %v2597_v59, 4  ;;  %v2606_v29 = vadd.f32 %v2605_v37, %v2576_v28  ;;  %v2979_v39 = vadd.f32 1.0, %v4755_v12  ;;  %4772 = vtanh.f32 %v2957_v49  ;;  %v6377_v61 = vpop.f32.mrb[59].mxu0 }
 0x253   : > { %6676 = vst [vmem:[#allocation11_spill] sm:$0xff] %v6377_v61  ;;  %v4759_v1 = vpop.eup %4758  ;;  %v2581_v8 = vadd.f32 %v2580_v40, %v2579_v31  ;;  %v2589_v18 = vrot.slane %v2588_v43, 4  ;;  %v3010_v36 = vmul.f32 %v2994_v32, %v6669_v11  ;;  %v2996_v4 = vmul.f32 0.5, %v2980_v5  ;;  %v6380_v46 = vpop.f32.mrb[58].mxu1 }
 0x254   : > { %v4761_v62 = vpop.eup %4760  ;;  %v2599_v10 = vadd.f32 %v2598_v56, %v2597_v59  ;;  %v2607_v38 = vrot.slane %v2606_v29, 4  ;;  %v2995_v30 = vmul.f32 0.5, %v2979_v39  ;;  %v2981_v42 = vadd.f32 1.0, %v4757_v33  ;;  %6677 = vst [vmem:[#allocation12_spill] sm:$0xff] %v6380_v46  ;;  %v6383_v24 = vpop.f32.mrb[59].mxu1 }
 0x255   : > { %v4763_v0 = vpop.eup %4762  ;;  %v2582_v13 = vrot.slane %v2581_v8, 2  ;;  %v2590_v37 = vadd.f32 %v2589_v18, %v2588_v43  ;;  %v3012_v15 = vmul.f32 %v2996_v4, %v6669_v11  ;;  %v2982_v44 = vadd.f32 1.0, %v4759_v1  ;;  %6678 = vst [vmem:[#allocation13_spill] sm:$0xff] %v6383_v24  ;;  %v6385_v31 = vpop.f32.mrb[60].mxu0 }
 0x256   : > { %6679 = vst [vmem:[#allocation14_spill] sm:$0xff] %v6385_v31  ;;  %v4765_v34 = vpop.eup %4764  ;;  %v2600_v28 = vrot.slane %v2599_v10, 2  ;;  %v2608_v49 = vadd.f32 %v2607_v38, %v2606_v29  ;;  %v3011_v59 = vmul.f32 %v2995_v30, %v6669_v11  ;;  %v2997_v12 = vmul.f32 0.5, %v2981_v42  ;;  %v6388_v40 = vpop.f32.mrb[61].mxu0 }
 0x257   : > { %6680 = vst [vmem:[#allocation15_spill] sm:$0xff] %v6388_v40  ;;  %v4767_v32 = vpop.eup %4766  ;;  %v2583_v5 = vadd.f32 %v2582_v13, %v2581_v8  ;;  %v2591_v33 = vrot.slane %v2590_v37, 2  ;;  %v2998_v56 = vmul.f32 0.5, %v2982_v44  ;;  %v2984_v43 = vadd.f32 1.0, %v4761_v62  ;;  %v6391_v31 = vpop.f32.mrb[60].mxu1 }
 0x258   : > { %v4769_v39 = vpop.eup %4768  ;;  %v2601_v18 = vadd.f32 %v2600_v28, %v2599_v10  ;;  %v2609_v1 = vrot.slane %v2608_v49, 2  ;;  %v3013_v4 = vmul.f32 %v2997_v12, %v6669_v11  ;;  %v2983_v24 = vadd.f32 1.0, %v4763_v0  ;;  %6681 = vst [vmem:[#allocation16_spill] sm:$0xff] %v6391_v31  ;;  %v6394_v40 = vpop.f32.mrb[61].mxu1 }
 0x259   : > { %v4771_v61 = vpop.eup %4770  ;;  %v2584_v29 = vrot.slane %v2583_v5, 1  ;;  %v2592_v38 = vadd.f32 %v2591_v33, %v2590_v37  ;;  %v3014_v30 = vmul.f32 %v2998_v56, %v5873_v22  ;;  %v3000_v42 = vmul.f32 0.5, %v2984_v43  ;;  %6682 = vst [vmem:[#allocation17_spill] sm:$0xff] %v6394_v40  ;;  %v6396_v8 = vpop.f32.mrb[62].mxu0 }
 0x25a   : > { %6683 = vst [vmem:[#allocation18_spill] sm:$0xff] %v6396_v8  ;;  %v2602_v13 = vrot.slane %v2601_v18, 1  ;;  %v2610_v62 = vadd.f32 %v2609_v1, %v2608_v49  ;;  %v2999_v44 = vmul.f32 0.5, %v2983_v24  ;;  %v2985_v10 = vadd.f32 1.0, %v4765_v34  ;;  %v6398_v28 = vpop.f32.mrb[63].mxu0 }
 0x25b   : > { %6684 = vst [vmem:[#allocation19_spill] sm:$0xff] %v6398_v28  ;;  %v2585_v12 = vadd.f32 %v2584_v29, %v2583_v5  ;;  %v2593_v0 = vrot.slane %v2592_v38, 1  ;;  %v3026_v46 = vadd.f32 %v3014_v30, %v3010_v36  ;;  %v3016_v31 = vmul.f32 %v3000_v42, %v5873_v22  ;;  %v6402_v40 = vpop.f32.mrb[62].mxu1 }
 0x25c   : > { %v4773_v21 = vpop.eup %4772  ;;  %v2603_v37 = vadd.f32 %v2602_v13, %v2601_v18  ;;  %v2611_v33 = vrot.slane %v2610_v62, 1  ;;  %v3015_v56 = vmul.f32 %v2999_v44, %v5873_v22  ;;  %v3001_v43 = vmul.f32 0.5, %v2985_v10  ;;  %v6405_v1 = vpop.f32.mrb[63].mxu1 }
 0x25d   : > { %v2613_v8 = vadd.f32 %v2585_v12, %v5871_v47  ;;  %v2594_v49 = vadd.f32 %v2593_v0, %v2592_v38  ;;  %v3044_v24 = vadd.f32 %v3016_v31, %v3012_v15  ;;  %v2986_v34 = vadd.f32 1.0, %v4767_v32 }
 0x25e   : > { %v2615_v5 = vadd.f32 %v2603_v37, %v5871_v47  ;;  %v2612_v36 = vadd.f32 %v2611_v33, %v2610_v62  ;;  %v3035_v29 = vadd.f32 %v3015_v56, %v3011_v59  ;;  %v3017_v30 = vmul.f32 %v3001_v43, %v5873_v22 }
 0x25f   : > { %v2614_v18 = vadd.f32 %v2594_v49, %v5871_v47  ;;  %v3002_v42 = vmul.f32 0.5, %v2986_v34  ;;  %v2988_v13 = vadd.f32 1.0, %v4769_v39  ;;  %v2987_v44 = vadd.f32 1.0, %v4771_v61 }
 0x260   : > { %v2616_v10 = vadd.f32 %v2612_v36, %v5871_v47  ;;  %v3053_v28 = vadd.f32 %v3017_v30, %v3013_v4  ;;  %v2989_v12 = vadd.f32 1.0, %v4773_v21  ;;  %4774 = vtanh.f32 %v6368_v58 }
 0x261   : > { %v2621_v15 = vcombine.low %v2613_v8, %v2614_v18  ;;  %v3018_v31 = vmul.f32 %v3002_v42, %v5861_v16  ;;  %v3004_v32 = vmul.f32 0.5, %v2988_v13  ;;  %v3003_v38 = vmul.f32 0.5, %v2987_v44  ;;  %v6686_v13 = vld [vmem:[#allocation9_spill] sm:$0xff]  ;;  %v6687_v44 = vld [vmem:[#allocation6_spill] sm:$0xff] }
 0x262   : > { %v2622_v62 = vcombine.low %v2615_v5, %v2616_v10  ;;  %v3005_v59 = vmul.f32 0.5, %v2989_v12  ;;  %v2942_v0 = vadd.f32 %v6234_v52, %v5858_v6  ;;  %v2855_v39 = vadd.f32 %v6214_v45, %v5858_v6 }
 0x263   : > { %v2629_v61 = vrot.slane %v2621_v15, %v5868_v26  ;;  %v3027_v37 = vadd.f32 %v3026_v46, %v3018_v31  ;;  %v3020_v21 = vmul.f32 %v3004_v32, %v5861_v16  ;;  %v3019_v58 = vmul.f32 %v3003_v38, %v5861_v16 }
 0x264   : > { %v2636_v4 = vrot.slane %v2622_v62, %v5868_v26  ;;  %v3021_v8 = vmul.f32 %v3005_v59, %v5861_v16  ;;  %v2960_v33 = vmul.f32 0.5, %v2942_v0  ;;  %v2959_v56 = vmul.f32 0.5, %v2855_v39 }
 0x265   : > { %v6422_v43 = vadd.f32 %v3044_v24, %v3020_v21  ;;  %v6424_v49 = vadd.f32 %v3035_v29, %v3019_v58  ;;  %v2944_v45 = vadd.f32 %v6236_v25, %v5858_v6  ;;  %v3284_v52 = vadd.f32 %v6267_v51, %v5839_v50 }
 0x266   : > { %v2637_v46 = vcombine.low %v2629_v61, %v2636_v4  ;;  %v6430_v34 = vadd.f32 %v3053_v28, %v3021_v8  ;;  %4776 = vtanh.f32 %v2960_v33  ;;  %v3373_v5 = vadd.f32 %v6274_v55, %v5839_v50  ;;  %v6685_v28 = vld [vmem:[#allocation7_spill] sm:$0xff] }
 0x267   : > { %4778 = vtanh.f32 %v2959_v56  ;;  %v2961_v36 = vmul.f32 0.5, %v2944_v45  ;;  %v3395_v24 = vmul.f32 0.5, %v3284_v52  ;;  %v3286_v29 = vadd.f32 %v6269_v27, %v5839_v50 }
 0x268   : > { %v2644_v30 = vrot.slane %v2637_v46, %v5868_v26  ;;  %v3397_v25 = vmul.f32 0.5, %v3373_v5  ;;  %v3375_v51 = vadd.f32 %v6277_v17, %v5839_v50  ;;  %v3290_v18 = vadd.f32 %v6685_v28, %v5846_v63  ;;  %v6688_v17 = vld [vmem:[#allocation10_spill] sm:$0xff] }
 0x269   : > { %4780 = vtanh.f32 %v2961_v36  ;;  %v3396_v42 = vmul.f32 0.5, %v3286_v29  ;;  %v3379_v55 = vadd.f32 %v6686_v13, %v5846_v63  ;;  %v3292_v10 = vadd.f32 %v6687_v44, %v5846_v63 }
 0x26a   : > { %v4775_v12 = vpop.eup %4774  ;;  %4124 = vst.msk [vmem:[%s5960_s24 + $0x4] ss:$8 sm:$0xf] %vm5920_vm1, %v2644_v30  ;;  %4782 = vtanh.f32 %v3395_v24  ;;  %v3398_v27 = vmul.f32 0.5, %v3375_v51  ;;  %v3399_v15 = vmul.f32 0.5, %v3290_v18  ;;  %v3381_v31 = vadd.f32 %v6688_v17, %v5846_v63 }
 0x26b   : > { %v2990_v32 = vadd.f32 1.0, %v4775_v12  ;;  %4784 = vtanh.f32 %v3397_v25  ;;  %v3401_v38 = vmul.f32 0.5, %v3379_v55  ;;  %v3400_v62 = vmul.f32 0.5, %v3292_v10 }
 0x26c   : > { %4786 = vtanh.f32 %v3396_v42  ;;  %v3402_v59 = vmul.f32 0.5, %v3381_v31  ;;  %v3296_v0 = vadd.f32 %v6291_v60, %v5841_v54  ;;  %v3385_v39 = vadd.f32 %v6298_v20, %v5841_v54 }
 0x26d   : > { %v3006_v61 = vmul.f32 0.5, %v2990_v32  ;;  %4788 = vtanh.f32 %v3398_v27  ;;  %v3298_v21 = vadd.f32 %v6295_v14, %v5841_v54  ;;  %v3387_v58 = vadd.f32 %v6303_v3, %v5841_v54 }
 0x26e   : > { %4790 = vtanh.f32 %v3399_v15  ;;  %v3403_v4 = vmul.f32 0.5, %v3296_v0  ;;  %v3405_v8 = vmul.f32 0.5, %v3385_v39  ;;  %v3302_v33 = vadd.f32 %v6308_v35, %v5858_v6 }
 0x26f   : > { %v3022_v56 = vmul.f32 %v3006_v61, %v5886_v19  ;;  %4792 = vtanh.f32 %v3401_v38  ;;  %v3404_v60 = vmul.f32 0.5, %v3298_v21  ;;  %v3406_v45 = vmul.f32 0.5, %v3387_v58 }
 0x270   : > { %v4777_v20 = vpop.eup %4776  ;;  %4794 = vtanh.f32 %v3400_v62  ;;  %v3407_v52 = vmul.f32 0.5, %v3302_v33  ;;  %v3391_v14 = vadd.f32 %v6326_v23, %v5858_v6  ;;  %v3304_v3 = vadd.f32 %v6316_v7, %v5858_v6 }
 0x271   : > { %v4779_v46 = vpop.eup %4778  ;;  %v3028_v5 = vadd.f32 %v3027_v37, %v3022_v56  ;;  %v2992_v36 = vadd.f32 1.0, %v4777_v20  ;;  %4796 = vtanh.f32 %v3402_v59  ;;  %v3393_v35 = vadd.f32 %v6333_v53, %v5858_v6 }
 0x272   : > { %v2991_v24 = vadd.f32 1.0, %v4779_v46  ;;  %4798 = vtanh.f32 %v3403_v4  ;;  %v6467_v29 = vmul.f32 0.5, %v3391_v14  ;;  %v6469_v30 = vmul.f32 0.5, %v3304_v3 }
 0x273   : > { %v4781_v25 = vpop.eup %4780  ;;  %v3029_v51 = vrot.slane %v3028_v5, 4  ;;  %v3008_v28 = vmul.f32 0.5, %v2992_v36  ;;  %4800 = vtanh.f32 %v3405_v8  ;;  %v6471_v23 = vmul.f32 0.5, %v3393_v35 }
 0x274   : > { %v4783_v7 = vpop.eup %4782  ;;  %v3007_v18 = vmul.f32 0.5, %v2991_v24  ;;  %v2993_v37 = vadd.f32 1.0, %v4781_v25  ;;  %4802 = vtanh.f32 %v3404_v60  ;;  %v6475_v42 = vadd.f32 %v6357_v9, %v5839_v50 }
 0x275   : > { %v4785_v53 = vpop.eup %4784  ;;  %v3030_v13 = vadd.f32 %v3029_v51, %v3028_v5  ;;  %v3024_v55 = vmul.f32 %v3008_v28, %v5886_v19  ;;  %v3427_v44 = vadd.f32 1.0, %v4783_v7  ;;  %4804 = vtanh.f32 %v3406_v45 }
 0x276   : > { %v4787_v10 = vpop.eup %4786  ;;  %v3023_v12 = vmul.f32 %v3007_v18, %v5886_v19  ;;  %v3009_v27 = vmul.f32 0.5, %v2993_v37  ;;  %v3429_v15 = vadd.f32 1.0, %v4785_v53  ;;  %4806 = vtanh.f32 %v3407_v52 }
 0x277   : > { %v4789_v17 = vpop.eup %4788  ;;  %v3031_v31 = vrot.slane %v3030_v13, 2  ;;  %v3046_v32 = vadd.f32 %v6422_v43, %v3024_v55  ;;  %v3443_v38 = vmul.f32 0.5, %v3427_v44  ;;  %v3428_v62 = vadd.f32 1.0, %v4787_v10 }
 0x278   : > { %v4791_v9 = vpop.eup %4790  ;;  %v3037_v59 = vadd.f32 %v6424_v49, %v3023_v12  ;;  %v3025_v0 = vmul.f32 %v3009_v27, %v5886_v19  ;;  %v3445_v39 = vmul.f32 0.5, %v3429_v15  ;;  %v3430_v61 = vadd.f32 1.0, %v4789_v17 }
 0x279   : > { %v4793_v21 = vpop.eup %4792  ;;  %v3032_v58 = vadd.f32 %v3031_v31, %v3030_v13  ;;  %v3047_v4 = vrot.slane %v3046_v32, 4  ;;  %v3459_v8 = vmul.f32 %v3443_v38, %v6669_v11  ;;  %v3444_v33 = vmul.f32 0.5, %v3428_v62 }
 0x27a   : > { %v4795_v56 = vpop.eup %4794  ;;  %v3038_v60 = vrot.slane %v3037_v59, 4  ;;  %v3055_v45 = vadd.f32 %v6430_v34, %v3025_v0  ;;  %v3461_v43 = vmul.f32 %v3445_v39, %v6669_v11  ;;  %v3446_v20 = vmul.f32 0.5, %v3430_v61 }
 0x27b   : > { %v4797_v52 = vpop.eup %4796  ;;  %v3033_v14 = vrot.slane %v3032_v58, 1  ;;  %v3048_v49 = vadd.f32 %v3047_v4, %v3046_v32  ;;  %v3460_v3 = vmul.f32 %v3444_v33, %v6669_v11  ;;  %v3431_v46 = vadd.f32 1.0, %v4791_v9 }
 0x27c   : > { %v4799_v5 = vpop.eup %4798  ;;  %v3039_v36 = vadd.f32 %v3038_v60, %v3037_v59  ;;  %v3056_v35 = vrot.slane %v3055_v45, 4  ;;  %v3462_v24 = vmul.f32 %v3446_v20, %v6669_v11  ;;  %v3433_v25 = vadd.f32 1.0, %v4793_v21 }
 0x27d   : > { %v4801_v51 = vpop.eup %4800  ;;  %v3034_v28 = vadd.f32 %v3033_v14, %v3032_v58  ;;  %v3049_v7 = vrot.slane %v3048_v49, 2  ;;  %v3447_v18 = vmul.f32 0.5, %v3431_v46  ;;  %v3432_v34 = vadd.f32 1.0, %v4795_v56 }
 0x27e   : > { %v4803_v37 = vpop.eup %4802  ;;  %v3040_v53 = vrot.slane %v3039_v36, 2  ;;  %v3057_v13 = vadd.f32 %v3056_v35, %v3055_v45  ;;  %v3449_v55 = vmul.f32 0.5, %v3433_v25  ;;  %v3434_v44 = vadd.f32 1.0, %v4797_v52 }
 0x27f   : > { %v4805_v10 = vpop.eup %4804  ;;  %v3062_v12 = vadd.f32 %v3034_v28, %v5871_v47  ;;  %v3050_v27 = vadd.f32 %v3049_v7, %v3048_v49  ;;  %v3463_v15 = vmul.f32 %v3447_v18, %v5873_v22  ;;  %v3448_v17 = vmul.f32 0.5, %v3432_v34 }
 0x280   : > { %v4807_v31 = vpop.eup %4806  ;;  %v3041_v32 = vadd.f32 %v3040_v53, %v3039_v36  ;;  %v3058_v38 = vrot.slane %v3057_v13, 2  ;;  %v3465_v62 = vmul.f32 %v3449_v55, %v5873_v22  ;;  %v3450_v9 = vmul.f32 0.5, %v3434_v44 }
 0x281   : > { %v3051_v59 = vrot.slane %v3050_v27, 1  ;;  %v3475_v0 = vadd.f32 %v3463_v15, %v3459_v8  ;;  %v3464_v39 = vmul.f32 %v3448_v17, %v5873_v22  ;;  %v3435_v61 = vadd.f32 1.0, %v4799_v5 }
 0x282   : > { %v3042_v21 = vrot.slane %v3041_v32, 1  ;;  %v3059_v58 = vadd.f32 %v3058_v38, %v3057_v13  ;;  %v3493_v4 = vadd.f32 %v3465_v62, %v3461_v43  ;;  %v3466_v33 = vmul.f32 %v3450_v9, %v5873_v22  ;;  %v6689_v9 = vld [vmem:[#allocation8_spill] sm:$0xff] }
 0x283   : > { %v3052_v56 = vadd.f32 %v3051_v59, %v3050_v27  ;;  %v3484_v60 = vadd.f32 %v3464_v39, %v3460_v3  ;;  %v3451_v45 = vmul.f32 0.5, %v3435_v61  ;;  %v3437_v20 = vadd.f32 1.0, %v4801_v51 }
 0x284   : > { %v3043_v52 = vadd.f32 %v3042_v21, %v3041_v32  ;;  %v3060_v14 = vrot.slane %v3059_v58, 1  ;;  %v3502_v49 = vadd.f32 %v3466_v33, %v3462_v24  ;;  %v3436_v46 = vadd.f32 1.0, %v4803_v37 }
 0x285   : > { %v3064_v36 = vadd.f32 %v3052_v56, %v5871_v47  ;;  %v3467_v8 = vmul.f32 %v3451_v45, %v5861_v16  ;;  %v3453_v35 = vmul.f32 0.5, %v3437_v20  ;;  %v3438_v25 = vadd.f32 1.0, %v4805_v10 }
 0x286   : > { %v3063_v5 = vadd.f32 %v3043_v52, %v5871_v47  ;;  %v3061_v28 = vadd.f32 %v3060_v14, %v3059_v58  ;;  %v3452_v43 = vmul.f32 0.5, %v3436_v46  ;;  %v3439_v7 = vadd.f32 1.0, %v4807_v31  ;;  %v6693_v52 = vld [vmem:[#allocation14_spill] sm:$0xff] }
 0x287   : > { %v3476_v18 = vadd.f32 %v3475_v0, %v3467_v8  ;;  %v3469_v3 = vmul.f32 %v3453_v35, %v5861_v16  ;;  %v3454_v34 = vmul.f32 0.5, %v3438_v25  ;;  %4808 = vtanh.f32 %v6467_v29 }
 0x288   : > { %v3070_v51 = vcombine.low %v3062_v12, %v3063_v5  ;;  %v3065_v24 = vadd.f32 %v3061_v28, %v5871_v47  ;;  %v3468_v37 = vmul.f32 %v3452_v43, %v5861_v16  ;;  %v3455_v53 = vmul.f32 0.5, %v3439_v7  ;;  %v6696_v43 = vld [vmem:[#allocation17_spill] sm:$0xff] }
 0x289   : > { %v6499_v13 = vadd.f32 %v3493_v4, %v3469_v3  ;;  %v3470_v55 = vmul.f32 %v3454_v34, %v5861_v16  ;;  %4810 = vtanh.f32 %v6469_v30  ;;  %v3844_v44 = vmul.f32 0.5, %v6475_v42 }
 0x28a   : > { %v3078_v10 = vrot.slane %v3070_v51, %v5868_v26  ;;  %v3071_v27 = vcombine.low %v3064_v36, %v3065_v24  ;;  %v6505_v15 = vadd.f32 %v3484_v60, %v3468_v37  ;;  %v3471_v29 = vmul.f32 %v3455_v53, %v5886_v19  ;;  %v6697_v53 = vld [vmem:[#allocation18_spill] sm:$0xff] }
 0x28b   : > { %v6508_v12 = vadd.f32 %v3502_v49, %v3470_v55  ;;  %4812 = vtanh.f32 %v6471_v23  ;;  %v3822_v17 = vadd.f32 %v6370_v2, %v5839_v50  ;;  %v3735_v31 = vadd.f32 %v6362_v48, %v5839_v50  ;;  %v6690_v23 = vld [vmem:[#allocation12_spill] sm:$0xff]  ;;  %v6691_v48 = vld [vmem:[#allocation11_spill] sm:$0xff] }
 0x28c   : > { %v3085_v30 = vrot.slane %v3071_v27, %v5868_v26  ;;  %v3477_v42 = vadd.f32 %v3476_v18, %v3471_v29  ;;  %4814 = vtanh.f32 %v3844_v44  ;;  %v3824_v32 = vadd.f32 %v6373_v57, %v5839_v50  ;;  %v6692_v50 = vld [vmem:[#allocation13_spill] sm:$0xff]  ;;  %v6694_v49 = vld [vmem:[#allocation16_spill] sm:$0xff] }
 0x28d   : > { %v3846_v38 = vmul.f32 0.5, %v3822_v17  ;;  %v3845_v62 = vmul.f32 0.5, %v3735_v31  ;;  %v3739_v59 = vadd.f32 %v6689_v9, %v5846_v63  ;;  %v3828_v0 = vadd.f32 %v6690_v23, %v5846_v63 }
 0x28e   : > { %v3086_v39 = vcombine.low %v3078_v10, %v3085_v30  ;;  %v3478_v2 = vrot.slane %v3477_v42, 4  ;;  %v3847_v61 = vmul.f32 0.5, %v3824_v32  ;;  %v3741_v21 = vadd.f32 %v6691_v48, %v5846_v63 }
 0x28f   : > { %4816 = vtanh.f32 %v3846_v38  ;;  %v3848_v58 = vmul.f32 0.5, %v3739_v59  ;;  %v3850_v4 = vmul.f32 0.5, %v3828_v0  ;;  %v3830_v57 = vadd.f32 %v6692_v50, %v5846_v63  ;;  %v6695_v63 = vld [vmem:[#allocation15_spill] sm:$0xff] }
 0x290   : > { %v3093_v33 = vrot.slane %v3086_v39, %v5868_v26  ;;  %v3479_v56 = vadd.f32 %v3478_v2, %v3477_v42  ;;  %4818 = vtanh.f32 %v3845_v62  ;;  %v3849_v60 = vmul.f32 0.5, %v3741_v21  ;;  %v6698_v0 = vld [vmem:[#allocation19_spill] sm:$0xff] }
 0x291   : > { %v4809_v45 = vpop.eup %4808  ;;  %4820 = vtanh.f32 %v3847_v61  ;;  %v3851_v20 = vmul.f32 0.5, %v3830_v57  ;;  %v3745_v14 = vadd.f32 %v6693_v52, %v5841_v54  ;;  %v3834_v46 = vadd.f32 %v6694_v49, %v5841_v54 }
 0x292   : > { %4134 = vst.msk [vmem:[%s5960_s24 + $0x5] ss:$8 sm:$0xf] %vm5920_vm1, %v3093_v33  ;;  %v3480_v36 = vrot.slane %v3479_v56, 2  ;;  %v3441_v8 = vadd.f32 1.0, %v4809_v45  ;;  %4822 = vtanh.f32 %v3848_v58  ;;  %v3747_v35 = vadd.f32 %v6695_v63, %v5841_v54 }
 0x293   : > { %v4811_v25 = vpop.eup %4810  ;;  %4824 = vtanh.f32 %v3850_v4  ;;  %v3852_v5 = vmul.f32 0.5, %v3745_v14  ;;  %v3854_v28 = vmul.f32 0.5, %v3834_v46  ;;  %v3836_v7 = vadd.f32 %v6696_v43, %v5841_v54 }
 0x294   : > { %v3481_v18 = vadd.f32 %v3480_v36, %v3479_v56  ;;  %v3457_v3 = vmul.f32 0.5, %v3441_v8  ;;  %v3440_v34 = vadd.f32 1.0, %v4811_v25  ;;  %4826 = vtanh.f32 %v3849_v60 }
 0x295   : > { %v4813_v51 = vpop.eup %4812  ;;  %4828 = vtanh.f32 %v3851_v20  ;;  %v3853_v24 = vmul.f32 0.5, %v3747_v35  ;;  %v3855_v37 = vmul.f32 0.5, %v3836_v7  ;;  %v3751_v55 = vadd.f32 %v6697_v53, %v5858_v6 }
 0x296   : > { %v4815_v44 = vpop.eup %4814  ;;  %v3482_v10 = vrot.slane %v3481_v18, 1  ;;  %v3473_v27 = vmul.f32 %v3457_v3, %v5886_v19  ;;  %v3456_v29 = vmul.f32 0.5, %v3440_v34  ;;  %v3442_v17 = vadd.f32 1.0, %v4813_v51 }
 0x297   : > { %v3876_v31 = vadd.f32 1.0, %v4815_v44  ;;  %4830 = vtanh.f32 %v3852_v5  ;;  %v6541_v54 = vmul.f32 0.5, %v3751_v55  ;;  %v3840_v30 = vadd.f32 %v6402_v40, %v5858_v6 }
 0x298   : > { %v3483_v42 = vadd.f32 %v3482_v10, %v3481_v18  ;;  %v3495_v32 = vadd.f32 %v6499_v13, %v3473_v27  ;;  %v3472_v38 = vmul.f32 %v3456_v29, %v5886_v19  ;;  %v3458_v62 = vmul.f32 0.5, %v3442_v17 }
 0x299   : > { %v4817_v9 = vpop.eup %4816  ;;  %v3892_v59 = vmul.f32 0.5, %v3876_v31  ;;  %4832 = vtanh.f32 %v3854_v28  ;;  %v6547_v23 = vmul.f32 0.5, %v3840_v30  ;;  %v6551_v39 = vadd.f32 %v6698_v0, %v5858_v6 }
 0x29a   : > { %v4819_v2 = vpop.eup %4818  ;;  %v6554_v61 = vadd.f32 %v3483_v42, %v5871_v47  ;;  %v3496_v40 = vrot.slane %v3495_v32, 4  ;;  %v3486_v48 = vadd.f32 %v6505_v15, %v3472_v38  ;;  %v3474_v13 = vmul.f32 %v3458_v62, %v5886_v19 }
 0x29b   : > { %v4821_v21 = vpop.eup %4820  ;;  %v3908_v58 = vmul.f32 %v3892_v59, %v6669_v11  ;;  %v3878_v4 = vadd.f32 1.0, %v4817_v9  ;;  %v3877_v50 = vadd.f32 1.0, %v4819_v2  ;;  %4834 = vtanh.f32 %v3853_v24 }
 0x29c   : > { %v4823_v57 = vpop.eup %4822  ;;  %v3497_v33 = vadd.f32 %v3496_v40, %v3495_v32  ;;  %v3487_v56 = vrot.slane %v3486_v48, 4  ;;  %v3504_v60 = vadd.f32 %v6508_v12, %v3474_v13  ;;  %v3879_v45 = vadd.f32 1.0, %v4821_v21 }
 0x29d   : > { %v4825_v20 = vpop.eup %4824  ;;  %v3894_v52 = vmul.f32 0.5, %v3878_v4  ;;  %v3893_v14 = vmul.f32 0.5, %v3877_v50  ;;  %v3880_v49 = vadd.f32 1.0, %v4823_v57  ;;  %4836 = vtanh.f32 %v3855_v37 }
 0x29e   : > { %v4827_v15 = vpop.eup %4826  ;;  %v3498_v46 = vrot.slane %v3497_v33, 2  ;;  %v3488_v36 = vadd.f32 %v3487_v56, %v3486_v48  ;;  %v3505_v8 = vrot.slane %v3504_v60, 4  ;;  %v3895_v63 = vmul.f32 0.5, %v3879_v45 }
 0x29f   : > { %v4829_v35 = vpop.eup %4828  ;;  %v3910_v25 = vmul.f32 %v3894_v52, %v6669_v11  ;;  %v3909_v5 = vmul.f32 %v3893_v14, %v6669_v11  ;;  %v3896_v28 = vmul.f32 0.5, %v3880_v49  ;;  %v3882_v43 = vadd.f32 1.0, %v4825_v20 }
 0x2a0   : > { %v3499_v7 = vadd.f32 %v3498_v46, %v3497_v33  ;;  %v3489_v12 = vrot.slane %v3488_v36, 2  ;;  %v3506_v18 = vadd.f32 %v3505_v8, %v3504_v60  ;;  %v3911_v3 = vmul.f32 %v3895_v63, %v6669_v11 }
 0x2a1   : > { %v4831_v34 = vpop.eup %4830  ;;  %v3912_v51 = vmul.f32 %v3896_v28, %v5873_v22  ;;  %v3898_v24 = vmul.f32 0.5, %v3882_v43  ;;  %v3881_v37 = vadd.f32 1.0, %v4827_v15  ;;  %v3883_v53 = vadd.f32 1.0, %v4829_v35 }
 0x2a2   : > { %v3500_v55 = vrot.slane %v3499_v7, 1  ;;  %v3490_v44 = vadd.f32 %v3489_v12, %v3488_v36  ;;  %v3507_v10 = vrot.slane %v3506_v18, 2  ;;  %v3884_v27 = vadd.f32 1.0, %v4831_v34 }
 0x2a3   : > { %v4833_v29 = vpop.eup %4832  ;;  %v3924_v17 = vadd.f32 %v3912_v51, %v3908_v58  ;;  %v3914_v31 = vmul.f32 %v3898_v24, %v5873_v22  ;;  %v3897_v30 = vmul.f32 0.5, %v3881_v37  ;;  %v3899_v42 = vmul.f32 0.5, %v3883_v53 }
 0x2a4   : > { %v3501_v32 = vadd.f32 %v3500_v55, %v3499_v7  ;;  %v3491_v38 = vrot.slane %v3490_v44, 1  ;;  %v3508_v62 = vadd.f32 %v3507_v10, %v3506_v18  ;;  %v3900_v11 = vmul.f32 0.5, %v3884_v27 }
 0x2a5   : > { %v4835_v9 = vpop.eup %4834  ;;  %v3942_v59 = vadd.f32 %v3914_v31, %v3910_v25  ;;  %v3913_v0 = vmul.f32 %v3897_v30, %v5873_v22  ;;  %v3915_v2 = vmul.f32 %v3899_v42, %v5873_v22  ;;  %v3886_v40 = vadd.f32 1.0, %v4833_v29 }
 0x2a6   : > { %v3513_v48 = vadd.f32 %v3501_v32, %v5871_v47  ;;  %v3492_v13 = vadd.f32 %v3491_v38, %v3490_v44  ;;  %v3509_v21 = vrot.slane %v3508_v62, 1  ;;  %v3916_v58 = vmul.f32 %v3900_v11, %v5861_v16 }
 0x2a7   : > { %v4837_v4 = vpop.eup %4836  ;;  %v3933_v50 = vadd.f32 %v3913_v0, %v3909_v5  ;;  %v3951_v57 = vadd.f32 %v3915_v2, %v3911_v3  ;;  %v3902_v33 = vmul.f32 0.5, %v3886_v40  ;;  %v3885_v56 = vadd.f32 1.0, %v4835_v9 }
 0x2a8   : > { %v3512_v60 = vadd.f32 %v3492_v13, %v5871_v47  ;;  %v3510_v45 = vadd.f32 %v3509_v21, %v3508_v62  ;;  %v3925_v20 = vadd.f32 %v3924_v17, %v3916_v58  ;;  %v3887_v52 = vadd.f32 1.0, %v4837_v4 }
 0x2a9   : > { %v3918_v14 = vmul.f32 %v3902_v33, %v5861_v16  ;;  %v3901_v22 = vmul.f32 0.5, %v3885_v56  ;;  %4838 = vtanh.f32 %v6541_v54  ;;  %v3857_v49 = vmul.f32 0.5, %v6551_v39 }
 0x2aa   : > { %v3519_v15 = vcombine.low %v6554_v61, %v3512_v60  ;;  %v3514_v46 = vadd.f32 %v3510_v45, %v5871_v47  ;;  %v3903_v36 = vmul.f32 0.5, %v3887_v52  ;;  %4840 = vtanh.f32 %v6547_v23 }
 0x2ab   : > { %v3943_v8 = vadd.f32 %v3942_v59, %v3918_v14  ;;  %v3917_v63 = vmul.f32 %v3901_v22, %v5861_v16  ;;  %4842 = vtanh.f32 %v3857_v49  ;;  %v3842_v35 = vadd.f32 %v6405_v1, %v5858_v6 }
 0x2ac   : > { %v3527_v25 = vrot.slane %v3519_v15, %v5868_v26  ;;  %v3520_v54 = vcombine.low %v3513_v48, %v3514_v46  ;;  %v3919_v39 = vmul.f32 %v3903_v36, %v5861_v16 }
 0x2ad   : > { %v3934_v5 = vadd.f32 %v3933_v50, %v3917_v63  ;;  %v3859_v61 = vmul.f32 0.5, %v3842_v35 }
 0x2ae   : > { %v3534_v28 = vrot.slane %v3520_v54, %v5868_v26  ;;  %v3952_v43 = vadd.f32 %v3951_v57, %v3919_v39 }
 0x2af   : > { %4844 = vtanh.f32 %v3859_v61 }
 0x2b0   : > { %v3535_v23 = vcombine.low %v3527_v25, %v3534_v28 }
 0x2b2   : > { %v3542_v7 = vrot.slane %v3535_v23, %v5868_v26 }
 0x2b3   : > { %v4839_v12 = vpop.eup %4838 }
 0x2b4   : > { %v4841_v18 = vpop.eup %4840  ;;  %4144 = vst.msk [vmem:[%s5960_s24 + $0x6] ss:$8 sm:$0xf] %vm5920_vm1, %v3542_v7  ;;  %v3888_v6 = vadd.f32 1.0, %v4839_v12 }
 0x2b5   : > { %v4843_v1 = vpop.eup %4842  ;;  %v3890_v3 = vadd.f32 1.0, %v4841_v18 }
 0x2b6   : > { %v3904_v34 = vmul.f32 0.5, %v3888_v6  ;;  %v3889_v51 = vadd.f32 1.0, %v4843_v1 }
 0x2b7   : > { %v3906_v16 = vmul.f32 0.5, %v3890_v3 }
 0x2b8   : > { %v3920_v24 = vmul.f32 %v3904_v34, %v5886_v19  ;;  %v3905_v37 = vmul.f32 0.5, %v3889_v51 }
 0x2b9   : > { %v4845_v53 = vpop.eup %4844  ;;  %v3922_v55 = vmul.f32 %v3906_v16, %v5886_v19 }
 0x2ba   : > { %v3926_v44 = vadd.f32 %v3925_v20, %v3920_v24  ;;  %v3921_v10 = vmul.f32 %v3905_v37, %v5886_v19  ;;  %v3891_v27 = vadd.f32 1.0, %v4845_v53 }
 0x2bb   : > { %v3944_v29 = vadd.f32 %v3943_v8, %v3922_v55 }
 0x2bc   : > { %v3927_v17 = vrot.slane %v3926_v44, 4  ;;  %v3935_v31 = vadd.f32 %v3934_v5, %v3921_v10  ;;  %v3907_v30 = vmul.f32 0.5, %v3891_v27 }
 0x2bd   : > { %v3945_v42 = vrot.slane %v3944_v29, 4 }
 0x2be   : > { %v3928_v32 = vadd.f32 %v3927_v17, %v3926_v44  ;;  %v3936_v38 = vrot.slane %v3935_v31, 4  ;;  %v3923_v62 = vmul.f32 %v3907_v30, %v5886_v19 }
 0x2bf   : > { %v3946_v11 = vadd.f32 %v3945_v42, %v3944_v29 }
 0x2c0   : > { %v3929_v9 = vrot.slane %v3928_v32, 2  ;;  %v3937_v59 = vadd.f32 %v3936_v38, %v3935_v31  ;;  %v3953_v0 = vadd.f32 %v3952_v43, %v3923_v62 }
 0x2c1   : > { %v3947_v2 = vrot.slane %v3946_v11, 2 }
 0x2c2   : > { %v3930_v40 = vadd.f32 %v3929_v9, %v3928_v32  ;;  %v3938_v48 = vrot.slane %v3937_v59, 2  ;;  %v3954_v13 = vrot.slane %v3953_v0, 4 }
 0x2c3   : > { %v3948_v21 = vadd.f32 %v3947_v2, %v3946_v11 }
 0x2c4   : > { %v3931_v58 = vrot.slane %v3930_v40, 1  ;;  %v3939_v4 = vadd.f32 %v3938_v48, %v3937_v59  ;;  %v3955_v50 = vadd.f32 %v3954_v13, %v3953_v0 }
 0x2c5   : > { %v3949_v57 = vrot.slane %v3948_v21, 1 }
 0x2c6   : > { %v3932_v33 = vadd.f32 %v3931_v58, %v3930_v40  ;;  %v3940_v56 = vrot.slane %v3939_v4, 1  ;;  %v3956_v60 = vrot.slane %v3955_v50, 2 }
 0x2c7   : > { %v3950_v45 = vadd.f32 %v3949_v57, %v3948_v21 }
 0x2c8   : > { %v3960_v19 = vadd.f32 %v3932_v33, %v5871_v47  ;;  %v3941_v20 = vadd.f32 %v3940_v56, %v3939_v4  ;;  %v3957_v52 = vadd.f32 %v3956_v60, %v3955_v50 }
 0x2c9   : > { %v3962_v49 = vadd.f32 %v3950_v45, %v5871_v47 }
 0x2ca   : > { %v3961_v14 = vadd.f32 %v3941_v20, %v5871_v47  ;;  %v3958_v22 = vrot.slane %v3957_v52, 1 }
 0x2cc   : > { %v3968_v15 = vcombine.low %v3960_v19, %v3961_v14  ;;  %v3959_v46 = vadd.f32 %v3958_v22, %v3957_v52 }
 0x2ce   : > { %v3963_v36 = vadd.f32 %v3959_v46, %v5871_v47  ;;  %v3976_v8 = vrot.slane %v3968_v15, %v5868_v26 }
 0x2d0   : > { %v3969_v63 = vcombine.low %v3962_v49, %v3963_v36 }
 0x2d2   : > { %v3983_v35 = vrot.slane %v3969_v63, %v5868_v26 }
 0x2d4   : > { %v3984_v25 = vcombine.low %v3976_v8, %v3983_v35 }
 0x2d6   : > { %v3991_v54 = vrot.slane %v3984_v25, %v5868_v26 }
 0x2d8   : > { %4154 = vst.msk [vmem:[%s5960_s24 + $0x7] ss:$8 sm:$0xf] %vm5920_vm1, %v3991_v54 }
 0x2d9   : > { %4863 = shalt.err (!%p4860_p3)
}
 0x2da   : > { %s4864_s19 = scalar_lea.hbm %s6602_s14, 512  ;;  %s4868_s20 = scalar_lea.hbm %s6656_s7, 1024 }
 0x2db   : > { %p4865_p4 = scmp.ne.s32.totalorder %s6602_s14, %s4864_s19  ;;  %p4869_p9 = scmp.lt.u32.totalorder %s6602_s14, %s6656_s7 }
 0x2dc   : > { %p4870_p10 = scmp.lt.u32.totalorder %s4868_s20, %s4864_s19  ;;  %p4872_p12 = scmp.lt.u32.totalorder %s4864_s19, %s6602_s14 }
 0x2dd   : > { %p4866_p7 = pnand %p4865_p4, %p4999_p5 }
 0x2de   : > { %p4871_p11 = por %p4870_p10, %p4869_p9 }
 0x2df   : > { %p4867_p8 = pneg %p4866_p7 }
 0x2e0   : > { %p4873_p13 = por %p4872_p12, %p4871_p11 }
 0x2e2   : > { %p4874_p0 = pnand %p4873_p13, %p4867_p8 }
 0x2e4   : > { %4877 = shalt.err (!%p4874_p0)
}
 0x2e5   : > { %4290 = dma.vmem_to_hbm [thread:$0]  (%p4999_p5), %s6604_s30, 512, %s6602_s14, %s3997_s15  }
 0x2e6 PF: > { %p4296_p1 = scmp.ge.s32.totalorder %s4912_s29, 2  ;;  %s4023_s25 = sand.u32 1, %s4900_s26  }
 0x2e7   : > { %s4024_s9 = scalar_lea.sflag [#allocation4], %s4023_s25 }
 0x2e8   : > { %p4293_p2 = pnand %p4296_p1, %p5003_p6 }
 0x2ea   : > { %4895 = dma.done.wait (!%p4293_p2), %s4024_s9, 512  }
 0x2eb   : > { %4897 = vsyncadd (!%p4293_p2), %s4024_s9, 4294966784  ;;  %p19_p3 = scmp.ge.s32.totalorder %s4986_s8, 4   ;;  %s6699_s26 = smov %s4904_s27 }
 0x2ec   : > { %s6700_s27 = smov %s4908_s28  ;;  %s6701_s28 = smov %s4997_s11 }
 0x2ed   : > { %s6702_s29 = smov %s4986_s8  ;;  %21 = sbr.rel (!%p19_p3) target bundleno = 6 (0x6), region = 97 }
 0x2f4   :  { %4029 = vsyncpa [#allocation4], 1 }
 0x2f5   :  { %4031 = vsyncpa [#allocation4 + $0x1], 1 }

</bundles_post_ra>
